<compile_context>
chip_gen: v6e
topology: v6e:2x2x1
jax: 0.10.0
libtpu: 0.0.40
codegen_flags: <defaults>
</compile_context>

<pallas_src>
import jax
import jax.numpy as jnp
from jax.experimental import pallas as pl
from jax.experimental.pallas import tpu as pltpu

K_IN = 784          # 28 * 28
K_PAD = 896         # 7 * 128 : full-lane-width contraction for layer 1
H1, H2 = 512, 256
TB = 128            # batch tile: full MXU M pass on v5e, clean tile on v6e/v7x


def _disc_kernel(x_ref, w1_ref, b1_ref, w2_ref, b2_ref, w3_ref, b3_ref, o_ref):
    # x tile: (TB, 896) f32; weights: bf16, resident in VMEM across grid steps.
    x = x_ref[...].astype(jnp.bfloat16)

    # Layer 1: (TB,896) @ (896,512), f32 accumulate on the MXU.
    h1 = jnp.dot(x, w1_ref[...], preferred_element_type=jnp.float32)
    h1 = h1 + b1_ref[...]
    h1 = jnp.where(h1 > 0, h1, 0.2 * h1)                     # LeakyReLU(0.2), f32 VPU

    # Layer 2: (TB,512) @ (512,256)
    h2 = jnp.dot(h1.astype(jnp.bfloat16), w2_ref[...],
                 preferred_element_type=jnp.float32)
    h2 = h2 + b2_ref[...]
    h2 = jnp.where(h2 > 0, h2, 0.2 * h2)                     # LeakyReLU(0.2)

    # Layer 3 has N=1: VPU multiply + XLU lane reduction instead of an MXU
    # matmul that fills a whole pass to emit a single output lane.
    w3_row = w3_ref[...].astype(jnp.float32)                  # (1, 256)
    logit = jnp.sum(h2 * w3_row, axis=-1, keepdims=True) + b3_ref[...]

    o_ref[...] = jax.nn.sigmoid(logit).astype(o_ref.dtype)    # Sigmoid (EUP)


def prepare_params(params):
    """One-time host-side prep (hoisted out of the hot path):
    cast weights to bf16, zero-pad w1's contraction dim 784->896,
    reshape w3 to a (1,256) row for the VPU reduction."""
    w1, b1, w2, b2, w3, b3 = params
    w1p = jnp.zeros((K_PAD, H1), jnp.bfloat16).at[:K_IN, :].set(w1.astype(jnp.bfloat16))
    w2p = w2.astype(jnp.bfloat16)                             # (512, 256)
    w3p = w3.reshape(1, H2).astype(jnp.bfloat16)              # (1, 256)
    return (w1p, b1.astype(jnp.float32),
            w2p, b2.astype(jnp.float32),
            w3p, b3.reshape(1, 1).astype(jnp.float32))


def discriminator_forward(img, prepared):
    """img: (B, 1, 28, 28) float32 -> validity scores (B, 1) float32."""
    w1, b1, w2, b2, w3, b3 = prepared
    B = img.shape[0]
    x = img.reshape(B, -1).astype(jnp.float32)                # (B, 784), row-major (== torch .view)

    # Pad batch to a multiple of TB and K to 896 (zeros are harmless: zero
    # columns of w1 were appended to match).
    B_pad = pl.cdiv(B, TB) * TB
    x = jnp.pad(x, ((0, B_pad - B), (0, K_PAD - K_IN)))

    grid = (B_pad // TB,)

    in_specs = [
        pl.BlockSpec((TB, K_PAD), lambda i: (i, 0)),          # activations: tiled over batch
        pl.BlockSpec(w1.shape, lambda i: (0, 0)),             # weights/biases: VMEM-resident
        pl.BlockSpec(b1.shape, lambda i: (0, 0)),
        pl.BlockSpec(w2.shape, lambda i: (0, 0)),
        pl.BlockSpec(b2.shape, lambda i: (0, 0)),
        pl.BlockSpec(w3.shape, lambda i: (0, 0)),
        pl.BlockSpec(b3.shape, lambda i: (0, 0)),
    ]
    out_spec = pl.BlockSpec((TB, 1), lambda i: (i, 0))

    flops = 2 * B_pad * (K_PAD * H1 + H1 * H2 + H2)
    bytes_accessed = (x.size * 4
                      + w1.size * 2 + w2.size * 2 + w3.size * 2
                      + b1.size * 4 + b2.size * 4 + b3.size * 4
                      + B_pad * 4)

    out = pl.pallas_call(
        _disc_kernel,
        out_shape=jax.ShapeDtypeStruct((B_pad, 1), jnp.float32),
        grid_spec=pltpu.PrefetchScalarGridSpec(
            num_scalar_prefetch=0,
            grid=grid,
            in_specs=in_specs,
            out_specs=out_spec,
        ),
        compiler_params=pltpu.CompilerParams(
            dimension_semantics=("parallel",),                # megacore batch split on v7x
            vmem_limit_bytes=64 * 1024 * 1024,
        ),
        cost_estimate=pl.CostEstimate(
            flops=flops, transcendentals=B_pad, bytes_accessed=bytes_accessed),
    )(x, w1, b1, w2, b2, w3, b3)

    return out[:B]


def init_params(key):
    """Deterministic init mimicking nn.Linear default U(-1/sqrt(fan_in), 1/sqrt(fan_in))."""
    dims = [(K_IN, H1), (H1, H2), (H2, 1)]
    params = []
    for i, (fin, fout) in enumerate(dims):
        kw, kb = jax.random.split(jax.random.fold_in(key, i))
        bound = 1.0 / jnp.sqrt(fin)
        w = jax.random.uniform(kw, (fin, fout), jnp.float32, -bound, bound)
        b = jax.random.uniform(kb, (1, fout), jnp.float32, -bound, bound)
        params += [w, b]
    return tuple(params)


if __name__ == "__main__":
    key = jax.random.PRNGKey(0)
    k_img, k_param = jax.random.split(key)

    B = 8
    img = jax.random.normal(k_img, (B, 1, 28, 28), dtype=jnp.float32)
    params = init_params(k_param)
    prepared = prepare_params(params)            # one-time bf16 cast + padding

    fwd = jax.jit(discriminator_forward)
    out = fwd(img, prepared)
    out = jax.block_until_ready(out)

    # Sanity check against plain-JAX f32 reference of the PyTorch math
    # (kernel uses bf16 weights, so tolerance is loosened accordingly).
    w1, b1, w2, b2, w3, b3 = params
    x = img.reshape(B, -1)
    h1 = x @ w1 + b1
    h1 = jnp.where(h1 > 0, h1, 0.2 * h1)
    h2 = h1 @ w2 + b2
    h2 = jnp.where(h2 > 0, h2, 0.2 * h2)
    ref = jax.nn.sigmoid(h2 @ w3 + b3)

    assert out.shape == (B, 1)
    assert jnp.allclose(out, ref, atol=1e-2, rtol=1e-2), (
        f"max abs err = {jnp.max(jnp.abs(out - ref))}")
    print("KERNEL_OK")
</pallas_src>

<mosaic_0001>
module attributes {stable_mosaic.version = 11 : i64} {
  func.func @_disc_kernel(%arg0: i32, %arg1: memref<128x896xf32, #tpu.memory_space<vmem>>, %arg2: memref<896x512xbf16, #tpu.memory_space<vmem>>, %arg3: memref<1x512xf32, #tpu.memory_space<vmem>>, %arg4: memref<512x256xbf16, #tpu.memory_space<vmem>>, %arg5: memref<1x256xf32, #tpu.memory_space<vmem>>, %arg6: memref<1x256xbf16, #tpu.memory_space<vmem>>, %arg7: memref<1x1xf32, #tpu.memory_space<vmem>>, %arg8: memref<128x1xf32, #tpu.memory_space<vmem>>) attributes {dimension_semantics = [#tpu.dimension_semantics<parallel>], iteration_bounds = array<i64: 1>, scalar_prefetch = 0 : i64, scratch_operands = 0 : i64, tpu.core_type = #tpu.core_type<tc>, window_params = [{transform_indices = @transform_0, window_bounds = array<i64: 128, 896>}, {pipeline_mode = #tpu.pipeline_mode<synchronous>, transform_indices = @transform_1, window_bounds = array<i64: 896, 512>}, {pipeline_mode = #tpu.pipeline_mode<synchronous>, transform_indices = @transform_2, window_bounds = array<i64: 1, 512>}, {pipeline_mode = #tpu.pipeline_mode<synchronous>, transform_indices = @transform_3, window_bounds = array<i64: 512, 256>}, {pipeline_mode = #tpu.pipeline_mode<synchronous>, transform_indices = @transform_4, window_bounds = array<i64: 1, 256>}, {pipeline_mode = #tpu.pipeline_mode<synchronous>, transform_indices = @transform_5, window_bounds = array<i64: 1, 256>}, {pipeline_mode = #tpu.pipeline_mode<synchronous>, transform_indices = @transform_6, window_bounds = array<i64: 1, 1>}, {transform_indices = @transform_7, window_bounds = array<i64: 128, 1>}]} {
    %c0 = arith.constant 0 : index
    %c0_0 = arith.constant 0 : index
    %0 = vector.load %arg1[%c0, %c0_0] : memref<128x896xf32, #tpu.memory_space<vmem>>, vector<128x896xf32>
    %1 = arith.truncf %0 : vector<128x896xf32> to vector<128x896xbf16>
    %c0_1 = arith.constant 0 : index
    %c0_2 = arith.constant 0 : index
    %2 = vector.load %arg2[%c0_1, %c0_2] : memref<896x512xbf16, #tpu.memory_space<vmem>>, vector<896x512xbf16>
    %cst = arith.constant dense<0.000000e+00> : vector<128x512xf32>
    %3 = tpu.matmul %1, %2, %cst {dimension_numbers = #tpu.dot_dimension_numbers<[1], [0], [0], [1], [0, 0, 1, 1], [], []>} : vector<128x896xbf16>, vector<896x512xbf16>, vector<128x512xf32> -> vector<128x512xf32>
    %c0_3 = arith.constant 0 : index
    %c0_4 = arith.constant 0 : index
    %4 = vector.load %arg3[%c0_3, %c0_4] : memref<1x512xf32, #tpu.memory_space<vmem>>, vector<1x512xf32>
    %5 = vector.broadcast %4 : vector<1x512xf32> to vector<128x512xf32>
    %6 = arith.addf %3, %5 : vector<128x512xf32>
    %cst_5 = arith.constant 0.000000e+00 : f32
    %7 = vector.broadcast %cst_5 : f32 to vector<128x512xf32>
    %8 = arith.cmpf ogt, %6, %7 : vector<128x512xf32>
    %cst_6 = arith.constant 2.000000e-01 : f32
    %9 = vector.broadcast %cst_6 : f32 to vector<128x512xf32>
    %10 = arith.mulf %9, %6 : vector<128x512xf32>
    %11 = arith.select %8, %6, %10 : vector<128x512xi1>, vector<128x512xf32>
    %12 = arith.truncf %11 : vector<128x512xf32> to vector<128x512xbf16>
    %c0_7 = arith.constant 0 : index
    %c0_8 = arith.constant 0 : index
    %13 = vector.load %arg4[%c0_7, %c0_8] : memref<512x256xbf16, #tpu.memory_space<vmem>>, vector<512x256xbf16>
    %cst_9 = arith.constant dense<0.000000e+00> : vector<128x256xf32>
    %14 = tpu.matmul %12, %13, %cst_9 {dimension_numbers = #tpu.dot_dimension_numbers<[1], [0], [0], [1], [0, 0, 1, 1], [], []>} : vector<128x512xbf16>, vector<512x256xbf16>, vector<128x256xf32> -> vector<128x256xf32>
    %c0_10 = arith.constant 0 : index
    %c0_11 = arith.constant 0 : index
    %15 = vector.load %arg5[%c0_10, %c0_11] : memref<1x256xf32, #tpu.memory_space<vmem>>, vector<1x256xf32>
    %16 = vector.broadcast %15 : vector<1x256xf32> to vector<128x256xf32>
    %17 = arith.addf %14, %16 : vector<128x256xf32>
    %cst_12 = arith.constant 0.000000e+00 : f32
    %18 = vector.broadcast %cst_12 : f32 to vector<128x256xf32>
    %19 = arith.cmpf ogt, %17, %18 : vector<128x256xf32>
    %cst_13 = arith.constant 2.000000e-01 : f32
    %20 = vector.broadcast %cst_13 : f32 to vector<128x256xf32>
    %21 = arith.mulf %20, %17 : vector<128x256xf32>
    %22 = arith.select %19, %17, %21 : vector<128x256xi1>, vector<128x256xf32>
    %c0_14 = arith.constant 0 : index
    %c0_15 = arith.constant 0 : index
    %23 = vector.load %arg6[%c0_14, %c0_15] : memref<1x256xbf16, #tpu.memory_space<vmem>>, vector<1x256xbf16>
    %24 = arith.extf %23 : vector<1x256xbf16> to vector<1x256xf32>
    %25 = vector.broadcast %24 : vector<1x256xf32> to vector<128x256xf32>
    %26 = arith.mulf %22, %25 : vector<128x256xf32>
    %cst_16 = arith.constant dense<0.000000e+00> : vector<128xf32>
    %27 = vector.multi_reduction <add>, %26, %cst_16 [1] : vector<128x256xf32> to vector<128xf32>
    %28 = vector.shape_cast %27 : vector<128xf32> to vector<128x1xf32>
    %c0_17 = arith.constant 0 : index
    %c0_18 = arith.constant 0 : index
    %29 = vector.load %arg7[%c0_17, %c0_18] : memref<1x1xf32, #tpu.memory_space<vmem>>, vector<1x1xf32>
    %30 = vector.broadcast %29 : vector<1x1xf32> to vector<128x1xf32>
    %31 = arith.addf %28, %30 : vector<128x1xf32>
    %32 = arith.negf %31 : vector<128x1xf32>
    %33 = math.exp %32 : vector<128x1xf32>
    %cst_19 = arith.constant 1.000000e+00 : f32
    %34 = vector.broadcast %cst_19 : f32 to vector<128x1xf32>
    %35 = arith.addf %34, %33 : vector<128x1xf32>
    %36 = arith.divf %34, %35 : vector<128x1xf32>
    %c0_20 = arith.constant 0 : index
    %c0_21 = arith.constant 0 : index
    %37 = vector.load %arg8[%c0_20, %c0_21] : memref<128x1xf32, #tpu.memory_space<vmem>>, vector<128x1xf32>
    tpu.vector_store %arg8[%c0_20, %c0_21], %36 {strides = array<i32>} : memref<128x1xf32, #tpu.memory_space<vmem>>, vector<128x1xf32>,
    return
  }
  func.func @transform_0(%arg0: i32) -> (i32, i32) {
    %c0_i32 = arith.constant 0 : i32
    %c0_i32_0 = arith.constant 0 : i32
    return %arg0, %c0_i32 : i32, i32
  }
  func.func @transform_1(%arg0: i32) -> (i32, i32) {
    %c0_i32 = arith.constant 0 : i32
    %c0_i32_0 = arith.constant 0 : i32
    %c0_i32_1 = arith.constant 0 : i32
    return %c0_i32, %c0_i32_0 : i32, i32
  }
  func.func @transform_2(%arg0: i32) -> (i32, i32) {
    %c0_i32 = arith.constant 0 : i32
    %c0_i32_0 = arith.constant 0 : i32
    %c0_i32_1 = arith.constant 0 : i32
    return %c0_i32, %c0_i32_0 : i32, i32
  }
  func.func @transform_3(%arg0: i32) -> (i32, i32) {
    %c0_i32 = arith.constant 0 : i32
    %c0_i32_0 = arith.constant 0 : i32
    %c0_i32_1 = arith.constant 0 : i32
    return %c0_i32, %c0_i32_0 : i32, i32
  }
  func.func @transform_4(%arg0: i32) -> (i32, i32) {
    %c0_i32 = arith.constant 0 : i32
    %c0_i32_0 = arith.constant 0 : i32
    %c0_i32_1 = arith.constant 0 : i32
    return %c0_i32, %c0_i32_0 : i32, i32
  }
  func.func @transform_5(%arg0: i32) -> (i32, i32) {
    %c0_i32 = arith.constant 0 : i32
    %c0_i32_0 = arith.constant 0 : i32
    %c0_i32_1 = arith.constant 0 : i32
    return %c0_i32, %c0_i32_0 : i32, i32
  }
  func.func @transform_6(%arg0: i32) -> (i32, i32) {
    %c0_i32 = arith.constant 0 : i32
    %c0_i32_0 = arith.constant 0 : i32
    %c0_i32_1 = arith.constant 0 : i32
    return %c0_i32, %c0_i32_0 : i32, i32
  }
  func.func @transform_7(%arg0: i32) -> (i32, i32) {
    %c0_i32 = arith.constant 0 : i32
    %c0_i32_0 = arith.constant 0 : i32
    return %arg0, %c0_i32 : i32, i32
  }
}

</mosaic_0001>

<bundles_post_ra>
// kernel: discriminator_forward.1
= control target key start
LH: loop header
LB: loop body
LE: loop exit
PB: predicated region body
PF: predicated region fallthrough
CT: control target
= control target key end

     0   :  { %s5866_s0 = inlined_call_operand.vmem [shape: f32[128,896], index: 0, kind: input, shape index: {}]   ;;  %s5867_s1 = inlined_call_operand.hbm [shape: bf16[896,512], index: 1, kind: input, shape index: {}]   ;;  %s5868_s2 = inlined_call_operand.vmem [shape: f32[1,512], index: 2, kind: input, shape index: {}]   ;;  %s5869_s3 = inlined_call_operand.vmem [shape: bf16[512,256], index: 3, kind: input, shape index: {}]   ;;  %s5870_s4 = inlined_call_operand.vmem [shape: f32[1,256], index: 4, kind: input, shape index: {}]   ;;  %s5871_s5 = inlined_call_operand.vmem [shape: bf16[1,256], index: 5, kind: input, shape index: {}]   ;;  %s5872_s6 = inlined_call_operand.<no memory space> [shape: f32[1,1], index: 6, kind: input, shape index: {}]   ;;  %s5873_s7 = inlined_call_operand.vmem [shape: f32[128,1], index: 7, kind: output, shape index: {}]  }
   0x1   :  { %v12_v0 = vstv %s5872_s6 }
   0x2   :  { %13 = vst [vmem:[#allocation2] sm:$0x1] %v12_v0 }
   0x3   :  { %14 = vsyncpa [#allocation4], 0  ;;  %s4493_s26 = smov [#allocation3]  }
   0x4   :  { %s22_s27 = sshll.u32 %s4493_s26, 4  ;;  %s23_s27 = int_to_ptr.vmem [resolvable:$true] %s22_s27 }
   0x5   :  { %s4479_s28 = scalar_lea.vmem %s23_s27, 28672  ;;  %p4484_p1 = scmp.lt.s32.totalorder %s23_s27, %s23_s27 }
   0x6   :  { %p4480_p0 = scmp.ne.s32.totalorder %s23_s27, %s4479_s28  ;;  %p4485_p2 = scmp.lt.s32.totalorder %s4479_s28, %s4479_s28 }
   0x8   :  { %p4486_p3 = por %p4485_p2, %p4484_p1 }
   0xa   :  { %p4487_p4 = pnand %p4486_p3, %p4480_p0 }
   0xc   :  { %4490 = shalt.err (!%p4487_p4)
}
   0xd   :  { %s4494_s29 = smov 256   ;;  %s4495_s30 = smov 16  }
   0xe   :  { %28 = dma.hbm_to_vmem [thread:$0]  %s5867_s1, 28672, %s23_s27, [#allocation4], %s4494_s29, %s4494_s29, %s4495_s30  }
   0xf   :  { %4491 = dma.done.wait [#allocation4], 28672  }
  0x10   :  { %4492 = vsyncadd [#allocation4], 4294938624  ;;  %v3974_v1 = vld [vmem:[#allocation3 + $0xe4] ss:$16 sps:$4 sm:$0xff]   ;;  %v3978_v3 = vld [vmem:[#allocation3 + $0xe0] ss:$16 sps:$4 sm:$0xff]  }
  0x11   :  { %v3976_v2 = vld [vmem:[#allocation3 + $0x2e4] ss:$16 sps:$4 sm:$0xff]   ;;  %1577 = vmatprep.subr.bf16.mxu0 %v3974_v1  ;;  %v3979_v4 = vld [vmem:[#allocation3 + $0x2e0] ss:$16 sps:$4 sm:$0xff]  }
  0x12   :  { %1690 = vmatprep.subr.bf16.mxu1 %v3976_v2  ;;  %v3980_v5 = vld [vmem:[#allocation3 + $0xc4] ss:$16 sps:$4 sm:$0xff]   ;;  %1578 = vmatpush1.bf16.msra.mxu0 %v3978_v3  ;;  %v3984_v7 = vld [vmem:[#allocation3 + $0xc0] ss:$16 sps:$4 sm:$0xff]  }
  0x13   :  { %1691 = vmatpush1.bf16.msra.mxu1 %v3979_v4  ;;  %v3982_v6 = vld [vmem:[#allocation3 + $0x2c4] ss:$16 sps:$4 sm:$0xff]   ;;  %1579 = vmatprep.subr.bf16.mxu0 %v3980_v5  ;;  %v3985_v8 = vld [vmem:[#allocation3 + $0x2c0] ss:$16 sps:$4 sm:$0xff]  }
  0x14   :  { %1692 = vmatprep.subr.bf16.mxu1 %v3982_v6  ;;  %v3986_v9 = vld [vmem:[#allocation3 + $0xa4] ss:$16 sps:$4 sm:$0xff]   ;;  %v3990_v11 = vld [vmem:[#allocation3 + $0xa0] ss:$16 sps:$4 sm:$0xff]  }
  0x15   :  { %v3988_v10 = vld [vmem:[#allocation3 + $0x2a4] ss:$16 sps:$4 sm:$0xff]   ;;  %v3991_v12 = vld [vmem:[#allocation3 + $0x2a0] ss:$16 sps:$4 sm:$0xff]  }
  0x16   :  { %1580 = vmatpush1.bf16.msra.mxu0 %v3984_v7  ;;  %v3992_v13 = vld [vmem:[#allocation3 + $0x84] ss:$16 sps:$4 sm:$0xff]   ;;  %v3996_v15 = vld [vmem:[#allocation3 + $0x80] ss:$16 sps:$4 sm:$0xff]  }
  0x17   :  { %1693 = vmatpush1.bf16.msra.mxu1 %v3985_v8  ;;  %1581 = vmatprep.subr.bf16.mxu0 %v3986_v9  ;;  %v3994_v14 = vld [vmem:[#allocation3 + $0x284] ss:$16 sps:$4 sm:$0xff]   ;;  %v3997_v16 = vld [vmem:[#allocation3 + $0x280] ss:$16 sps:$4 sm:$0xff]  }
  0x18   :  { %1694 = vmatprep.subr.bf16.mxu1 %v3988_v10  ;;  %v3998_v17 = vld [vmem:[#allocation3 + $0x64] ss:$16 sps:$4 sm:$0xff]   ;;  %v4002_v19 = vld [vmem:[#allocation3 + $0x60] ss:$16 sps:$4 sm:$0xff]  }
  0x19   :  { %v4000_v18 = vld [vmem:[#allocation3 + $0x264] ss:$16 sps:$4 sm:$0xff]   ;;  %v4003_v20 = vld [vmem:[#allocation3 + $0x260] ss:$16 sps:$4 sm:$0xff]  }
  0x1a   :  { %1582 = vmatpush1.bf16.msra.mxu0 %v3990_v11  ;;  %v4004_v21 = vld [vmem:[#allocation3 + $0x44] ss:$16 sps:$4 sm:$0xff]   ;;  %v4008_v23 = vld [vmem:[#allocation3 + $0x40] ss:$16 sps:$4 sm:$0xff]  }
  0x1b   :  { %1695 = vmatpush1.bf16.msra.mxu1 %v3991_v12  ;;  %1583 = vmatprep.subr.bf16.mxu0 %v3992_v13  ;;  %v4006_v22 = vld [vmem:[#allocation3 + $0x244] ss:$16 sps:$4 sm:$0xff]   ;;  %v4009_v24 = vld [vmem:[#allocation3 + $0x240] ss:$16 sps:$4 sm:$0xff]  }
  0x1c   :  { %1696 = vmatprep.subr.bf16.mxu1 %v3994_v14  ;;  %v4010_v25 = vld [vmem:[#allocation3 + $0x24] ss:$16 sps:$4 sm:$0xff]   ;;  %v4014_v27 = vld [vmem:[#allocation3 + $0x20] ss:$16 sps:$4 sm:$0xff]  }
  0x1d   :  { %v4012_v26 = vld [vmem:[#allocation3 + $0x224] ss:$16 sps:$4 sm:$0xff]   ;;  %v4015_v28 = vld [vmem:[#allocation3 + $0x220] ss:$16 sps:$4 sm:$0xff]  }
  0x1e   :  { %1584 = vmatpush1.bf16.msra.mxu0 %v3996_v15  ;;  %v4016_v29 = vld [vmem:[#allocation3 + $0x4] ss:$16 sps:$4 sm:$0xff]   ;;  %v4020_v31 = vld [vmem:[#allocation3] ss:$16 sps:$4 sm:$0xff]  }
  0x1f   :  { %1697 = vmatpush1.bf16.msra.mxu1 %v3997_v16  ;;  %1585 = vmatprep.subr.bf16.mxu0 %v3998_v17  ;;  %v4018_v30 = vld [vmem:[#allocation3 + $0x204] ss:$16 sps:$4 sm:$0xff]   ;;  %v4021_v32 = vld [vmem:[#allocation3 + $0x200] ss:$16 sps:$4 sm:$0xff]  }
  0x20   :  { %1698 = vmatprep.subr.bf16.mxu1 %v4000_v18  ;;  %v4022_v33 = vld [vmem:[#allocation3 + $0x1e4] ss:$16 sps:$4 sm:$0xff]   ;;  %v4026_v35 = vld [vmem:[#allocation3 + $0x1e0] ss:$16 sps:$4 sm:$0xff]  }
  0x21   :  { %v4024_v34 = vld [vmem:[#allocation3 + $0x3e4] ss:$16 sps:$4 sm:$0xff]   ;;  %v4027_v36 = vld [vmem:[#allocation3 + $0x3e0] ss:$16 sps:$4 sm:$0xff]  }
  0x22   :  { %1586 = vmatpush1.bf16.msra.mxu0 %v4002_v19  ;;  %v4028_v37 = vld [vmem:[#allocation3 + $0x1c4] ss:$16 sps:$4 sm:$0xff]   ;;  %v4032_v39 = vld [vmem:[#allocation3 + $0x1c0] ss:$16 sps:$4 sm:$0xff]  }
  0x23   :  { %1699 = vmatpush1.bf16.msra.mxu1 %v4003_v20  ;;  %1587 = vmatprep.subr.bf16.mxu0 %v4004_v21  ;;  %v4030_v38 = vld [vmem:[#allocation3 + $0x3c4] ss:$16 sps:$4 sm:$0xff]   ;;  %v4033_v40 = vld [vmem:[#allocation3 + $0x3c0] ss:$16 sps:$4 sm:$0xff]  }
  0x24   :  { %1700 = vmatprep.subr.bf16.mxu1 %v4006_v22  ;;  %v4034_v41 = vld [vmem:[#allocation3 + $0x1a4] ss:$16 sps:$4 sm:$0xff]   ;;  %v4038_v43 = vld [vmem:[#allocation3 + $0x1a0] ss:$16 sps:$4 sm:$0xff]  }
  0x25   :  { %v4036_v42 = vld [vmem:[#allocation3 + $0x3a4] ss:$16 sps:$4 sm:$0xff]   ;;  %v4039_v44 = vld [vmem:[#allocation3 + $0x3a0] ss:$16 sps:$4 sm:$0xff]  }
  0x26   :  { %1588 = vmatpush1.bf16.msra.mxu0 %v4008_v23  ;;  %v4040_v45 = vld [vmem:[#allocation3 + $0x184] ss:$16 sps:$4 sm:$0xff]   ;;  %v4044_v51 = vld [vmem:[#allocation3 + $0x180] ss:$16 sps:$4 sm:$0xff]  }
  0x27   :  { %1701 = vmatpush1.bf16.msra.mxu1 %v4009_v24  ;;  %1589 = vmatprep.subr.bf16.mxu0 %v4010_v25  ;;  %v4042_v46 = vld [vmem:[#allocation3 + $0x384] ss:$16 sps:$4 sm:$0xff]   ;;  %v4045_v52 = vld [vmem:[#allocation3 + $0x380] ss:$16 sps:$4 sm:$0xff]  }
  0x28   :  { %1702 = vmatprep.subr.bf16.mxu1 %v4012_v26  ;;  %v44_v47 = vld [vmem:[%s5866_s0 + $0x8] sm:$0xff]  ;;  %v51_v48 = vld [vmem:[%s5866_s0 + $0x40] sm:$0xff]  ;;  %v46_v49 = vld [vmem:[%s5866_s0 + $0x18] sm:$0xff] }
  0x29   :  { %v53_v50 = vld [vmem:[%s5866_s0 + $0x50] sm:$0xff]  ;;  %v4555_v54 = vpack.c.bf16 %v51_v48, %v44_v47  ;;  %v43_v7 = vld [vmem:[%s5866_s0] sm:$0xff]  ;;  %v50_v8 = vld [vmem:[%s5866_s0 + $0x38] sm:$0xff] }
  0x2a   :  { %1590 = vmatpush1.bf16.msra.mxu0 %v4014_v27  ;;  %v4046_v53 = vld [vmem:[#allocation3 + $0x164] ss:$16 sps:$4 sm:$0xff]   ;;  %v4557_v55 = vpack.c.bf16 %v53_v50, %v46_v49  ;;  %v4050_v57 = vld [vmem:[#allocation3 + $0x160] ss:$16 sps:$4 sm:$0xff]   ;;  %v4579_v15 = vpack.c.bf16 %v50_v8, %v43_v7 }
  0x2b   :  { %1703 = vmatpush1.bf16.msra.mxu1 %v4015_v28  ;;  %1591 = vmatprep.subr.bf16.mxu0 %v4016_v29  ;;  %v4048_v56 = vld [vmem:[#allocation3 + $0x364] ss:$16 sps:$4 sm:$0xff]   ;;  %v4051_v58 = vld [vmem:[#allocation3 + $0x360] ss:$16 sps:$4 sm:$0xff]  }
  0x2c   :  { %1704 = vmatprep.subr.bf16.mxu1 %v4018_v30  ;;  %1609 = vmatprep.mubr.bf16.mxu0 %v4555_v54  ;;  %v4052_v59 = vld [vmem:[#allocation3 + $0x144] ss:$16 sps:$4 sm:$0xff]   ;;  %v4056_v61 = vld [vmem:[#allocation3 + $0x140] ss:$16 sps:$4 sm:$0xff]  }
  0x2d   :  { %1722 = vmatprep.mubr.bf16.mxu1 %v4557_v55  ;;  %v4054_v60 = vld [vmem:[#allocation3 + $0x344] ss:$16 sps:$4 sm:$0xff]   ;;  %v4057_v62 = vld [vmem:[#allocation3 + $0x340] ss:$16 sps:$4 sm:$0xff]  }
  0x2e   :  { %1592 = vmatpush1.bf16.msra.mxu0 %v4020_v31  ;;  %v4058_v63 = vld [vmem:[#allocation3 + $0x124] ss:$16 sps:$4 sm:$0xff]   ;;  %v4062_v1 = vld [vmem:[#allocation3 + $0x120] ss:$16 sps:$4 sm:$0xff]  }
  0x2f   :  { %1705 = vmatpush1.bf16.msra.mxu1 %v4021_v32  ;;  %1593 = vmatprep.subr.bf16.mxu0 %v4022_v33  ;;  %v4060_v0 = vld [vmem:[#allocation3 + $0x324] ss:$16 sps:$4 sm:$0xff]   ;;  %v4063_v2 = vld [vmem:[#allocation3 + $0x320] ss:$16 sps:$4 sm:$0xff]  }
  0x30   :  { %1706 = vmatprep.subr.bf16.mxu1 %v4024_v34  ;;  %v4064_v3 = vld [vmem:[#allocation3 + $0x104] ss:$16 sps:$4 sm:$0xff]   ;;  %v4068_v5 = vld [vmem:[#allocation3 + $0x100] ss:$16 sps:$4 sm:$0xff]  }
  0x31   :  { %v4066_v4 = vld [vmem:[#allocation3 + $0x304] ss:$16 sps:$4 sm:$0xff]   ;;  %v4069_v6 = vld [vmem:[#allocation3 + $0x300] ss:$16 sps:$4 sm:$0xff]  }
  0x32   :  { %1594 = vmatpush2.bf16.msra.mxu0 %v4026_v35  ;;  %v45_v9 = vld [vmem:[%s5866_s0 + $0x10] sm:$0xff]  ;;  %v52_v10 = vld [vmem:[%s5866_s0 + $0x48] sm:$0xff]  ;;  %v58_v13 = vld [vmem:[%s5866_s0 + $0x78] sm:$0xff] }
  0x33   :  { %1707 = vmatpush2.bf16.msra.mxu1 %v4027_v36  ;;  %1595 = vmatprep.subr.bf16.mxu0 %v4028_v37  ;;  %v4072_v11 = vld [vmem:[#allocation3 + $0x4e4] ss:$16 sps:$4 sm:$0xff]   ;;  %v4581_v16 = vpack.c.bf16 %v52_v10, %v45_v9  ;;  %v4070_v19 = vld [vmem:[#allocation3 + $0x4e0] ss:$16 sps:$4 sm:$0xff]  }
  0x34   :  { %1708 = vmatprep.subr.bf16.mxu1 %v4030_v38  ;;  %v4075_v12 = vld [vmem:[#allocation3 + $0x6e4] ss:$16 sps:$4 sm:$0xff]   ;;  %v4073_v20 = vld [vmem:[#allocation3 + $0x6e0] ss:$16 sps:$4 sm:$0xff]  }
  0x35   :  { %v65_v14 = vld [vmem:[%s5866_s0 + $0xb0] sm:$0xff]  ;;  %v60_v17 = vld [vmem:[%s5866_s0 + $0x88] sm:$0xff]  ;;  %v67_v18 = vld [vmem:[%s5866_s0 + $0xc0] sm:$0xff] }
  0x36   :  { %1596 = vmatpush2.bf16.msra.mxu0 %v4032_v39  ;;  %v4078_v21 = vld [vmem:[#allocation3 + $0x4c4] ss:$16 sps:$4 sm:$0xff]   ;;  %v4589_v22 = vpack.c.bf16 %v65_v14, %v58_v13  ;;  %v4076_v23 = vld [vmem:[#allocation3 + $0x4c0] ss:$16 sps:$4 sm:$0xff]   ;;  %v4591_v24 = vpack.c.bf16 %v67_v18, %v60_v17 }
  0x37   :  { %1709 = vmatpush2.bf16.msra.mxu1 %v4033_v40  ;;  %1597 = vmatprep.subr.bf16.mxu0 %v4034_v41  ;;  %v57_v25 = vld [vmem:[%s5866_s0 + $0x70] sm:$0xff]  ;;  %v64_v26 = vld [vmem:[%s5866_s0 + $0xa8] sm:$0xff]  ;;  %v59_v27 = vld [vmem:[%s5866_s0 + $0x80] sm:$0xff] }
  0x38   :  { %1710 = vmatprep.subr.bf16.mxu1 %v4036_v42  ;;  %v4084_v28 = vld [vmem:[#allocation3 + $0x6c4] ss:$16 sps:$4 sm:$0xff]   ;;  %v4082_v31 = vld [vmem:[#allocation3 + $0x6c0] ss:$16 sps:$4 sm:$0xff]   ;;  %v4621_v37 = vpack.c.bf16 %v64_v26, %v57_v25 }
  0x39   :  { %v66_v29 = vld [vmem:[%s5866_s0 + $0xb8] sm:$0xff]  ;;  %v72_v32 = vld [vmem:[%s5866_s0 + $0xe8] sm:$0xff]  ;;  %v79_v33 = vld [vmem:[%s5866_s0 + $0x120] sm:$0xff] }
  0x3a   :  { %1598 = vmatpush2.bf16.msra.mxu0 %v4038_v43  ;;  %v4081_v30 = vld [vmem:[#allocation3 + $0x4a4] ss:$16 sps:$4 sm:$0xff]   ;;  %v4623_v38 = vpack.c.bf16 %v66_v29, %v59_v27  ;;  %v4079_v39 = vld [vmem:[#allocation3 + $0x4a0] ss:$16 sps:$4 sm:$0xff]   ;;  %v4625_v40 = vpack.c.bf16 %v79_v33, %v72_v32 }
  0x3b   :  { %1711 = vmatpush2.bf16.msra.mxu1 %v4039_v44  ;;  %1599 = vmatprep.subr.bf16.mxu0 %v4040_v45  ;;  %v4093_v34 = vld [vmem:[#allocation3 + $0x6a4] ss:$16 sps:$4 sm:$0xff]   ;;  %v4085_v43 = vld [vmem:[#allocation3 + $0x480] ss:$16 sps:$4 sm:$0xff]  }
  0x3c   :  { %1712 = vmatprep.subr.bf16.mxu1 %v4042_v46  ;;  %v74_v35 = vld [vmem:[%s5866_s0 + $0xf8] sm:$0xff]  ;;  %v81_v36 = vld [vmem:[%s5866_s0 + $0x130] sm:$0xff]  ;;  %v71_v44 = vld [vmem:[%s5866_s0 + $0xe0] sm:$0xff] }
  0x3d   :  { %v4087_v41 = vld [vmem:[#allocation3 + $0x484] ss:$16 sps:$4 sm:$0xff]   ;;  %v4627_v42 = vpack.c.bf16 %v81_v36, %v74_v35  ;;  %v4091_v45 = vld [vmem:[#allocation3 + $0x6a0] ss:$16 sps:$4 sm:$0xff]  }
  0x3e   :  { %1600 = vmatpush2.bf16.msra.mxu0 %v4044_v51  ;;  %v78_v46 = vld [vmem:[%s5866_s0 + $0x118] sm:$0xff]  ;;  %v73_v48 = vld [vmem:[%s5866_s0 + $0xf0] sm:$0xff]  ;;  %v80_v49 = vld [vmem:[%s5866_s0 + $0x128] sm:$0xff] }
  0x3f   :  { %1713 = vmatpush2.bf16.msra.mxu1 %v4045_v52  ;;  %1601 = vmatprep.subr.bf16.mxu0 %v4046_v53  ;;  %v4102_v47 = vld [vmem:[#allocation3 + $0x684] ss:$16 sps:$4 sm:$0xff]   ;;  %v4097_v17 = vld [vmem:[#allocation3 + $0x420] ss:$16 sps:$4 sm:$0xff]  }
  0x40   :  { %1714 = vmatprep.subr.bf16.mxu1 %v4048_v56  ;;  %v4090_v50 = vld [vmem:[#allocation3 + $0x464] ss:$16 sps:$4 sm:$0xff]   ;;  %v4127_v35 = vld [vmem:[#allocation3 + $0x620] ss:$16 sps:$4 sm:$0xff]  }
  0x41   :  { %v86_v51 = vld [vmem:[%s5866_s0 + $0x158] sm:$0xff]  ;;  %v93_v52 = vld [vmem:[%s5866_s0 + $0x190] sm:$0xff]  ;;  %v88_v53 = vld [vmem:[%s5866_s0 + $0x168] sm:$0xff] }
  0x42   :  { %1602 = vmatpush2.bf16.msra.mxu0 %v4050_v57  ;;  %v95_v56 = vld [vmem:[%s5866_s0 + $0x1a0] sm:$0xff]  ;;  %v100_v8 = vld [vmem:[%s5866_s0 + $0x1c8] sm:$0xff]  ;;  %v106_v25 = vld [vmem:[%s5866_s0 + $0x1f8] sm:$0xff] }
  0x43   :  { %1715 = vmatpush2.bf16.msra.mxu1 %v4051_v58  ;;  %1603 = vmatprep.subr.bf16.mxu0 %v4052_v59  ;;  %v4100_v57 = vld [vmem:[#allocation3 + $0x680] ss:$16 sps:$4 sm:$0xff]   ;;  %v4657_v58 = vpack.c.bf16 %v78_v46, %v71_v44  ;;  %v4659_v59 = vpack.c.bf16 %v80_v49, %v73_v48  ;;  %v4099_v7 = vld [vmem:[#allocation3 + $0x424] ss:$16 sps:$4 sm:$0xff]  }
  0x44   :  { %1716 = vmatprep.subr.bf16.mxu1 %v4054_v60  ;;  %v4088_v60 = vld [vmem:[#allocation3 + $0x460] ss:$16 sps:$4 sm:$0xff]   ;;  %v4120_v9 = vld [vmem:[#allocation3 + $0x644] ss:$16 sps:$4 sm:$0xff]  }
  0x45   :  { %v107_v10 = vld [vmem:[%s5866_s0 + $0x200] sm:$0xff]  ;;  %v101_v26 = vld [vmem:[%s5866_s0 + $0x1d0] sm:$0xff]  ;;  %v108_v27 = vld [vmem:[%s5866_s0 + $0x208] sm:$0xff] }
  0x46   :  { %1604 = vmatpush2.bf16.msra.mxu0 %v4056_v61  ;;  %v4661_v61 = vpack.c.bf16 %v93_v52, %v86_v51  ;;  %v4697_v18 = vpack.c.bf16 %v107_v10, %v100_v8  ;;  %v4108_v29 = vld [vmem:[#allocation3 + $0x5e4] ss:$16 sps:$4 sm:$0xff]   ;;  %v4112_v46 = vld [vmem:[#allocation3 + $0x5c0] ss:$16 sps:$4 sm:$0xff]  }
  0x47   :  { %1717 = vmatpush2.bf16.msra.mxu1 %v4057_v62  ;;  %1605 = vmatprep.subr.bf16.mxu0 %v4058_v63  ;;  %v4096_v62 = vld [vmem:[#allocation3 + $0x444] ss:$16 sps:$4 sm:$0xff]   ;;  %v4663_v63 = vpack.c.bf16 %v95_v56, %v88_v53  ;;  %v4136_v53 = vld [vmem:[#allocation3 + $0x600] ss:$16 sps:$4 sm:$0xff]  }
  0x48   :  { %1718 = vmatprep.subr.bf16.mxu1 %v4060_v0  ;;  %v4094_v0 = vld [vmem:[#allocation3 + $0x440] ss:$16 sps:$4 sm:$0xff]   ;;  %v116_v33 = vld [vmem:[%s5866_s0 + $0x248] sm:$0xff] }
  0x49   :  { %v121_v32 = vld [vmem:[%s5866_s0 + $0x270] sm:$0xff]  ;;  %v120_v48 = vld [vmem:[%s5866_s0 + $0x268] sm:$0xff]  ;;  %v115_v49 = vld [vmem:[%s5866_s0 + $0x240] sm:$0xff] }
  0x4a   :  { %1606 = vmatpush2.bf16.msra.mxu0 %v4062_v1  ;;  %v85_v1 = vld [vmem:[%s5866_s0 + $0x150] sm:$0xff]  ;;  %v128_v56 = vld [vmem:[%s5866_s0 + $0x2a8] sm:$0xff]  ;;  %v127_v8 = vld [vmem:[%s5866_s0 + $0x2a0] sm:$0xff] }
  0x4b   :  { %1719 = vmatpush2.bf16.msra.mxu1 %v4063_v2  ;;  %1607 = vmatprep.subr.bf16.mxu0 %v4064_v3  ;;  %v92_v2 = vld [vmem:[%s5866_s0 + $0x188] sm:$0xff]  ;;  %v129_v10 = vld [vmem:[%s5866_s0 + $0x2b0] sm:$0xff] }
  0x4c   :  { %1720 = vmatprep.subr.bf16.mxu1 %v4066_v4  ;;  %v4111_v3 = vld [vmem:[#allocation3 + $0x664] ss:$16 sps:$4 sm:$0xff]   ;;  %v4693_v13 = vpack.c.bf16 %v92_v2, %v85_v1 }
  0x4d   :  { %v87_v4 = vld [vmem:[%s5866_s0 + $0x160] sm:$0xff] }
  0x4e   :  { %1608 = vmatpush2.bf16.msra.mxu0 %v4068_v5  ;;  %v94_v5 = vld [vmem:[%s5866_s0 + $0x198] sm:$0xff] }
  0x4f   :  { %1721 = vmatpush2.bf16.msra.mxu1 %v4069_v6  ;;  %1803 = vmatprep.subr.bf16.mxu0 %v4072_v11  ;;  %v4109_v6 = vld [vmem:[#allocation3 + $0x660] ss:$16 sps:$4 sm:$0xff]   ;;  %v102_v11 = vld [vmem:[%s5866_s0 + $0x1d8] sm:$0xff]  ;;  %v4695_v14 = vpack.c.bf16 %v94_v5, %v87_v4 }
  0x50   :  { %1916 = vmatprep.subr.bf16.mxu1 %v4075_v12  ;;  %v109_v12 = vld [vmem:[%s5866_s0 + $0x210] sm:$0xff] }
  0x51   :  { %1610 = vmatmul.mubr.bf16.vlgmr.msra.gmra.mxu0 %v4579_v15  ;;  %v4114_v44 = vld [vmem:[#allocation3 + $0x5c4] ss:$16 sps:$4 sm:$0xff]  }
  0x52   :  { %1723 = vmatmul.mubr.bf16.vlgmr.msra.gmra.mxu1 %v4581_v16  ;;  %1804 = vmatpush1.bf16.msra.mxu0 %v4070_v19  ;;  %v4105_v19 = vld [vmem:[#allocation3 + $0x404] ss:$16 sps:$4 sm:$0xff]  }
  0x53   :  { %1917 = vmatpush1.bf16.msra.mxu1 %v4073_v20  ;;  %1805 = vmatprep.subr.bf16.mxu0 %v4078_v21  ;;  %v4699_v20 = vpack.c.bf16 %v109_v12, %v102_v11  ;;  %v4103_v21 = vld [vmem:[#allocation3 + $0x400] ss:$16 sps:$4 sm:$0xff]   ;;  %v4138_v51 = vld [vmem:[#allocation3 + $0x604] ss:$16 sps:$4 sm:$0xff]  }
  0x54   :  { %1619 = vmatprep.mubr.bf16.mxu0 %v4589_v22  ;;  %1732 = vmatprep.mubr.bf16.mxu1 %v4591_v24  ;;  %v4117_v52 = vld [vmem:[#allocation3 + $0x5a4] ss:$16 sps:$4 sm:$0xff]  }
  0x55   :  { %1918 = vmatprep.subr.bf16.mxu1 %v4084_v28  ;;  %v4118_v28 = vld [vmem:[#allocation3 + $0x640] ss:$16 sps:$4 sm:$0xff]   ;;  %v4123_v5 = vld [vmem:[#allocation3 + $0x584] ss:$16 sps:$4 sm:$0xff]  }
  0x56   :  { %1806 = vmatpush1.bf16.msra.mxu0 %v4076_v23  ;;  %v99_v23 = vld [vmem:[%s5866_s0 + $0x1c0] sm:$0xff]  ;;  %v136_v11 = vld [vmem:[%s5866_s0 + $0x2e8] sm:$0xff] }
  0x57   :  { %1919 = vmatpush1.bf16.msra.mxu1 %v4082_v31  ;;  %1807 = vmatprep.subr.bf16.mxu0 %v4081_v30  ;;  %v114_v30 = vld [vmem:[%s5866_s0 + $0x238] sm:$0xff]  ;;  %v4729_v36 = vpack.c.bf16 %v106_v25, %v99_v23  ;;  %v151_v23 = vld [vmem:[%s5866_s0 + $0x360] sm:$0xff] }
  0x58   :  { %1920 = vmatprep.subr.bf16.mxu1 %v4093_v34  ;;  %v4129_v31 = vld [vmem:[#allocation3 + $0x624] ss:$16 sps:$4 sm:$0xff]  }
  0x59   :  { %1620 = vmatmul.mubr.bf16.gmra.mxu0 %v4621_v37  ;;  %v123_v34 = vld [vmem:[%s5866_s0 + $0x280] sm:$0xff] }
  0x5a   :  { %1733 = vmatmul.mubr.bf16.gmra.mxu1 %v4623_v38  ;;  %1808 = vmatpush1.bf16.msra.mxu0 %v4079_v39  ;;  %v4731_v39 = vpack.c.bf16 %v108_v27, %v101_v26  ;;  %v4126_v12 = vld [vmem:[#allocation3 + $0x564] ss:$16 sps:$4 sm:$0xff]   ;;  %v4803_v26 = vpack.c.bf16 %v136_v11, %v129_v10  ;;  %v4124_v27 = vld [vmem:[#allocation3 + $0x560] ss:$16 sps:$4 sm:$0xff]   ;;  %v4145_v10 = vld [vmem:[#allocation3 + $0x2e8] ss:$16 sps:$4 sm:$0xff]  }
  0x5b   :  { %1629 = vmatprep.mubr.bf16.mxu0 %v4625_v40  ;;  %1809 = vmatprep.subr.bf16.mxu0 %v4087_v41  ;;  %v4106_v41 = vld [vmem:[#allocation3 + $0x5e0] ss:$16 sps:$4 sm:$0xff]   ;;  %v4150_v11 = vld [vmem:[#allocation3 + $0xcc] ss:$16 sps:$4 sm:$0xff]  }
  0x5c   :  { %1742 = vmatprep.mubr.bf16.mxu1 %v4627_v42  ;;  %1921 = vmatpush1.bf16.msra.mxu1 %v4091_v45  ;;  %v4735_v45 = vpack.c.bf16 %v123_v34, %v116_v33  ;;  %v148_v33 = vld [vmem:[%s5866_s0 + $0x348] sm:$0xff]  ;;  %v143_v34 = vld [vmem:[%s5866_s0 + $0x320] sm:$0xff] }
  0x5d   :  { %1922 = vmatprep.subr.bf16.mxu1 %v4102_v47  ;;  %v113_v47 = vld [vmem:[%s5866_s0 + $0x230] sm:$0xff] }
  0x5e   :  { %1810 = vmatpush1.bf16.msra.mxu0 %v4085_v43  ;;  %v4733_v43 = vpack.c.bf16 %v121_v32, %v114_v30  ;;  %v4765_v1 = vpack.c.bf16 %v120_v48, %v113_v47  ;;  %v141_v32 = vld [vmem:[%s5866_s0 + $0x310] sm:$0xff] }
  0x5f   :  { %1811 = vmatprep.subr.bf16.mxu0 %v4090_v50  ;;  %v122_v50 = vld [vmem:[%s5866_s0 + $0x278] sm:$0xff]  ;;  %v4831_v47 = vpack.c.bf16 %v148_v33, %v141_v32 }
  0x60   :  { %1923 = vmatpush1.bf16.msra.mxu1 %v4100_v57  ;;  %v4147_v57 = vld [vmem:[#allocation3 + $0x2ec] ss:$16 sps:$4 sm:$0xff]   ;;  %v4767_v2 = vpack.c.bf16 %v122_v50, %v115_v49  ;;  %v4133_v49 = vld [vmem:[#allocation3 + $0x520] ss:$16 sps:$4 sm:$0xff]  }
  0x61   :  { %1630 = vmatmul.mubr.bf16.gmra.mxu0 %v4657_v58  ;;  %1924 = vmatprep.subr.bf16.mxu1 %v4111_v3  ;;  %v4115_v3 = vld [vmem:[#allocation3 + $0x5a0] ss:$16 sps:$4 sm:$0xff]   ;;  %v4156_v32 = vld [vmem:[#allocation3 + $0xac] ss:$16 sps:$4 sm:$0xff]  }
  0x62   :  { %1743 = vmatmul.mubr.bf16.gmra.mxu1 %v4659_v59  ;;  %1812 = vmatpush1.bf16.msra.mxu0 %v4088_v60  ;;  %v135_v60 = vld [vmem:[%s5866_s0 + $0x2e0] sm:$0xff] }
  0x63   :  { %1639 = vmatprep.mubr.bf16.mxu0 %v4661_v61  ;;  %1813 = vmatprep.subr.bf16.mxu0 %v4096_v62  ;;  %v130_v62 = vld [vmem:[%s5866_s0 + $0x2b8] sm:$0xff]  ;;  %v4769_v4 = vpack.c.bf16 %v135_v60, %v128_v56  ;;  %v56_v60 = vld [vmem:[%s5866_s0 + $0x68] sm:$0xff] }
  0x64   :  { %1752 = vmatprep.mubr.bf16.mxu1 %v4663_v63  ;;  %1925 = vmatpush1.bf16.msra.mxu1 %v4109_v6  ;;  %v54_v56 = vld [vmem:[%s5866_s0 + $0x58] sm:$0xff] }
  0x65   :  { %1926 = vmatprep.subr.bf16.mxu1 %v4120_v9  ;;  %v134_v9 = vld [vmem:[%s5866_s0 + $0x2d8] sm:$0xff] }
  0x66   :  { %1814 = vmatpush1.bf16.msra.mxu0 %v4094_v0  ;;  %v137_v0 = vld [vmem:[%s5866_s0 + $0x2f0] sm:$0xff]  ;;  %v4801_v25 = vpack.c.bf16 %v134_v9, %v127_v8  ;;  %v4142_v9 = vld [vmem:[#allocation3 + $0xe8] ss:$16 sps:$4 sm:$0xff]  }
  0x67   :  { %1815 = vmatprep.subr.bf16.mxu0 %v4099_v7  ;;  %v4771_v6 = vpack.c.bf16 %v137_v0, %v130_v62  ;;  %v4121_v7 = vld [vmem:[#allocation3 + $0x580] ss:$16 sps:$4 sm:$0xff]   ;;  %v5876_v62 = vmov 0   ;;  %v4144_v0 = vld [vmem:[#allocation3 + $0xec] ss:$16 sps:$4 sm:$0xff]  }
  0x68   :  { %1927 = vmatpush1.bf16.msra.mxu1 %v4118_v28  ;;  %v69_v8 = vld [vmem:[%s5866_s0 + $0xd0] sm:$0xff] }
  0x69   :  { %1640 = vmatmul.mubr.bf16.gmra.mxu0 %v4693_v13  ;;  %1928 = vmatprep.subr.bf16.mxu1 %v4129_v31  ;;  %v4130_v31 = vld [vmem:[#allocation3 + $0x540] ss:$16 sps:$4 sm:$0xff]   ;;  %v4159_v33 = vld [vmem:[#allocation3 + $0x2ac] ss:$16 sps:$4 sm:$0xff]  }
  0x6a   :  { %1753 = vmatmul.mubr.bf16.gmra.mxu1 %v4695_v14  ;;  %1816 = vmatpush1.bf16.msra.mxu0 %v4097_v17  ;;  %v142_v17 = vld [vmem:[%s5866_s0 + $0x318] sm:$0xff] }
  0x6b   :  { %1649 = vmatprep.mubr.bf16.mxu0 %v4697_v18  ;;  %1817 = vmatprep.subr.bf16.mxu0 %v4105_v19  ;;  %v149_v19 = vld [vmem:[%s5866_s0 + $0x350] sm:$0xff] }
  0x6c   :  { %1762 = vmatprep.mubr.bf16.mxu1 %v4699_v20  ;;  %1929 = vmatpush1.bf16.msra.mxu1 %v4127_v35  ;;  %v4805_v28 = vpack.c.bf16 %v149_v19, %v142_v17  ;;  %v150_v35 = vld [vmem:[%s5866_s0 + $0x358] sm:$0xff] }
  0x6d   :  { %1930 = vmatprep.subr.bf16.mxu1 %v4138_v51  ;;  %v4833_v48 = vpack.c.bf16 %v150_v35, %v143_v34  ;;  %v4141_v51 = vld [vmem:[#allocation3 + $0x504] ss:$16 sps:$4 sm:$0xff]   ;;  %v4148_v17 = vld [vmem:[#allocation3 + $0xc8] ss:$16 sps:$4 sm:$0xff]  }
  0x6e   :  { %1818 = vmatpush1.bf16.msra.mxu0 %v4103_v21  ;;  %v144_v21 = vld [vmem:[%s5866_s0 + $0x328] sm:$0xff] }
  0x6f   :  { %1819 = vmatprep.subr.bf16.mxu0 %v4108_v29  ;;  %v4132_v29 = vld [vmem:[#allocation3 + $0x544] ss:$16 sps:$4 sm:$0xff]   ;;  %v4807_v30 = vpack.c.bf16 %v151_v23, %v144_v21  ;;  %v4151_v19 = vld [vmem:[#allocation3 + $0x2c8] ss:$16 sps:$4 sm:$0xff]  }
  0x70   :  { %1931 = vmatpush1.bf16.msra.mxu1 %v4136_v53  ;;  %v47_v53 = vld [vmem:[%s5866_s0 + $0x20] sm:$0xff]  ;;  %v61_v23 = vld [vmem:[%s5866_s0 + $0x90] sm:$0xff]  ;;  %v4154_v34 = vld [vmem:[#allocation3 + $0xa8] ss:$16 sps:$4 sm:$0xff]  }
  0x71   :  { %1650 = vmatmul.mubr.bf16.gmra.mxu0 %v4729_v36  ;;  %2142 = vmatprep.subr.bf16.mxu1 %v4147_v57  ;;  %v49_v57 = vld [vmem:[%s5866_s0 + $0x30] sm:$0xff]  ;;  %v4157_v35 = vld [vmem:[#allocation3 + $0x2a8] ss:$16 sps:$4 sm:$0xff]  }
  0x72   :  { %1763 = vmatmul.mubr.bf16.gmra.mxu1 %v4731_v39  ;;  %1820 = vmatpush2.bf16.msra.mxu0 %v4106_v41  ;;  %v4135_v41 = vld [vmem:[#allocation3 + $0x524] ss:$16 sps:$4 sm:$0xff]  }
  0x73   :  { %1659 = vmatprep.mubr.bf16.mxu0 %v4733_v43  ;;  %1821 = vmatprep.subr.bf16.mxu0 %v4114_v44  ;;  %v48_v44 = vld [vmem:[%s5866_s0 + $0x28] sm:$0xff] }
  0x74   :  { %1772 = vmatprep.mubr.bf16.mxu1 %v4735_v45 }
  0x76   :  { %1822 = vmatpush2.bf16.msra.mxu0 %v4112_v46  ;;  %v55_v46 = vld [vmem:[%s5866_s0 + $0x60] sm:$0xff] }
  0x77   :  { %1823 = vmatprep.subr.bf16.mxu0 %v4117_v52  ;;  %v4835_v50 = vpack.c.bf16 %v55_v46, %v48_v44  ;;  %v4139_v52 = vld [vmem:[#allocation3 + $0x500] ss:$16 sps:$4 sm:$0xff]   ;;  %v76_v46 = vld [vmem:[%s5866_s0 + $0x108] sm:$0xff] }
  0x79   :  { %1660 = vmatmul.mubr.bf16.gmra.mxu0 %v4765_v1 }
  0x7a   :  { %1773 = vmatmul.mubr.bf16.gmra.mxu1 %v4767_v2  ;;  %1824 = vmatpush2.bf16.msra.mxu0 %v4115_v3  ;;  %v62_v3 = vld [vmem:[%s5866_s0 + $0x98] sm:$0xff] }
  0x7b   :  { %1669 = vmatprep.mubr.bf16.mxu0 %v4769_v4  ;;  %1825 = vmatprep.subr.bf16.mxu0 %v4123_v5  ;;  %v4856_v5 = vpack.c.bf16 %v54_v56, %v47_v53  ;;  %v4863_v21 = vpack.c.bf16 %v69_v8, %v62_v3  ;;  %v4160_v53 = vld [vmem:[#allocation3 + $0x88] ss:$16 sps:$4 sm:$0xff]   ;;  %v77_v3 = vld [vmem:[%s5866_s0 + $0x110] sm:$0xff] }
  0x7c   :  { %1782 = vmatprep.mubr.bf16.mxu1 %v4771_v6  ;;  %v84_v8 = vld [vmem:[%s5866_s0 + $0x148] sm:$0xff] }
  0x7e   :  { %1826 = vmatpush2.bf16.msra.mxu0 %v4121_v7  ;;  %v4858_v7 = vpack.c.bf16 %v56_v60, %v49_v57  ;;  %v4163_v57 = vld [vmem:[#allocation3 + $0x288] ss:$16 sps:$4 sm:$0xff]   ;;  %v75_v60 = vld [vmem:[%s5866_s0 + $0x100] sm:$0xff] }
  0x7f   :  { %1827 = vmatprep.subr.bf16.mxu0 %v4126_v12  ;;  %v4153_v12 = vld [vmem:[#allocation3 + $0x2cc] ss:$16 sps:$4 sm:$0xff]  }
  0x81   :  { %1670 = vmatmul.mubr.bf16.gmra.mxu0 %v4801_v25 }
  0x82   :  { %1783 = vmatmul.mubr.bf16.gmra.mxu1 %v4803_v26  ;;  %1828 = vmatpush2.bf16.msra.mxu0 %v4124_v27  ;;  %v68_v27 = vld [vmem:[%s5866_s0 + $0xc8] sm:$0xff] }
  0x83   :  { %1679 = vmatprep.mubr.bf16.mxu0 %v4805_v28  ;;  %1829 = vmatprep.subr.bf16.mxu0 %v4132_v29  ;;  %v63_v29 = vld [vmem:[%s5866_s0 + $0xa0] sm:$0xff] }
  0x84   :  { %1792 = vmatprep.mubr.bf16.mxu1 %v4807_v30 }
  0x86   :  { %1830 = vmatpush2.bf16.msra.mxu0 %v4130_v31  ;;  %v70_v31 = vld [vmem:[%s5866_s0 + $0xd8] sm:$0xff] }
  0x87   :  { %1831 = vmatprep.subr.bf16.mxu0 %v4135_v41  ;;  %v4881_v41 = vpack.c.bf16 %v68_v27, %v61_v23  ;;  %v4883_v44 = vpack.c.bf16 %v70_v31, %v63_v29  ;;  %v4166_v23 = vld [vmem:[#allocation3 + $0x68] ss:$16 sps:$4 sm:$0xff]   ;;  %v4174_v29 = vld [vmem:[#allocation3 + $0x4c] ss:$16 sps:$4 sm:$0xff]  }
  0x88   :  { %v4169_v27 = vld [vmem:[#allocation3 + $0x268] ss:$16 sps:$4 sm:$0xff]   ;;  %v4177_v31 = vld [vmem:[#allocation3 + $0x24c] ss:$16 sps:$4 sm:$0xff]  }
  0x89   :  { %1680 = vmatmul.mubr.bf16.gmra.mxu0 %v4831_v47 }
  0x8a   :  { %1793 = vmatmul.mubr.bf16.gmra.mxu1 %v4833_v48  ;;  %1832 = vmatpush2.bf16.msra.mxu0 %v4133_v49  ;;  %v83_v49 = vld [vmem:[%s5866_s0 + $0x140] sm:$0xff] }
  0x8b   :  { %1835 = vmatprep.mubr.bf16.mxu0 %v4835_v50  ;;  %1833 = vmatprep.subr.bf16.mxu0 %v4141_v51  ;;  %v4162_v51 = vld [vmem:[#allocation3 + $0x8c] ss:$16 sps:$4 sm:$0xff]   ;;  %v4891_v56 = vpack.c.bf16 %v83_v49, %v76_v46 }
  0x8c   :  { %1948 = vmatprep.mubr.bf16.mxu1 %v5876_v62  ;;  %v96_v46 = vld [vmem:[%s5866_s0 + $0x1a8] sm:$0xff]  ;;  %v91_v49 = vld [vmem:[%s5866_s0 + $0x180] sm:$0xff] }
  0x8e   :  { %1834 = vmatpush2.bf16.msra.mxu0 %v4139_v52  ;;  %v4165_v52 = vld [vmem:[#allocation3 + $0x28c] ss:$16 sps:$4 sm:$0xff]  }
  0x8f   :  { %2029 = vmatprep.subr.bf16.mxu0 %v4144_v0  ;;  %v82_v0 = vld [vmem:[%s5866_s0 + $0x138] sm:$0xff] }
  0x91   :  { %1836 = vmatmul.mubr.bf16.vlgmr.msra.gmra.mxu0 %v4856_v5 }
  0x92   :  { %1949 = vmatmul.mubr.bf16.vlgmr.msra.gmra.mxu1 %v4858_v7  ;;  %2030 = vmatpush1.bf16.msra.mxu0 %v4142_v9  ;;  %v4168_v9 = vld [vmem:[#allocation3 + $0x6c] ss:$16 sps:$4 sm:$0xff]  }
  0x93   :  { %2143 = vmatpush1.bf16.msra.mxu1 %v4145_v10  ;;  %2031 = vmatprep.subr.bf16.mxu0 %v4150_v11  ;;  %v4171_v10 = vld [vmem:[#allocation3 + $0x26c] ss:$16 sps:$4 sm:$0xff]  }
  0x94   :  { %2144 = vmatprep.subr.bf16.mxu1 %v4153_v12  ;;  %1845 = vmatprep.mubr.bf16.mxu0 %v4863_v21  ;;  %v90_v11 = vld [vmem:[%s5866_s0 + $0x178] sm:$0xff]  ;;  %v4912_v12 = vpack.c.bf16 %v82_v0, %v75_v60 }
  0x95   :  { %1958 = vmatprep.mubr.bf16.mxu1 %v5876_v62  ;;  %v4181_v60 = vld [vmem:[#allocation3 + $0x228] ss:$16 sps:$4 sm:$0xff]  }
  0x96   :  { %2032 = vmatpush1.bf16.msra.mxu0 %v4148_v17  ;;  %v4914_v17 = vpack.c.bf16 %v84_v8, %v77_v3  ;;  %v104_v8 = vld [vmem:[%s5866_s0 + $0x1e8] sm:$0xff] }
  0x97   :  { %2145 = vmatpush1.bf16.msra.mxu1 %v4151_v19  ;;  %2033 = vmatprep.subr.bf16.mxu0 %v4156_v32  ;;  %v97_v19 = vld [vmem:[%s5866_s0 + $0x1b0] sm:$0xff]  ;;  %v4172_v32 = vld [vmem:[#allocation3 + $0x48] ss:$16 sps:$4 sm:$0xff]  }
  0x98   :  { %2146 = vmatprep.subr.bf16.mxu1 %v4159_v33  ;;  %v4919_v33 = vpack.c.bf16 %v97_v19, %v90_v11  ;;  %v4189_v11 = vld [vmem:[#allocation3 + $0x20c] ss:$16 sps:$4 sm:$0xff]   ;;  %v4184_v19 = vld [vmem:[#allocation3 + $0x8] ss:$16 sps:$4 sm:$0xff]  }
  0x99   :  { %1846 = vmatmul.mubr.bf16.gmra.mxu0 %v4881_v41 }
  0x9a   :  { %1959 = vmatmul.mubr.bf16.gmra.mxu1 %v4883_v44  ;;  %2034 = vmatpush1.bf16.msra.mxu0 %v4154_v34  ;;  %v4175_v34 = vld [vmem:[#allocation3 + $0x248] ss:$16 sps:$4 sm:$0xff]  }
  0x9b   :  { %2147 = vmatpush1.bf16.msra.mxu1 %v4157_v35  ;;  %2035 = vmatprep.subr.bf16.mxu0 %v4162_v51  ;;  %v89_v35 = vld [vmem:[%s5866_s0 + $0x170] sm:$0xff]  ;;  %v98_v51 = vld [vmem:[%s5866_s0 + $0x1b8] sm:$0xff] }
  0x9c   :  { %2148 = vmatprep.subr.bf16.mxu1 %v4165_v52  ;;  %1855 = vmatprep.mubr.bf16.mxu0 %v4891_v56  ;;  %v4180_v52 = vld [vmem:[#allocation3 + $0x2c] ss:$16 sps:$4 sm:$0xff]   ;;  %v4937_v0 = vpack.c.bf16 %v96_v46, %v89_v35  ;;  %v4939_v3 = vpack.c.bf16 %v98_v51, %v91_v49  ;;  %v4190_v49 = vld [vmem:[#allocation3 + $0x1e8] ss:$16 sps:$4 sm:$0xff]  }
  0x9d   :  { %1968 = vmatprep.mubr.bf16.mxu1 %v5876_v62  ;;  %v4192_v35 = vld [vmem:[#allocation3 + $0x1ec] ss:$16 sps:$4 sm:$0xff]   ;;  %v4193_v51 = vld [vmem:[#allocation3 + $0x3e8] ss:$16 sps:$4 sm:$0xff]  }
  0x9e   :  { %2036 = vmatpush1.bf16.msra.mxu0 %v4160_v53  ;;  %v4183_v53 = vld [vmem:[#allocation3 + $0x22c] ss:$16 sps:$4 sm:$0xff]  }
  0x9f   :  { %2149 = vmatpush1.bf16.msra.mxu1 %v4163_v57  ;;  %2037 = vmatprep.subr.bf16.mxu0 %v4168_v9  ;;  %v4178_v57 = vld [vmem:[#allocation3 + $0x28] ss:$16 sps:$4 sm:$0xff]   ;;  %v111_v9 = vld [vmem:[%s5866_s0 + $0x220] sm:$0xff] }
  0xa0   :  { %2150 = vmatprep.subr.bf16.mxu1 %v4171_v10  ;;  %v4186_v10 = vld [vmem:[#allocation3 + $0xc] ss:$16 sps:$4 sm:$0xff]  }
  0xa1   :  { %1856 = vmatmul.mubr.bf16.gmra.mxu0 %v4912_v12  ;;  %v4195_v46 = vld [vmem:[#allocation3 + $0x3ec] ss:$16 sps:$4 sm:$0xff]  }
  0xa2   :  { %1969 = vmatmul.mubr.bf16.gmra.mxu1 %v4914_v17  ;;  %2038 = vmatpush1.bf16.msra.mxu0 %v4166_v23  ;;  %v4187_v23 = vld [vmem:[#allocation3 + $0x208] ss:$16 sps:$4 sm:$0xff]  }
  0xa3   :  { %2151 = vmatpush1.bf16.msra.mxu1 %v4169_v27  ;;  %2039 = vmatprep.subr.bf16.mxu0 %v4174_v29  ;;  %v4947_v27 = vpack.c.bf16 %v111_v9, %v104_v8  ;;  %v103_v29 = vld [vmem:[%s5866_s0 + $0x1e0] sm:$0xff]  ;;  %v118_v8 = vld [vmem:[%s5866_s0 + $0x258] sm:$0xff] }
  0xa4   :  { %2152 = vmatprep.subr.bf16.mxu1 %v4177_v31  ;;  %1865 = vmatprep.mubr.bf16.mxu0 %v4919_v33  ;;  %v110_v31 = vld [vmem:[%s5866_s0 + $0x218] sm:$0xff] }
  0xa5   :  { %1978 = vmatprep.mubr.bf16.mxu1 %v5876_v62  ;;  %v4201_v9 = vld [vmem:[#allocation3 + $0x3cc] ss:$16 sps:$4 sm:$0xff]  }
  0xa6   :  { %2040 = vmatpush1.bf16.msra.mxu0 %v4172_v32  ;;  %v105_v32 = vld [vmem:[%s5866_s0 + $0x1f0] sm:$0xff] }
  0xa7   :  { %2153 = vmatpush1.bf16.msra.mxu1 %v4175_v34  ;;  %2041 = vmatprep.subr.bf16.mxu0 %v4180_v52  ;;  %v112_v34 = vld [vmem:[%s5866_s0 + $0x228] sm:$0xff]  ;;  %v4965_v52 = vpack.c.bf16 %v110_v31, %v103_v29  ;;  %v117_v31 = vld [vmem:[%s5866_s0 + $0x250] sm:$0xff] }
  0xa8   :  { %2154 = vmatprep.subr.bf16.mxu1 %v4183_v53  ;;  %v4967_v53 = vpack.c.bf16 %v112_v34, %v105_v32  ;;  %v124_v32 = vld [vmem:[%s5866_s0 + $0x288] sm:$0xff] }
  0xa9   :  { %1866 = vmatmul.mubr.bf16.gmra.mxu0 %v4937_v0  ;;  %5884 = vst [vmem:[#allocation6_spill] sm:$0xff] %v4965_v52  ;;  %v4204_v34 = vld [vmem:[#allocation3 + $0x1ac] ss:$16 sps:$4 sm:$0xff]  }
  0xaa   :  { %1979 = vmatmul.mubr.bf16.gmra.mxu1 %v4939_v3  ;;  %2042 = vmatpush1.bf16.msra.mxu0 %v4178_v57  ;;  %5885 = vst [vmem:[#allocation7_spill] sm:$0xff] %v4967_v53  ;;  %v125_v57 = vld [vmem:[%s5866_s0 + $0x290] sm:$0xff] }
  0xab   :  { %2155 = vmatpush1.bf16.msra.mxu1 %v4181_v60  ;;  %2043 = vmatprep.subr.bf16.mxu0 %v4186_v10  ;;  %v4198_v60 = vld [vmem:[#allocation3 + $0x1cc] ss:$16 sps:$4 sm:$0xff]   ;;  %v4196_v10 = vld [vmem:[#allocation3 + $0x1c8] ss:$16 sps:$4 sm:$0xff]   ;;  %v4975_v29 = vpack.c.bf16 %v125_v57, %v118_v8  ;;  %v4993_v57 = vpack.c.bf16 %v124_v32, %v117_v31 }
  0xac   :  { %2156 = vmatprep.subr.bf16.mxu1 %v4189_v11  ;;  %1875 = vmatprep.mubr.bf16.mxu0 %v4947_v27  ;;  %v4199_v11 = vld [vmem:[#allocation3 + $0x3c8] ss:$16 sps:$4 sm:$0xff]   ;;  %v131_v32 = vld [vmem:[%s5866_s0 + $0x2c0] sm:$0xff] }
  0xad   :  { %1988 = vmatprep.mubr.bf16.mxu1 %v5876_v62  ;;  %5886 = vst [vmem:[#allocation8_spill] sm:$0xff] %v4975_v29  ;;  %v4205_v8 = vld [vmem:[#allocation3 + $0x3a8] ss:$16 sps:$4 sm:$0xff]   ;;  %5887 = vst [vmem:[#allocation9_spill] sm:$0xff] %v4993_v57 }
  0xae   :  { %2044 = vmatpush1.bf16.msra.mxu0 %v4184_v19  ;;  %v119_v19 = vld [vmem:[%s5866_s0 + $0x260] sm:$0xff] }
  0xaf   :  { %2157 = vmatpush1.bf16.msra.mxu1 %v4187_v23  ;;  %2045 = vmatprep.subr.bf16.mxu0 %v4192_v35  ;;  %v126_v23 = vld [vmem:[%s5866_s0 + $0x298] sm:$0xff] }
  0xb0   :  { %2158 = vmatprep.subr.bf16.mxu1 %v4195_v46  ;;  %v4207_v35 = vld [vmem:[#allocation3 + $0x3ac] ss:$16 sps:$4 sm:$0xff]   ;;  %v4202_v46 = vld [vmem:[#allocation3 + $0x1a8] ss:$16 sps:$4 sm:$0xff]  }
  0xb1   :  { %1876 = vmatmul.mubr.bf16.gmra.mxu0 %v4965_v52  ;;  %v132_v52 = vld [vmem:[%s5866_s0 + $0x2c8] sm:$0xff] }
  0xb2   :  { %1989 = vmatmul.mubr.bf16.gmra.mxu1 %v4967_v53  ;;  %2046 = vmatpush2.bf16.msra.mxu0 %v4190_v49  ;;  %v4995_v53 = vpack.c.bf16 %v126_v23, %v119_v19  ;;  %v139_v49 = vld [vmem:[%s5866_s0 + $0x300] sm:$0xff]  ;;  %v138_v19 = vld [vmem:[%s5866_s0 + $0x2f8] sm:$0xff] }
  0xb3   :  { %2159 = vmatpush2.bf16.msra.mxu1 %v4193_v51  ;;  %2047 = vmatprep.subr.bf16.mxu0 %v4198_v60  ;;  %v4210_v51 = vld [vmem:[#allocation3 + $0x18c] ss:$16 sps:$4 sm:$0xff]   ;;  %v5003_v31 = vpack.c.bf16 %v139_v49, %v132_v52  ;;  %v4217_v49 = vld [vmem:[#allocation3 + $0x368] ss:$16 sps:$4 sm:$0xff]  }
  0xb4   :  { %2160 = vmatprep.subr.bf16.mxu1 %v4201_v9  ;;  %1885 = vmatprep.mubr.bf16.mxu0 %v4975_v29  ;;  %5888 = vst [vmem:[#allocation10_spill] sm:$0xff] %v4995_v53  ;;  %v4213_v60 = vld [vmem:[#allocation3 + $0x38c] ss:$16 sps:$4 sm:$0xff]   ;;  %v4208_v9 = vld [vmem:[#allocation3 + $0x188] ss:$16 sps:$4 sm:$0xff]  }
  0xb5   :  { %1998 = vmatprep.mubr.bf16.mxu1 %v5876_v62  ;;  %v4211_v62 = vld [vmem:[#allocation3 + $0x388] ss:$16 sps:$4 sm:$0xff]   ;;  %5889 = vst [vmem:[#allocation11_spill] sm:$0xff] %v5003_v31  ;;  %v4219_v23 = vld [vmem:[#allocation3 + $0x36c] ss:$16 sps:$4 sm:$0xff]  }
  0xb6   :  { %2048 = vmatpush2.bf16.msra.mxu0 %v4196_v10  ;;  %v133_v10 = vld [vmem:[%s5866_s0 + $0x2d0] sm:$0xff]  ;;  %v140_v52 = vld [vmem:[%s5866_s0 + $0x308] sm:$0xff]  ;;  %v146_v29 = vld [vmem:[%s5866_s0 + $0x338] sm:$0xff] }
  0xb7   :  { %2161 = vmatpush2.bf16.msra.mxu1 %v4199_v11  ;;  %2049 = vmatprep.subr.bf16.mxu0 %v4204_v34  ;;  %v4216_v11 = vld [vmem:[#allocation3 + $0x16c] ss:$16 sps:$4 sm:$0xff]   ;;  %v5890_v34 = vmov 0  }
  0xb8   :  { %2162 = vmatprep.subr.bf16.mxu1 %v4207_v35  ;;  %v4214_v35 = vld [vmem:[#allocation3 + $0x168] ss:$16 sps:$4 sm:$0xff]  }
  0xb9   :  { %1886 = vmatmul.mubr.bf16.gmra.mxu0 %v4993_v57  ;;  %v5023_v57 = vpack.c.bf16 %v140_v52, %v133_v10  ;;  %v152_v10 = vld [vmem:[%s5866_s0 + $0x368] sm:$0xff] }
  0xba   :  { %1999 = vmatmul.mubr.bf16.gmra.mxu1 %v4995_v53  ;;  %2050 = vmatpush2.bf16.msra.mxu0 %v4202_v46  ;;  %v5021_v53 = vpack.c.bf16 %v138_v19, %v131_v32  ;;  %v153_v46 = vld [vmem:[%s5866_s0 + $0x370] sm:$0xff] }
  0xbb   :  { %2163 = vmatpush2.bf16.msra.mxu1 %v4205_v8  ;;  %2051 = vmatprep.subr.bf16.mxu0 %v4210_v51  ;;  %5892 = vst [vmem:[#allocation13_spill] sm:$0xff] %v5023_v57  ;;  %v4222_v8 = vld [vmem:[#allocation3 + $0x14c] ss:$16 sps:$4 sm:$0xff]   ;;  %v5031_v32 = vpack.c.bf16 %v153_v46, %v146_v29  ;;  %v4226_v46 = vld [vmem:[#allocation3 + $0x128] ss:$16 sps:$4 sm:$0xff]  }
  0xbc   :  { %2164 = vmatprep.subr.bf16.mxu1 %v4213_v60  ;;  %1895 = vmatprep.mubr.bf16.mxu0 %v5003_v31  ;;  %5891 = vst [vmem:[#allocation12_spill] sm:$0xff] %v5021_v53  ;;  %v4225_v51 = vld [vmem:[#allocation3 + $0x34c] ss:$16 sps:$4 sm:$0xff]   ;;  %v4220_v60 = vld [vmem:[#allocation3 + $0x148] ss:$16 sps:$4 sm:$0xff]  }
  0xbd   :  { %2008 = vmatprep.mubr.bf16.mxu1 %v5890_v34  ;;  %v4223_v31 = vld [vmem:[#allocation3 + $0x348] ss:$16 sps:$4 sm:$0xff]   ;;  %v145_v19 = vld [vmem:[%s5866_s0 + $0x330] sm:$0xff] }
  0xbe   :  { %2052 = vmatpush2.bf16.msra.mxu0 %v4208_v9  ;;  %v154_v29 = vld [vmem:[%s5866_s0 + $0x378] sm:$0xff] }
  0xbf   :  { %2165 = vmatpush2.bf16.msra.mxu1 %v4211_v62  ;;  %2053 = vmatprep.subr.bf16.mxu0 %v4216_v11  ;;  %v147_v62 = vld [vmem:[%s5866_s0 + $0x340] sm:$0xff]  ;;  %v5049_v11 = vpack.c.bf16 %v152_v10, %v145_v19 }
  0xc0   :  { %2166 = vmatprep.subr.bf16.mxu1 %v4219_v23  ;;  %v4228_v9 = vld [vmem:[#allocation3 + $0x12c] ss:$16 sps:$4 sm:$0xff]   ;;  %v5051_v23 = vpack.c.bf16 %v154_v29, %v147_v62  ;;  %v4247_v29 = vld [vmem:[#allocation3 + $0x4a8] ss:$16 sps:$4 sm:$0xff]  }
  0xc1   :  { %1896 = vmatmul.mubr.bf16.gmra.mxu0 %v5021_v53  ;;  %v4231_v52 = vld [vmem:[#allocation3 + $0x32c] ss:$16 sps:$4 sm:$0xff]  }
  0xc2   :  { %2009 = vmatmul.mubr.bf16.gmra.mxu1 %v5023_v57  ;;  %2054 = vmatpush2.bf16.msra.mxu0 %v4214_v35  ;;  %v4229_v57 = vld [vmem:[#allocation3 + $0x328] ss:$16 sps:$4 sm:$0xff]   ;;  %v4234_v53 = vld [vmem:[#allocation3 + $0x10c] ss:$16 sps:$4 sm:$0xff]  }
  0xc3   :  { %2167 = vmatpush2.bf16.msra.mxu1 %v4217_v49  ;;  %2055 = vmatprep.subr.bf16.mxu0 %v4222_v8  ;;  %v4237_v35 = vld [vmem:[#allocation3 + $0x30c] ss:$16 sps:$4 sm:$0xff]   ;;  %v4232_v49 = vld [vmem:[#allocation3 + $0x108] ss:$16 sps:$4 sm:$0xff]  }
  0xc4   :  { %2168 = vmatprep.subr.bf16.mxu1 %v4225_v51  ;;  %1905 = vmatprep.mubr.bf16.mxu0 %v5031_v32  ;;  %v4235_v8 = vld [vmem:[#allocation3 + $0x308] ss:$16 sps:$4 sm:$0xff]   ;;  %v4240_v51 = vld [vmem:[#allocation3 + $0x4ec] ss:$16 sps:$4 sm:$0xff]  }
  0xc5   :  { %2018 = vmatprep.mubr.bf16.mxu1 %v5890_v34  ;;  %v4243_v19 = vld [vmem:[#allocation3 + $0x6ec] ss:$16 sps:$4 sm:$0xff]  }
  0xc6   :  { %2056 = vmatpush2.bf16.msra.mxu0 %v4220_v60  ;;  %v4241_v60 = vld [vmem:[#allocation3 + $0x6e8] ss:$16 sps:$4 sm:$0xff]   ;;  %v4246_v10 = vld [vmem:[#allocation3 + $0x4cc] ss:$16 sps:$4 sm:$0xff]  }
  0xc7   :  { %2169 = vmatpush2.bf16.msra.mxu1 %v4223_v31  ;;  %2057 = vmatprep.subr.bf16.mxu0 %v4228_v9  ;;  %v4238_v31 = vld [vmem:[#allocation3 + $0x4e8] ss:$16 sps:$4 sm:$0xff]   ;;  %v4252_v62 = vld [vmem:[#allocation3 + $0x6cc] ss:$16 sps:$4 sm:$0xff]  }
  0xc8   :  { %2170 = vmatprep.subr.bf16.mxu1 %v4231_v52  ;;  %v4255_v9 = vld [vmem:[#allocation3 + $0x48c] ss:$16 sps:$4 sm:$0xff]   ;;  %v4253_v52 = vld [vmem:[#allocation3 + $0x488] ss:$16 sps:$4 sm:$0xff]  }
  0xc9   :  { %1906 = vmatmul.mubr.bf16.gmra.mxu0 %v5049_v11 }
  0xca   :  { %2019 = vmatmul.mubr.bf16.gmra.mxu1 %v5051_v23  ;;  %2058 = vmatpush2.bf16.msra.mxu0 %v4226_v46  ;;  %v4268_v46 = vld [vmem:[#allocation3 + $0x688] ss:$16 sps:$4 sm:$0xff]  }
  0xcb   :  { %2171 = vmatpush2.bf16.msra.mxu1 %v4229_v57  ;;  %2059 = vmatprep.subr.bf16.mxu0 %v4234_v53  ;;  %v4244_v53 = vld [vmem:[#allocation3 + $0x4c8] ss:$16 sps:$4 sm:$0xff]  }
  0xcc   :  { %2172 = vmatprep.subr.bf16.mxu1 %v4237_v35  ;;  %2061 = vmatprep.mubr.bf16.mxu0 %v4555_v54  ;;  %v4250_v57 = vld [vmem:[#allocation3 + $0x6c8] ss:$16 sps:$4 sm:$0xff]   ;;  %v4249_v54 = vld [vmem:[#allocation3 + $0x4ac] ss:$16 sps:$4 sm:$0xff]  }
  0xcd   :  { %2174 = vmatprep.mubr.bf16.mxu1 %v4557_v55  ;;  %v4261_v55 = vld [vmem:[#allocation3 + $0x6ac] ss:$16 sps:$4 sm:$0xff]  }
  0xce   :  { %2060 = vmatpush2.bf16.msra.mxu0 %v4232_v49  ;;  %v4264_v35 = vld [vmem:[#allocation3 + $0x44c] ss:$16 sps:$4 sm:$0xff]  }
  0xcf   :  { %2173 = vmatpush2.bf16.msra.mxu1 %v4235_v8  ;;  %2255 = vmatprep.subr.bf16.mxu0 %v4240_v51  ;;  %v4279_v49 = vld [vmem:[#allocation3 + $0x66c] ss:$16 sps:$4 sm:$0xff]   ;;  %v4262_v8 = vld [vmem:[#allocation3 + $0x448] ss:$16 sps:$4 sm:$0xff]  }
  0xd0   :  { %2368 = vmatprep.subr.bf16.mxu1 %v4243_v19  ;;  %v4273_v51 = vld [vmem:[#allocation3 + $0x40c] ss:$16 sps:$4 sm:$0xff]   ;;  %v4286_v19 = vld [vmem:[#allocation3 + $0x648] ss:$16 sps:$4 sm:$0xff]  }
  0xd1   :  { %2062 = vmatmul.mubr.bf16.vlgmr.msra.gmra.mxu0 %v4579_v15  ;;  %v4259_v15 = vld [vmem:[#allocation3 + $0x6a8] ss:$16 sps:$4 sm:$0xff]  }
  0xd2   :  { %2175 = vmatmul.mubr.bf16.vlgmr.msra.gmra.mxu1 %v4581_v16  ;;  %2256 = vmatpush1.bf16.msra.mxu0 %v4238_v31  ;;  %v4270_v16 = vld [vmem:[#allocation3 + $0x68c] ss:$16 sps:$4 sm:$0xff]   ;;  %v4274_v31 = vld [vmem:[#allocation3 + $0x5e8] ss:$16 sps:$4 sm:$0xff]  }
  0xd3   :  { %2369 = vmatpush1.bf16.msra.mxu1 %v4241_v60  ;;  %2257 = vmatprep.subr.bf16.mxu0 %v4246_v10  ;;  %v4282_v60 = vld [vmem:[#allocation3 + $0x5cc] ss:$16 sps:$4 sm:$0xff]   ;;  %v4283_v10 = vld [vmem:[#allocation3 + $0x5a8] ss:$16 sps:$4 sm:$0xff]  }
  0xd4   :  { %2071 = vmatprep.mubr.bf16.mxu0 %v4589_v22  ;;  %2184 = vmatprep.mubr.bf16.mxu1 %v4591_v24  ;;  %v4258_v22 = vld [vmem:[#allocation3 + $0x46c] ss:$16 sps:$4 sm:$0xff]   ;;  %v4256_v24 = vld [vmem:[#allocation3 + $0x468] ss:$16 sps:$4 sm:$0xff]  }
  0xd5   :  { %2370 = vmatprep.subr.bf16.mxu1 %v4252_v62  ;;  %v4291_v62 = vld [vmem:[#allocation3 + $0x58c] ss:$16 sps:$4 sm:$0xff]  }
  0xd6   :  { %2258 = vmatpush1.bf16.msra.mxu0 %v4244_v53 }
  0xd7   :  { %2371 = vmatpush1.bf16.msra.mxu1 %v4250_v57  ;;  %2259 = vmatprep.subr.bf16.mxu0 %v4249_v54  ;;  %v4309_v57 = vld [vmem:[#allocation3 + $0x50c] ss:$16 sps:$4 sm:$0xff]  }
  0xd8   :  { %2372 = vmatprep.subr.bf16.mxu1 %v4261_v55  ;;  %v4315_v55 = vld [vmem:[%s5869_s3 + $0x64] ss:$8 sps:$4 sm:$0xff]  }
  0xd9   :  { %2072 = vmatmul.mubr.bf16.gmra.mxu0 %v4621_v37  ;;  %v4277_v37 = vld [vmem:[#allocation3 + $0x668] ss:$16 sps:$4 sm:$0xff]  }
  0xda   :  { %2185 = vmatmul.mubr.bf16.gmra.mxu1 %v4623_v38  ;;  %2260 = vmatpush1.bf16.msra.mxu0 %v4247_v29  ;;  %v4288_v38 = vld [vmem:[#allocation3 + $0x64c] ss:$16 sps:$4 sm:$0xff]  }
  0xdb   :  { %2081 = vmatprep.mubr.bf16.mxu0 %v4625_v40  ;;  %2261 = vmatprep.subr.bf16.mxu0 %v4255_v9  ;;  %v4267_v40 = vld [vmem:[#allocation3 + $0x42c] ss:$16 sps:$4 sm:$0xff]  }
  0xdc   :  { %2194 = vmatprep.mubr.bf16.mxu1 %v4627_v42  ;;  %2373 = vmatpush1.bf16.msra.mxu1 %v4259_v15  ;;  %v4265_v42 = vld [vmem:[#allocation3 + $0x428] ss:$16 sps:$4 sm:$0xff]  }
  0xdd   :  { %2374 = vmatprep.subr.bf16.mxu1 %v4270_v16 }
  0xde   :  { %2262 = vmatpush1.bf16.msra.mxu0 %v4253_v52 }
  0xdf   :  { %2263 = vmatprep.subr.bf16.mxu0 %v4258_v22  ;;  %v4313_v22 = vld [vmem:[%s5869_s3 + $0x60] ss:$8 sps:$4 sm:$0xff]  }
  0xe0   :  { %2375 = vmatpush1.bf16.msra.mxu1 %v4268_v46 }
  0xe1   :  { %2082 = vmatmul.mubr.bf16.gmra.mxu0 %v4657_v58  ;;  %2376 = vmatprep.subr.bf16.mxu1 %v4279_v49  ;;  %v4297_v58 = vld [vmem:[#allocation3 + $0x62c] ss:$16 sps:$4 sm:$0xff]  }
  0xe2   :  { %2195 = vmatmul.mubr.bf16.gmra.mxu1 %v4659_v59  ;;  %2264 = vmatpush1.bf16.msra.mxu0 %v4256_v24  ;;  %v4271_v59 = vld [vmem:[#allocation3 + $0x408] ss:$16 sps:$4 sm:$0xff]  }
  0xe3   :  { %2091 = vmatprep.mubr.bf16.mxu0 %v4661_v61  ;;  %2265 = vmatprep.subr.bf16.mxu0 %v4264_v35  ;;  %v4276_v61 = vld [vmem:[#allocation3 + $0x5ec] ss:$16 sps:$4 sm:$0xff]  }
  0xe4   :  { %2204 = vmatprep.mubr.bf16.mxu1 %v4663_v63  ;;  %2377 = vmatpush1.bf16.msra.mxu1 %v4277_v37  ;;  %v4295_v63 = vld [vmem:[#allocation3 + $0x628] ss:$16 sps:$4 sm:$0xff]  }
  0xe5   :  { %2378 = vmatprep.subr.bf16.mxu1 %v4288_v38  ;;  %v4316_v38 = vld [vmem:[%s5869_s3 + $0x50] ss:$8 sps:$4 sm:$0xff]  }
  0xe6   :  { %2266 = vmatpush1.bf16.msra.mxu0 %v4262_v8 }
  0xe7   :  { %2267 = vmatprep.subr.bf16.mxu0 %v4267_v40 }
  0xe8   :  { %2379 = vmatpush1.bf16.msra.mxu1 %v4286_v19 }
  0xe9   :  { %2092 = vmatmul.mubr.bf16.gmra.mxu0 %v4693_v13  ;;  %2380 = vmatprep.subr.bf16.mxu1 %v4297_v58  ;;  %v4306_v13 = vld [vmem:[#allocation3 + $0x60c] ss:$16 sps:$4 sm:$0xff]  }
  0xea   :  { %2205 = vmatmul.mubr.bf16.gmra.mxu1 %v4695_v14  ;;  %2268 = vmatpush1.bf16.msra.mxu0 %v4265_v42  ;;  %v4304_v14 = vld [vmem:[#allocation3 + $0x608] ss:$16 sps:$4 sm:$0xff]  }
  0xeb   :  { %2101 = vmatprep.mubr.bf16.mxu0 %v4697_v18  ;;  %2269 = vmatprep.subr.bf16.mxu0 %v4273_v51  ;;  %v4280_v18 = vld [vmem:[#allocation3 + $0x5c8] ss:$16 sps:$4 sm:$0xff]  }
  0xec   :  { %2214 = vmatprep.mubr.bf16.mxu1 %v4699_v20  ;;  %2381 = vmatpush1.bf16.msra.mxu1 %v4295_v63  ;;  %v4285_v20 = vld [vmem:[#allocation3 + $0x5ac] ss:$16 sps:$4 sm:$0xff]  }
  0xed   :  { %2382 = vmatprep.subr.bf16.mxu1 %v4306_v13  ;;  %v4321_v42 = vld [vmem:[%s5869_s3 + $0x44] ss:$8 sps:$4 sm:$0xff]   ;;  %v4319_v63 = vld [vmem:[%s5869_s3 + $0x40] ss:$8 sps:$4 sm:$0xff]  }
  0xee   :  { %2270 = vmatpush1.bf16.msra.mxu0 %v4271_v59 }
  0xef   :  { %2271 = vmatprep.subr.bf16.mxu0 %v4276_v61 }
  0xf0   :  { %2383 = vmatpush1.bf16.msra.mxu1 %v4304_v14 }
  0xf1   :  { %2102 = vmatmul.mubr.bf16.gmra.mxu0 %v4729_v36  ;;  %v4289_v36 = vld [vmem:[#allocation3 + $0x588] ss:$16 sps:$4 sm:$0xff]  }
  0xf2   :  { %2215 = vmatmul.mubr.bf16.gmra.mxu1 %v4731_v39  ;;  %2272 = vmatpush2.bf16.msra.mxu0 %v4274_v31  ;;  %v4294_v39 = vld [vmem:[#allocation3 + $0x56c] ss:$16 sps:$4 sm:$0xff]  }
  0xf3   :  { %2111 = vmatprep.mubr.bf16.mxu0 %v4733_v43  ;;  %2273 = vmatprep.subr.bf16.mxu0 %v4282_v60  ;;  %v4292_v43 = vld [vmem:[#allocation3 + $0x568] ss:$16 sps:$4 sm:$0xff]  }
  0xf4   :  { %2224 = vmatprep.mubr.bf16.mxu1 %v4735_v45  ;;  %v4300_v45 = vld [vmem:[#allocation3 + $0x54c] ss:$16 sps:$4 sm:$0xff]  }
  0xf6   :  { %2274 = vmatpush2.bf16.msra.mxu0 %v4280_v18 }
  0xf7   :  { %2275 = vmatprep.subr.bf16.mxu0 %v4285_v20 }
  0xf9   :  { %2112 = vmatmul.mubr.bf16.gmra.mxu0 %v4765_v1  ;;  %v4298_v1 = vld [vmem:[#allocation3 + $0x548] ss:$16 sps:$4 sm:$0xff]  }
  0xfa   :  { %2225 = vmatmul.mubr.bf16.gmra.mxu1 %v4767_v2  ;;  %2276 = vmatpush2.bf16.msra.mxu0 %v4283_v10  ;;  %v437_v2 = vlaneseq  ;;  %v4322_v10 = vld [vmem:[%s5869_s3 + $0x30] ss:$8 sps:$4 sm:$0xff]  }
  0xfb   :  { %2121 = vmatprep.mubr.bf16.mxu0 %v4769_v4  ;;  %2277 = vmatprep.subr.bf16.mxu0 %v4291_v62  ;;  %v4303_v4 = vld [vmem:[#allocation3 + $0x52c] ss:$16 sps:$4 sm:$0xff]  }
  0xfc   :  { %2234 = vmatprep.mubr.bf16.mxu1 %v4771_v6  ;;  %v4301_v6 = vld [vmem:[#allocation3 + $0x528] ss:$16 sps:$4 sm:$0xff]   ;;  %v5085_v53 = vshrl.u32 %v437_v2, 7 }
  0xfe   :  { %2278 = vmatpush2.bf16.msra.mxu0 %v4289_v36  ;;  %v4327_v36 = vld [vmem:[%s5869_s3 + $0x24] ss:$8 sps:$4 sm:$0xff]  }
  0xff   :  { %2279 = vmatprep.subr.bf16.mxu0 %v4294_v39 }
 0x101   :  { %2122 = vmatmul.mubr.bf16.gmra.mxu0 %v4801_v25  ;;  %v4307_v25 = vld [vmem:[#allocation3 + $0x508] ss:$16 sps:$4 sm:$0xff]  }
 0x102   :  { %2235 = vmatmul.mubr.bf16.gmra.mxu1 %v4803_v26  ;;  %2280 = vmatpush2.bf16.msra.mxu0 %v4292_v43  ;;  %v5091_v26 = vsub.s32 0, %v5085_v53 }
 0x103   :  { %2131 = vmatprep.mubr.bf16.mxu0 %v4805_v28  ;;  %2281 = vmatprep.subr.bf16.mxu0 %v4300_v45  ;;  %v435_v28 = vld [vmem:[%s5868_s2] sm:$0xf] }
 0x104   :  { %2244 = vmatprep.mubr.bf16.mxu1 %v4807_v30  ;;  %v4312_v30 = vld [vmem:[%s5869_s3 + $0x74] ss:$8 sps:$4 sm:$0xff]  }
 0x106   :  { %2282 = vmatpush2.bf16.msra.mxu0 %v4298_v1  ;;  %v4360_v1 = vld [vmem:[%s5869_s3 + $0x174] ss:$8 sps:$4 sm:$0xff]  }
 0x107   :  { %2283 = vmatprep.subr.bf16.mxu0 %v4303_v4  ;;  %3214 = vmatprep.subr.bf16.mxu1 %v4360_v1 }
 0x109   :  { %2132 = vmatmul.mubr.bf16.gmra.mxu0 %v4831_v47  ;;  %v443_v47 = vsub.s32 1, %v5085_v53 }
 0x10a   :  { %2245 = vmatmul.mubr.bf16.gmra.mxu1 %v4833_v48  ;;  %2284 = vmatpush2.bf16.msra.mxu0 %v4301_v6  ;;  %v5102_v48 = vrot.slane %v435_v28, %v5091_v26  ;;  %v4325_v6 = vld [vmem:[%s5869_s3 + $0x20] ss:$8 sps:$4 sm:$0xff]  }
 0x10b   :  { %2287 = vmatprep.mubr.bf16.mxu0 %v4835_v50  ;;  %2285 = vmatprep.subr.bf16.mxu0 %v4309_v57  ;;  %v4310_v50 = vld [vmem:[%s5869_s3 + $0x70] ss:$8 sps:$4 sm:$0xff]   ;;  %v5109_v54 = vrot.slane %v435_v28, %v443_v47  ;;  %v4330_v57 = vld [vmem:[%s5869_s3 + $0x14] ss:$8 sps:$4 sm:$0xff]  }
 0x10c   :  { %2400 = vmatprep.mubr.bf16.mxu1 %v5890_v34 }
 0x10e   :  { %2286 = vmatpush2.bf16.msra.mxu0 %v4307_v25 }
 0x10f   :  { %3101 = vmatprep.subr.bf16.mxu0 %v4312_v30 }
 0x111   :  { %v1611_v29 = vpop.f32.mrf.mxu0  ;;  %2288 = vmatmul.mubr.bf16.vlgmr.msra.gmra.mxu0 %v4856_v5  ;;  %v4318_v5 = vld [vmem:[%s5869_s3 + $0x54] ss:$8 sps:$4 sm:$0xff]  }
 0x112   :  { %v1724_v9 = vpop.f32.mrf.mxu1  ;;  %2401 = vmatmul.mubr.bf16.vlgmr.msra.gmra.mxu1 %v4858_v7  ;;  %v1612_v15 = vadd.f32 %v1611_v29, %v5102_v48  ;;  %2297 = vmatprep.mubr.bf16.mxu0 %v4863_v21 }
 0x113   :  { %2410 = vmatprep.mubr.bf16.mxu1 %v5890_v34  ;;  %v1613_v16 = vpop.f32.mrf.mxu0  ;;  %3102 = vmatpush1.bf16.msra.mxu0 %v4310_v50 }
 0x114   :  { %v1726_v52 = vpop.f32.mrf.mxu1  ;;  %v5122_v24 = vadd.f32 %v1724_v9, %v1612_v15  ;;  %v1614_v46 = vadd.f32 %v1613_v16, %v5109_v54  ;;  %3103 = vmatprep.subr.bf16.mxu0 %v4315_v55  ;;  %v4363_v55 = vld [vmem:[%s5869_s3 + $0x164] ss:$8 sps:$4 sm:$0xff]   ;;  %v4328_v15 = vld [vmem:[%s5869_s3 + $0x10] ss:$8 sps:$4 sm:$0xff]   ;;  %v4361_v16 = vld [vmem:[%s5869_s3 + $0x160] ss:$8 sps:$4 sm:$0xff]  }
 0x115   :  { %v1615_v7 = vpop.f32.mrf.mxu0 }
 0x116   :  { %v1728_v21 = vpop.f32.mrf.mxu1  ;;  %v5128_v35 = vadd.f32 %v1726_v52, %v1614_v46  ;;  %v1616_v49 = vadd.f32 %v1615_v7, %v5102_v48 }
 0x117   :  { %v5131_v37 = vpop.f32.mrf.mxu0  ;;  %3104 = vmatpush1.bf16.msra.mxu0 %v4313_v22  ;;  %v4333_v22 = vld [vmem:[%s5869_s3 + $0x4] ss:$8 sps:$4 sm:$0xff]  }
 0x118   :  { %v5133_v8 = vpop.f32.mrf.mxu1  ;;  %v5138_v40 = vadd.f32 %v1728_v21, %v1616_v49  ;;  %3105 = vmatprep.subr.bf16.mxu0 %v4318_v5  ;;  %v4366_v21 = vld [vmem:[%s5869_s3 + $0x154] ss:$8 sps:$4 sm:$0xff]  }
 0x119   :  { %v1621_v51 = vpop.f32.mrf.mxu0  ;;  %2298 = vmatmul.mubr.bf16.gmra.mxu0 %v4881_v41  ;;  %v4324_v41 = vld [vmem:[%s5869_s3 + $0x34] ss:$8 sps:$4 sm:$0xff]  }
 0x11a   :  { %v1734_v19 = vpop.f32.mrf.mxu1  ;;  %2411 = vmatmul.mubr.bf16.gmra.mxu1 %v4883_v44  ;;  %v1622_v58 = vadd.f32 %v1621_v51, %v5102_v48  ;;  %2307 = vmatprep.mubr.bf16.mxu0 %v4891_v56  ;;  %v4336_v51 = vld [vmem:[%s5869_s3 + $0xf4] ss:$8 sps:$4 sm:$0xff]  }
 0x11b   :  { %2420 = vmatprep.mubr.bf16.mxu1 %v5890_v34  ;;  %v1623_v59 = vpop.f32.mrf.mxu0  ;;  %3106 = vmatpush1.bf16.msra.mxu0 %v4316_v38 }
 0x11c   :  { %v1736_v61 = vpop.f32.mrf.mxu1  ;;  %v5151_v31 = vadd.f32 %v1734_v19, %v1622_v58  ;;  %v1624_v60 = vadd.f32 %v1623_v59, %v5109_v54  ;;  %3107 = vmatprep.subr.bf16.mxu0 %v4321_v42  ;;  %v4331_v42 = vld [vmem:[%s5869_s3] ss:$8 sps:$4 sm:$0xff]  }
 0x11d   :  { %v1625_v44 = vpop.f32.mrf.mxu0 }
 0x11e   :  { %v1738_v56 = vpop.f32.mrf.mxu1  ;;  %v5157_v13 = vadd.f32 %v1736_v61, %v1624_v60  ;;  %v1626_v14 = vadd.f32 %v1625_v44, %v5102_v48  ;;  %v4334_v44 = vld [vmem:[%s5869_s3 + $0xf0] ss:$8 sps:$4 sm:$0xff]  }
 0x11f   :  { %v5160_v18 = vpop.f32.mrf.mxu0  ;;  %3108 = vmatpush1.bf16.msra.mxu0 %v4319_v63  ;;  %v4369_v63 = vld [vmem:[%s5869_s3 + $0x144] ss:$8 sps:$4 sm:$0xff]  }
 0x120   :  { %v5162_v20 = vpop.f32.mrf.mxu1  ;;  %v5167_v62 = vadd.f32 %v1738_v56, %v1626_v14  ;;  %3109 = vmatprep.subr.bf16.mxu0 %v4324_v41  ;;  %v4367_v56 = vld [vmem:[%s5869_s3 + $0x140] ss:$8 sps:$4 sm:$0xff]  }
 0x121   :  { %v1631_v39 = vpop.f32.mrf.mxu0  ;;  %2308 = vmatmul.mubr.bf16.gmra.mxu0 %v4912_v12  ;;  %v4358_v12 = vld [vmem:[%s5869_s3 + $0x170] ss:$8 sps:$4 sm:$0xff]  }
 0x122   :  { %v1744_v43 = vpop.f32.mrf.mxu1  ;;  %2421 = vmatmul.mubr.bf16.gmra.mxu1 %v4914_v17  ;;  %v1632_v45 = vadd.f32 %v1631_v39, %v5102_v48  ;;  %2317 = vmatprep.mubr.bf16.mxu0 %v4919_v33 }
 0x123   :  { %2430 = vmatprep.mubr.bf16.mxu1 %v5890_v34  ;;  %v1633_v2 = vpop.f32.mrf.mxu0  ;;  %3110 = vmatpush1.bf16.msra.mxu0 %v4322_v10  ;;  %v4339_v10 = vld [vmem:[%s5869_s3 + $0xe4] ss:$8 sps:$4 sm:$0xff]  }
 0x124   :  { %v1746_v4 = vpop.f32.mrf.mxu1  ;;  %v5186_v17 = vadd.f32 %v1744_v43, %v1632_v45  ;;  %v1634_v33 = vadd.f32 %v1633_v2, %v5109_v54  ;;  %3111 = vmatprep.subr.bf16.mxu0 %v4327_v36  ;;  %3215 = vmatpush1.bf16.msra.mxu1 %v4358_v12  ;;  %v5893_v43 = vld [vmem:[#allocation6_spill] sm:$0xff]  ;;  %v5894_v45 = vld [vmem:[#allocation7_spill] sm:$0xff]  ;;  %v5895_v2 = vld [vmem:[#allocation8_spill] sm:$0xff] }
 0x125   :  { %v1635_v25 = vpop.f32.mrf.mxu0  ;;  %3216 = vmatprep.subr.bf16.mxu1 %v4363_v55 }
 0x126   :  { %v1748_v28 = vpop.f32.mrf.mxu1  ;;  %v5192_v30 = vadd.f32 %v1746_v4, %v1634_v33  ;;  %v1636_v50 = vadd.f32 %v1635_v25, %v5102_v48  ;;  %v4372_v4 = vld [vmem:[%s5869_s3 + $0x134] ss:$8 sps:$4 sm:$0xff]   ;;  %v4337_v33 = vld [vmem:[%s5869_s3 + $0xe0] ss:$8 sps:$4 sm:$0xff]  }
 0x127   :  { %v5198_v29 = vpop.f32.mrf.mxu0  ;;  %3112 = vmatpush1.bf16.msra.mxu0 %v4325_v6 }
 0x128   :  { %v5200_v9 = vpop.f32.mrf.mxu1  ;;  %v5208_v52 = vadd.f32 %v1748_v28, %v1636_v50  ;;  %3113 = vmatprep.subr.bf16.mxu0 %v4330_v57  ;;  %3217 = vmatpush1.bf16.msra.mxu1 %v4361_v16  ;;  %v4370_v57 = vld [vmem:[%s5869_s3 + $0x130] ss:$8 sps:$4 sm:$0xff]   ;;  %v4342_v50 = vld [vmem:[%s5869_s3 + $0xd4] ss:$8 sps:$4 sm:$0xff]  }
 0x129   :  { %v1641_v46 = vpop.f32.mrf.mxu0  ;;  %2318 = vmatmul.mubr.bf16.gmra.mxu0 %v4937_v0  ;;  %v4364_v0 = vld [vmem:[%s5869_s3 + $0x150] ss:$8 sps:$4 sm:$0xff]   ;;  %3218 = vmatprep.subr.bf16.mxu1 %v4366_v21 }
 0x12a   :  { %v1754_v5 = vpop.f32.mrf.mxu1  ;;  %2431 = vmatmul.mubr.bf16.gmra.mxu1 %v4939_v3  ;;  %v1642_v7 = vadd.f32 %v1641_v46, %v5102_v48  ;;  %2327 = vmatprep.mubr.bf16.mxu0 %v4947_v27  ;;  %v4375_v46 = vld [vmem:[%s5869_s3 + $0x124] ss:$8 sps:$4 sm:$0xff]   ;;  %v4340_v21 = vld [vmem:[%s5869_s3 + $0xd0] ss:$8 sps:$4 sm:$0xff]  }
 0x12b   :  { %2440 = vmatprep.mubr.bf16.mxu1 %v5890_v34  ;;  %v1643_v49 = vpop.f32.mrf.mxu0  ;;  %3114 = vmatpush1.bf16.msra.mxu0 %v4328_v15 }
 0x12c   :  { %v1756_v38 = vpop.f32.mrf.mxu1  ;;  %v5227_v3 = vadd.f32 %v1754_v5, %v1642_v7  ;;  %v1644_v27 = vadd.f32 %v1643_v49, %v5109_v54  ;;  %3115 = vmatprep.subr.bf16.mxu0 %v4333_v22  ;;  %3219 = vmatpush1.bf16.msra.mxu1 %v4364_v0  ;;  %v4373_v49 = vld [vmem:[%s5869_s3 + $0x120] ss:$8 sps:$4 sm:$0xff]  }
 0x12d   :  { %v1645_v19 = vpop.f32.mrf.mxu0  ;;  %3220 = vmatprep.subr.bf16.mxu1 %v4369_v63  ;;  %v4378_v63 = vld [vmem:[%s5869_s3 + $0x114] ss:$8 sps:$4 sm:$0xff]  }
 0x12e   :  { %v1758_v58 = vpop.f32.mrf.mxu1  ;;  %v5233_v59 = vadd.f32 %v1756_v38, %v1644_v27  ;;  %v1646_v61 = vadd.f32 %v1645_v19, %v5102_v48  ;;  %v5897_v19 = vld [vmem:[#allocation10_spill] sm:$0xff] }
 0x12f   :  { %v5239_v60 = vpop.f32.mrf.mxu0  ;;  %3116 = vmatpush1.bf16.msra.mxu0 %v4331_v42  ;;  %v4345_v42 = vld [vmem:[%s5869_s3 + $0xc4] ss:$8 sps:$4 sm:$0xff]  }
 0x130   :  { %v5241_v41 = vpop.f32.mrf.mxu1  ;;  %v5249_v14 = vadd.f32 %v1758_v58, %v1646_v61  ;;  %3117 = vmatprep.subr.bf16.mxu0 %v4336_v51  ;;  %3221 = vmatpush1.bf16.msra.mxu1 %v4367_v56  ;;  %v5896_v51 = vld [vmem:[#allocation9_spill] sm:$0xff]  ;;  %v5898_v61 = vld [vmem:[#allocation11_spill] sm:$0xff] }
 0x131   :  { %v1651_v36 = vpop.f32.mrf.mxu0  ;;  %2328 = vmatmul.mubr.bf16.gmra.mxu0 %v5893_v43  ;;  %3222 = vmatprep.subr.bf16.mxu1 %v4372_v4 }
 0x132   :  { %v1764_v39 = vpop.f32.mrf.mxu1  ;;  %2441 = vmatmul.mubr.bf16.gmra.mxu1 %v5894_v45  ;;  %v1652_v1 = vadd.f32 %v1651_v36, %v5102_v48  ;;  %2337 = vmatprep.mubr.bf16.mxu0 %v5895_v2  ;;  %v4376_v36 = vld [vmem:[%s5869_s3 + $0x110] ss:$8 sps:$4 sm:$0xff]   ;;  %v4348_v45 = vld [vmem:[%s5869_s3 + $0xb4] ss:$8 sps:$4 sm:$0xff]  }
 0x133   :  { %2450 = vmatprep.mubr.bf16.mxu1 %v5890_v34  ;;  %v1653_v6 = vpop.f32.mrf.mxu0  ;;  %3118 = vmatpush2.bf16.msra.mxu0 %v4334_v44 }
 0x134   :  { %v1766_v12 = vpop.f32.mrf.mxu1  ;;  %v5268_v25 = vadd.f32 %v1764_v39, %v1652_v1  ;;  %v1654_v28 = vadd.f32 %v1653_v6, %v5109_v54  ;;  %3119 = vmatprep.subr.bf16.mxu0 %v4339_v10  ;;  %3223 = vmatpush1.bf16.msra.mxu1 %v4370_v57  ;;  %v4343_v10 = vld [vmem:[%s5869_s3 + $0xc0] ss:$8 sps:$4 sm:$0xff]  }
 0x135   :  { %v1655_v55 = vpop.f32.mrf.mxu0  ;;  %3224 = vmatprep.subr.bf16.mxu1 %v4375_v46 }
 0x136   :  { %v1768_v15 = vpop.f32.mrf.mxu1  ;;  %v5274_v16 = vadd.f32 %v1766_v12, %v1654_v28  ;;  %v1656_v22 = vadd.f32 %v1655_v55, %v5102_v48  ;;  %v4381_v12 = vld [vmem:[%s5869_s3 + $0x104] ss:$8 sps:$4 sm:$0xff]   ;;  %v4346_v28 = vld [vmem:[%s5869_s3 + $0xb0] ss:$8 sps:$4 sm:$0xff]  }
 0x137   :  { %v5280_v5 = vpop.f32.mrf.mxu0  ;;  %3120 = vmatpush2.bf16.msra.mxu0 %v4337_v33 }
 0x138   :  { %v5282_v7 = vpop.f32.mrf.mxu1  ;;  %v5290_v38 = vadd.f32 %v1768_v15, %v1656_v22  ;;  %3121 = vmatprep.subr.bf16.mxu0 %v4342_v50  ;;  %3225 = vmatpush1.bf16.msra.mxu1 %v4373_v49  ;;  %v4379_v50 = vld [vmem:[%s5869_s3 + $0x100] ss:$8 sps:$4 sm:$0xff]   ;;  %v4351_v15 = vld [vmem:[%s5869_s3 + $0xa4] ss:$8 sps:$4 sm:$0xff]  }
 0x139   :  { %v1661_v0 = vpop.f32.mrf.mxu0  ;;  %2338 = vmatmul.mubr.bf16.gmra.mxu0 %v5896_v51  ;;  %3226 = vmatprep.subr.bf16.mxu1 %v4378_v63  ;;  %v5900_v49 = vld [vmem:[#allocation13_spill] sm:$0xff] }
 0x13a   :  { %v1774_v27 = vpop.f32.mrf.mxu1  ;;  %2451 = vmatmul.mubr.bf16.gmra.mxu1 %v5897_v19  ;;  %v1662_v58 = vadd.f32 %v1661_v0, %v5102_v48  ;;  %2347 = vmatprep.mubr.bf16.mxu0 %v5898_v61  ;;  %v4384_v0 = vld [vmem:[%s5869_s3 + $0x1f4] ss:$8 sps:$4 sm:$0xff]   ;;  %v4349_v19 = vld [vmem:[%s5869_s3 + $0xa0] ss:$8 sps:$4 sm:$0xff]  }
 0x13b   :  { %2460 = vmatprep.mubr.bf16.mxu1 %v5890_v34  ;;  %v1663_v44 = vpop.f32.mrf.mxu0  ;;  %3122 = vmatpush2.bf16.msra.mxu0 %v4340_v21  ;;  %v5899_v21 = vld [vmem:[#allocation12_spill] sm:$0xff] }
 0x13c   :  { %v1776_v56 = vpop.f32.mrf.mxu1  ;;  %v5309_v39 = vadd.f32 %v1774_v27, %v1662_v58  ;;  %v1664_v43 = vadd.f32 %v1663_v44, %v5109_v54  ;;  %3123 = vmatprep.subr.bf16.mxu0 %v4345_v42  ;;  %3227 = vmatpush1.bf16.msra.mxu1 %v4376_v36  ;;  %v4382_v58 = vld [vmem:[%s5869_s3 + $0x1f0] ss:$8 sps:$4 sm:$0xff]   ;;  %v4387_v36 = vld [vmem:[%s5869_s3 + $0x1e4] ss:$8 sps:$4 sm:$0xff]  }
 0x13d   :  { %v1665_v1 = vpop.f32.mrf.mxu0  ;;  %3228 = vmatprep.subr.bf16.mxu1 %v4381_v12  ;;  %v4357_v12 = vld [vmem:[%s5869_s3 + $0x84] ss:$8 sps:$4 sm:$0xff]  }
 0x13e   :  { %v1778_v2 = vpop.f32.mrf.mxu1  ;;  %v5315_v4 = vadd.f32 %v1776_v56, %v1664_v43  ;;  %v1666_v6 = vadd.f32 %v1665_v1, %v5102_v48  ;;  %v4352_v1 = vld [vmem:[%s5869_s3 + $0x90] ss:$8 sps:$4 sm:$0xff]  }
 0x13f   :  { %v5321_v33 = vpop.f32.mrf.mxu0  ;;  %3124 = vmatpush2.bf16.msra.mxu0 %v4343_v10 }
 0x140   :  { %v5323_v57 = vpop.f32.mrf.mxu1  ;;  %v5331_v55 = vadd.f32 %v1778_v2, %v1666_v6  ;;  %3125 = vmatprep.subr.bf16.mxu0 %v4348_v45  ;;  %3229 = vmatpush1.bf16.msra.mxu1 %v4379_v50  ;;  %v4385_v2 = vld [vmem:[%s5869_s3 + $0x1e0] ss:$8 sps:$4 sm:$0xff]  }
 0x141   :  { %v1671_v22 = vpop.f32.mrf.mxu0  ;;  %2348 = vmatmul.mubr.bf16.gmra.mxu0 %v5899_v21  ;;  %3230 = vmatprep.subr.bf16.mxu1 %v4384_v0 }
 0x142   :  { %v1784_v46 = vpop.f32.mrf.mxu1  ;;  %2461 = vmatmul.mubr.bf16.gmra.mxu1 %v5900_v49  ;;  %v1672_v42 = vadd.f32 %v1671_v22, %v5102_v48  ;;  %2357 = vmatprep.mubr.bf16.mxu0 %v5031_v32  ;;  %v4354_v32 = vld [vmem:[%s5869_s3 + $0x94] ss:$8 sps:$4 sm:$0xff]   ;;  %v4355_v49 = vld [vmem:[%s5869_s3 + $0x80] ss:$8 sps:$4 sm:$0xff]  }
 0x143   :  { %2470 = vmatprep.mubr.bf16.mxu1 %v5890_v34  ;;  %v1673_v27 = vpop.f32.mrf.mxu0  ;;  %3126 = vmatpush2.bf16.msra.mxu0 %v4346_v28  ;;  %v4390_v22 = vld [vmem:[%s5869_s3 + $0x1d4] ss:$8 sps:$4 sm:$0xff]  }
 0x144   :  { %v1786_v51 = vpop.f32.mrf.mxu1  ;;  %v5350_v61 = vadd.f32 %v1784_v46, %v1672_v42  ;;  %v1674_v34 = vadd.f32 %v1673_v27, %v5109_v54  ;;  %3127 = vmatprep.subr.bf16.mxu0 %v4351_v15  ;;  %3231 = vmatpush2.bf16.msra.mxu1 %v4382_v58  ;;  %v4393_v58 = vld [vmem:[%s5869_s3 + $0x1c4] ss:$8 sps:$4 sm:$0xff]  }
 0x145   :  { %v1675_v63 = vpop.f32.mrf.mxu0  ;;  %3232 = vmatprep.subr.bf16.mxu1 %v4387_v36 }
 0x146   :  { %v1788_v44 = vpop.f32.mrf.mxu1  ;;  %v5356_v56 = vadd.f32 %v1786_v51, %v1674_v34  ;;  %v1676_v10 = vadd.f32 %v1675_v63, %v5102_v48  ;;  %v4391_v63 = vld [vmem:[%s5869_s3 + $0x1c0] ss:$8 sps:$4 sm:$0xff]  }
 0x147   :  { %v5362_v43 = vpop.f32.mrf.mxu0  ;;  %3128 = vmatpush2.bf16.msra.mxu0 %v4349_v19 }
 0x148   :  { %v5364_v45 = vpop.f32.mrf.mxu1  ;;  %v5372_v6 = vadd.f32 %v1788_v44, %v1676_v10  ;;  %3129 = vmatprep.subr.bf16.mxu0 %v4354_v32  ;;  %3233 = vmatpush2.bf16.msra.mxu1 %v4385_v2  ;;  %v1618_v2 = vadd.f32 %v5131_v37, %v5109_v54 }
 0x149   :  { %v1681_v28 = vpop.f32.mrf.mxu0  ;;  %2358 = vmatmul.mubr.bf16.gmra.mxu0 %v5049_v11  ;;  %v4388_v11 = vld [vmem:[%s5869_s3 + $0x1d0] ss:$8 sps:$4 sm:$0xff]   ;;  %3234 = vmatprep.subr.bf16.mxu1 %v4390_v22 }
 0x14a   :  { %v1794_v50 = vpop.f32.mrf.mxu1  ;;  %2471 = vmatmul.mubr.bf16.gmra.mxu1 %v5051_v23  ;;  %v1682_v15 = vadd.f32 %v1681_v28, %v5102_v48  ;;  %v1731_v37 = vadd.f32 %v5133_v8, %v1618_v2  ;;  %v4402_v8 = vld [vmem:[%s5869_s3 + $0x194] ss:$8 sps:$4 sm:$0xff]  }
 0x14b   :  { %v1683_v46 = vpop.f32.mrf.mxu0  ;;  %3130 = vmatpush2.bf16.msra.mxu0 %v4352_v1  ;;  %v4396_v1 = vld [vmem:[%s5869_s3 + $0x1b4] ss:$8 sps:$4 sm:$0xff]  }
 0x14c   :  { %v1796_v21 = vpop.f32.mrf.mxu1  ;;  %v5389_v42 = vadd.f32 %v1794_v50, %v1682_v15  ;;  %v1684_v23 = vadd.f32 %v1683_v46, %v5109_v54  ;;  %3131 = vmatprep.subr.bf16.mxu0 %v4357_v12  ;;  %3235 = vmatpush2.bf16.msra.mxu1 %v4388_v11  ;;  %v4394_v50 = vld [vmem:[%s5869_s3 + $0x1b0] ss:$8 sps:$4 sm:$0xff]  }
 0x14d   :  { %v1685_v0 = vpop.f32.mrf.mxu0  ;;  %3236 = vmatprep.subr.bf16.mxu1 %v4393_v58 }
 0x14e   :  { %v1798_v27 = vpop.f32.mrf.mxu1  ;;  %v5392_v51 = vadd.f32 %v1796_v21, %v1684_v23  ;;  %v1686_v19 = vadd.f32 %v1685_v0, %v5102_v48 }
 0x14f   :  { %v5398_v34 = vpop.f32.mrf.mxu0  ;;  %3132 = vmatpush2.bf16.msra.mxu0 %v4355_v49  ;;  %v4399_v49 = vld [vmem:[%s5869_s3 + $0x1a4] ss:$8 sps:$4 sm:$0xff]  }
 0x150   :  { %v5400_v32 = vpop.f32.mrf.mxu1  ;;  %v5405_v44 = vadd.f32 %v1798_v27, %v1686_v19  ;;  %3237 = vmatpush2.bf16.msra.mxu1 %v4391_v63  ;;  %v4397_v27 = vld [vmem:[%s5869_s3 + $0x1a0] ss:$8 sps:$4 sm:$0xff]  }
 0x151   :  { %v1837_v10 = vpop.f32.mrf.mxu0  ;;  %3238 = vmatprep.subr.bf16.mxu1 %v4396_v1 }
 0x152   :  { %v1950_v36 = vpop.f32.mrf.mxu1  ;;  %v1838_v48 = vadd.f32 %v1837_v10, %v5122_v24 }
 0x153   :  { %v1839_v12 = vpop.f32.mrf.mxu0 }
 0x154   :  { %v1952_v28 = vpop.f32.mrf.mxu1  ;;  %v1951_v15 = vadd.f32 %v1950_v36, %v1838_v48  ;;  %v1840_v22 = vadd.f32 %v1839_v12, %v5128_v35  ;;  %3239 = vmatpush2.bf16.msra.mxu1 %v4394_v50  ;;  %v1628_v48 = vadd.f32 %v5160_v18, %v5109_v54  ;;  %v4400_v50 = vld [vmem:[%s5869_s3 + $0x190] ss:$8 sps:$4 sm:$0xff]  }
 0x155   :  { %v1841_v46 = vpop.f32.mrf.mxu0  ;;  %3240 = vmatprep.subr.bf16.mxu1 %v4399_v49 }
 0x156   :  { %v1954_v24 = vpop.f32.mrf.mxu1  ;;  %v1842_v21 = vadd.f32 %v1841_v46, %v5138_v40  ;;  %v2545_v11 = vmul.f32 0.2, %v1951_v15  ;;  %vm2481_vm0 = vcmp.gt.f32.partialorder %v1951_v15, 0.0  ;;  %v1953_v35 = vadd.f32 %v1952_v28, %v1840_v22 }
 0x157   :  { %v1843_v23 = vpop.f32.mrf.mxu0 }
 0x158   :  { %v1956_v0 = vpop.f32.mrf.mxu1  ;;  %v1955_v19 = vadd.f32 %v1954_v24, %v1842_v21  ;;  %v1844_v58 = vadd.f32 %v1843_v23, %v1731_v37  ;;  %v2609_v1 = vsel %vm2481_vm0, %v1951_v15, %v2545_v11  ;;  %3241 = vmatpush2.bf16.msra.mxu1 %v4397_v27  ;;  %v2546_v22 = vmul.f32 0.2, %v1953_v35  ;;  %v4405_v11 = vld [vmem:[%s5869_s3 + $0x184] ss:$8 sps:$4 sm:$0xff]  }
 0x159   :  { %v1847_v40 = vpop.f32.mrf.mxu0  ;;  %3242 = vmatprep.subr.bf16.mxu1 %v4402_v8  ;;  %vm2482_vm2 = vcmp.gt.f32.partialorder %v1953_v35, 0.0  ;;  %v1741_v23 = vadd.f32 %v5162_v20, %v1628_v48 }
 0x15a   :  { %v1960_v63 = vpop.f32.mrf.mxu1  ;;  %vm2485_vm1 = vcmp.gt.f32.partialorder %v1955_v19, 0.0  ;;  %v2549_v10 = vmul.f32 0.2, %v1955_v19  ;;  %v1848_v36 = vadd.f32 %v1847_v40, %v5151_v31  ;;  %v1957_v2 = vadd.f32 %v1956_v0, %v1844_v58 }
 0x15b   :  { %v1849_v12 = vpop.f32.mrf.mxu0 }
 0x15c   :  { %v1962_v28 = vpop.f32.mrf.mxu1  ;;  %v2613_v46 = vsel %vm2485_vm1, %v1955_v19, %v2549_v10  ;;  %v1961_v24 = vadd.f32 %v1960_v63, %v1848_v36  ;;  %v1850_v31 = vadd.f32 %v1849_v12, %v5157_v13  ;;  %vm2486_vm3 = vcmp.gt.f32.partialorder %v1957_v2, 0.0  ;;  %3243 = vmatpush2.bf16.msra.mxu1 %v4400_v50  ;;  %v4403_v13 = vld [vmem:[%s5869_s3 + $0x180] ss:$8 sps:$4 sm:$0xff]  }
 0x15d   :  { %v2673_v21 = vpack.c.bf16 %v2613_v46, %v2609_v1  ;;  %v2550_v49 = vmul.f32 0.2, %v1957_v2  ;;  %v1851_v18 = vpop.f32.mrf.mxu0  ;;  %3244 = vmatprep.subr.bf16.mxu1 %v4405_v11 }
 0x15e   :  { %v1964_v15 = vpop.f32.mrf.mxu1  ;;  %v1852_v37 = vadd.f32 %v1851_v18, %v5167_v62  ;;  %v2553_v0 = vmul.f32 0.2, %v1961_v24  ;;  %vm2489_vm4 = vcmp.gt.f32.partialorder %v1961_v24, 0.0  ;;  %v1963_v40 = vadd.f32 %v1962_v28, %v1850_v31 }
 0x15f   :  { %v1853_v27 = vpop.f32.mrf.mxu0  ;;  %v2614_v58 = vsel %vm2486_vm3, %v1957_v2, %v2550_v49  ;;  %v2610_v62 = vsel %vm2482_vm2, %v1953_v35, %v2546_v22  ;;  %v1638_v2 = vadd.f32 %v5198_v29, %v5109_v54 }
 0x160   :  { %v1966_v19 = vpop.f32.mrf.mxu1  ;;  %v1965_v63 = vadd.f32 %v1964_v15, %v1852_v37  ;;  %v1854_v10 = vadd.f32 %v1853_v27, %v1741_v23  ;;  %v2674_v1 = vpack.c.bf16 %v2614_v58, %v2610_v62  ;;  %v2617_v12 = vsel %vm2489_vm4, %v1961_v24, %v2553_v0  ;;  %3245 = vmatpush2.bf16.msra.mxu1 %v4403_v13 }
 0x161   :  { %v1857_v36 = vpop.f32.mrf.mxu0  ;;  %v2554_v31 = vmul.f32 0.2, %v1963_v40  ;;  %vm2490_vm6 = vcmp.gt.f32.partialorder %v1963_v40, 0.0  ;;  %v1751_v24 = vadd.f32 %v5200_v9, %v1638_v2 }
 0x162   :  { %v1970_v8 = vpop.f32.mrf.mxu1  ;;  %vm2493_vm5 = vcmp.gt.f32.partialorder %v1965_v63, 0.0  ;;  %v2557_v20 = vmul.f32 0.2, %v1965_v63  ;;  %v1858_v48 = vadd.f32 %v1857_v36, %v5186_v17  ;;  %v1967_v50 = vadd.f32 %v1966_v19, %v1854_v10  ;;  %3133 = vmatprep.mubr.bf16.mxu0 %v2674_v1 }
 0x163   :  { %v1859_v46 = vpop.f32.mrf.mxu0  ;;  %3134 = vmatmul.mubr.bf16.vlgmr.msra.gmra.mxu0 %v2673_v21  ;;  %v2618_v21 = vsel %vm2490_vm6, %v1963_v40, %v2554_v31 }
 0x164   :  { %v1972_v28 = vpop.f32.mrf.mxu1  ;;  %v2621_v35 = vsel %vm2493_vm5, %v1965_v63, %v2557_v20  ;;  %v1971_v22 = vadd.f32 %v1970_v8, %v1858_v48  ;;  %v1860_v49 = vadd.f32 %v1859_v46, %v5192_v30  ;;  %vm2494_vm7 = vcmp.gt.f32.partialorder %v1967_v50, 0.0 }
 0x165   :  { %v2677_v18 = vpack.c.bf16 %v2621_v35, %v2617_v12  ;;  %v2558_v15 = vmul.f32 0.2, %v1967_v50  ;;  %v1861_v17 = vpop.f32.mrf.mxu0 }
 0x166   :  { %v1974_v37 = vpop.f32.mrf.mxu1  ;;  %v1862_v29 = vadd.f32 %v1861_v17, %v5208_v52  ;;  %v2561_v11 = vmul.f32 0.2, %v1971_v22  ;;  %vm2497_vm8 = vcmp.gt.f32.partialorder %v1971_v22, 0.0  ;;  %v1973_v19 = vadd.f32 %v1972_v28, %v1860_v49 }
 0x167   :  { %v1863_v23 = vpop.f32.mrf.mxu0  ;;  %v2622_v27 = vsel %vm2494_vm7, %v1967_v50, %v2558_v15  ;;  %v1648_v52 = vadd.f32 %v5239_v60, %v5109_v54 }
 0x168   :  { %v1976_v0 = vpop.f32.mrf.mxu1  ;;  %v1975_v58 = vadd.f32 %v1974_v37, %v1862_v29  ;;  %v1864_v13 = vadd.f32 %v1863_v23, %v1751_v24  ;;  %v2678_v62 = vpack.c.bf16 %v2622_v27, %v2618_v21  ;;  %v2625_v9 = vsel %vm2497_vm8, %v1971_v22, %v2561_v11 }
 0x169   :  { %v1867_v30 = vpop.f32.mrf.mxu0  ;;  %v2562_v48 = vmul.f32 0.2, %v1973_v19  ;;  %vm2498_vm10 = vcmp.gt.f32.partialorder %v1973_v19, 0.0  ;;  %v1761_v60 = vadd.f32 %v5241_v41, %v1648_v52 }
 0x16a   :  { %v1980_v63 = vpop.f32.mrf.mxu1  ;;  %vm2501_vm9 = vcmp.gt.f32.partialorder %v1975_v58, 0.0  ;;  %v2565_v10 = vmul.f32 0.2, %v1975_v58  ;;  %v1868_v36 = vadd.f32 %v1867_v30, %v5227_v3  ;;  %v1977_v8 = vadd.f32 %v1976_v0, %v1864_v13  ;;  %3143 = vmatprep.mubr.bf16.mxu0 %v2678_v62 }
 0x16b   :  { %v1869_v1 = vpop.f32.mrf.mxu0  ;;  %3144 = vmatmul.mubr.bf16.gmra.mxu0 %v2677_v18  ;;  %v2626_v18 = vsel %vm2498_vm10, %v1973_v19, %v2562_v48 }
 0x16c   :  { %v1982_v20 = vpop.f32.mrf.mxu1  ;;  %v2629_v2 = vsel %vm2501_vm9, %v1975_v58, %v2565_v10  ;;  %v1981_v12 = vadd.f32 %v1980_v63, %v1868_v36  ;;  %v1870_v40 = vadd.f32 %v1869_v1, %v5233_v59  ;;  %vm2502_vm11 = vcmp.gt.f32.partialorder %v1977_v8, 0.0 }
 0x16d   :  { %v2681_v50 = vpack.c.bf16 %v2629_v2, %v2625_v9  ;;  %v2566_v46 = vmul.f32 0.2, %v1977_v8  ;;  %v1871_v28 = vpop.f32.mrf.mxu0 }
 0x16e   :  { %v1984_v3 = vpop.f32.mrf.mxu1  ;;  %v1872_v31 = vadd.f32 %v1871_v28, %v5249_v14  ;;  %v2569_v35 = vmul.f32 0.2, %v1981_v12  ;;  %vm2505_vm12 = vcmp.gt.f32.partialorder %v1981_v12, 0.0  ;;  %v1983_v17 = vadd.f32 %v1982_v20, %v1870_v40 }
 0x16f   :  { %v1873_v22 = vpop.f32.mrf.mxu0  ;;  %v2630_v15 = vsel %vm2502_vm11, %v1977_v8, %v2566_v46  ;;  %v1658_v14 = vadd.f32 %v5280_v5, %v5109_v54 }
 0x170   :  { %v1986_v49 = vpop.f32.mrf.mxu1  ;;  %v1985_v37 = vadd.f32 %v1984_v3, %v1872_v31  ;;  %v1874_v29 = vadd.f32 %v1873_v22, %v1761_v60  ;;  %v2682_v11 = vpack.c.bf16 %v2630_v15, %v2626_v18  ;;  %v2633_v41 = vsel %vm2505_vm12, %v1981_v12, %v2569_v35 }
 0x171   :  { %v1877_v59 = vpop.f32.mrf.mxu0  ;;  %v2570_v13 = vmul.f32 0.2, %v1983_v17  ;;  %vm2506_vm14 = vcmp.gt.f32.partialorder %v1983_v17, 0.0  ;;  %v1771_v5 = vadd.f32 %v5282_v7, %v1658_v14 }
 0x172   :  { %v1990_v24 = vpop.f32.mrf.mxu1  ;;  %vm2509_vm13 = vcmp.gt.f32.partialorder %v1985_v37, 0.0  ;;  %v2573_v23 = vmul.f32 0.2, %v1985_v37  ;;  %v1878_v0 = vadd.f32 %v1877_v59, %v5268_v25  ;;  %v1987_v27 = vadd.f32 %v1986_v49, %v1874_v29  ;;  %3153 = vmatprep.mubr.bf16.mxu0 %v2682_v11 }
 0x173   :  { %v1879_v58 = vpop.f32.mrf.mxu0  ;;  %3154 = vmatmul.mubr.bf16.gmra.mxu0 %v2681_v50  ;;  %v2634_v12 = vsel %vm2506_vm14, %v1983_v17, %v2570_v13 }
 0x174   :  { %v1992_v21 = vpop.f32.mrf.mxu1  ;;  %v2637_v30 = vsel %vm2509_vm13, %v1985_v37, %v2573_v23  ;;  %v1991_v63 = vadd.f32 %v1990_v24, %v1878_v0  ;;  %v1880_v19 = vadd.f32 %v1879_v58, %v5274_v16  ;;  %vm2510_vm15 = vcmp.gt.f32.partialorder %v1987_v27, 0.0 }
 0x175   :  { %v2685_v62 = vpack.c.bf16 %v2637_v30, %v2633_v41  ;;  %v2574_v10 = vmul.f32 0.2, %v1987_v27  ;;  %v1881_v36 = vpop.f32.mrf.mxu0 }
 0x176   :  { %v1994_v25 = vpop.f32.mrf.mxu1  ;;  %v1882_v52 = vadd.f32 %v1881_v36, %v5290_v38  ;;  %v2577_v9 = vmul.f32 0.2, %v1991_v63  ;;  %vm2513_vm0 = vcmp.gt.f32.partialorder %v1991_v63, 0.0  ;;  %v1993_v48 = vadd.f32 %v1992_v21, %v1880_v19 }
 0x177   :  { %v1883_v8 = vpop.f32.mrf.mxu0  ;;  %v2638_v20 = vsel %vm2510_vm15, %v1987_v27, %v2574_v10  ;;  %v1668_v38 = vadd.f32 %v5321_v33, %v5109_v54 }
 0x178   :  { %v1996_v1 = vpop.f32.mrf.mxu1  ;;  %v1995_v2 = vadd.f32 %v1994_v25, %v1882_v52  ;;  %v1884_v40 = vadd.f32 %v1883_v8, %v1771_v5  ;;  %v2686_v46 = vpack.c.bf16 %v2638_v20, %v2634_v12  ;;  %v2641_v7 = vsel %vm2513_vm0, %v1991_v63, %v2577_v9 }
 0x179   :  { %v1887_v16 = vpop.f32.mrf.mxu0  ;;  %v2578_v22 = vmul.f32 0.2, %v1993_v48  ;;  %vm2514_vm2 = vcmp.gt.f32.partialorder %v1993_v48, 0.0  ;;  %v1781_v33 = vadd.f32 %v5323_v57, %v1668_v38 }
 0x17a   :  { %v2000_v50 = vpop.f32.mrf.mxu1  ;;  %vm2517_vm1 = vcmp.gt.f32.partialorder %v1995_v2, 0.0  ;;  %v2581_v28 = vmul.f32 0.2, %v1995_v2  ;;  %v1888_v3 = vadd.f32 %v1887_v16, %v5309_v39  ;;  %v1997_v31 = vadd.f32 %v1996_v1, %v1884_v40  ;;  %3163 = vmatprep.mubr.bf16.mxu0 %v2686_v46 }
 0x17b   :  { %v1889_v60 = vpop.f32.mrf.mxu0  ;;  %3164 = vmatmul.mubr.bf16.gmra.mxu0 %v2685_v62  ;;  %v2642_v27 = vsel %vm2514_vm2, %v1993_v48, %v2578_v22 }
 0x17c   :  { %v2002_v35 = vpop.f32.mrf.mxu1  ;;  %v2645_v49 = vsel %vm2517_vm1, %v1995_v2, %v2581_v28  ;;  %v2001_v15 = vadd.f32 %v2000_v50, %v1888_v3  ;;  %v1890_v17 = vadd.f32 %v1889_v60, %v5315_v4  ;;  %vm2518_vm3 = vcmp.gt.f32.partialorder %v1997_v31, 0.0 }
 0x17d   :  { %v2689_v37 = vpack.c.bf16 %v2645_v49, %v2641_v7  ;;  %v2582_v18 = vmul.f32 0.2, %v1997_v31  ;;  %v1891_v29 = vpop.f32.mrf.mxu0 }
 0x17e   :  { %v2004_v39 = vpop.f32.mrf.mxu1  ;;  %v1892_v59 = vadd.f32 %v1891_v29, %v5331_v55  ;;  %v2585_v24 = vmul.f32 0.2, %v2001_v15  ;;  %vm2521_vm4 = vcmp.gt.f32.partialorder %v2001_v15, 0.0  ;;  %v2003_v14 = vadd.f32 %v2002_v35, %v1890_v17 }
 0x17f   :  { %v1893_v11 = vpop.f32.mrf.mxu0  ;;  %v2646_v0 = vsel %vm2518_vm3, %v1997_v31, %v2582_v18  ;;  %v1678_v55 = vadd.f32 %v5362_v43, %v5109_v54 }
 0x180   :  { %v2006_v23 = vpop.f32.mrf.mxu1  ;;  %v2005_v41 = vadd.f32 %v2004_v39, %v1892_v59  ;;  %v1894_v58 = vadd.f32 %v1893_v11, %v1781_v33  ;;  %v2690_v13 = vpack.c.bf16 %v2646_v0, %v2642_v27  ;;  %v2649_v57 = vsel %vm2521_vm4, %v2001_v15, %v2585_v24 }
 0x181   :  { %v1897_v4 = vpop.f32.mrf.mxu0  ;;  %v2586_v36 = vmul.f32 0.2, %v2003_v14  ;;  %vm2522_vm6 = vcmp.gt.f32.partialorder %v2003_v14, 0.0  ;;  %v1791_v43 = vadd.f32 %v5364_v45, %v1678_v55  ;;  %v1688_v45 = vadd.f32 %v5398_v34, %v5109_v54  ;;  %v4470_v34 = vld [vmem:[%s5868_s2] sm:$0xf] }
 0x182   :  { %v2010_v21 = vpop.f32.mrf.mxu1  ;;  %vm2525_vm5 = vcmp.gt.f32.partialorder %v2005_v41, 0.0  ;;  %v2589_v30 = vmul.f32 0.2, %v2005_v41  ;;  %v1898_v63 = vadd.f32 %v1897_v4, %v5350_v61  ;;  %v2007_v19 = vadd.f32 %v2006_v23, %v1894_v58  ;;  %3173 = vmatprep.mubr.bf16.mxu0 %v2690_v13 }
 0x183   :  { %v1899_v62 = vpop.f32.mrf.mxu0  ;;  %3174 = vmatmul.mubr.bf16.gmra.mxu0 %v2689_v37  ;;  %v2650_v46 = vsel %vm2522_vm6, %v2003_v14, %v2586_v36  ;;  %v451_v15 = vsub.s32 3, %v5085_v53  ;;  %v1801_v11 = vadd.f32 %v5400_v32, %v1688_v45 }
 0x184   :  { %v2012_v10 = vpop.f32.mrf.mxu1  ;;  %v2653_v25 = vsel %vm2525_vm5, %v2005_v41, %v2589_v30  ;;  %v2011_v52 = vadd.f32 %v2010_v21, %v1898_v63  ;;  %v1900_v5 = vadd.f32 %v1899_v62, %v5356_v56  ;;  %vm2526_vm7 = vcmp.gt.f32.partialorder %v2007_v19, 0.0 }
 0x185   :  { %v2693_v9 = vpack.c.bf16 %v2653_v25, %v2649_v57  ;;  %v2590_v8 = vmul.f32 0.2, %v2007_v19  ;;  %v1901_v1 = vpop.f32.mrf.mxu0 }
 0x186   :  { %v2014_v61 = vpop.f32.mrf.mxu1  ;;  %v1902_v20 = vadd.f32 %v1901_v1, %v5372_v6  ;;  %v2593_v48 = vmul.f32 0.2, %v2011_v52  ;;  %vm2529_vm8 = vcmp.gt.f32.partialorder %v2011_v52, 0.0  ;;  %v2013_v16 = vadd.f32 %v2012_v10, %v1900_v5 }
 0x187   :  { %v1903_v2 = vpop.f32.mrf.mxu0  ;;  %v2654_v40 = vsel %vm2526_vm7, %v2007_v19, %v2590_v8  ;;  %v447_v6 = vsub.s32 2, %v5085_v53 }
 0x188   :  { %v2016_v12 = vpop.f32.mrf.mxu1  ;;  %v2015_v50 = vadd.f32 %v2014_v61, %v1902_v20  ;;  %v1904_v28 = vadd.f32 %v1903_v2, %v1791_v43  ;;  %v2694_v38 = vpack.c.bf16 %v2654_v40, %v2650_v46  ;;  %v2657_v60 = vsel %vm2529_vm8, %v2011_v52, %v2593_v48 }
 0x189   :  { %v1907_v56 = vpop.f32.mrf.mxu0  ;;  %v2594_v17 = vmul.f32 0.2, %v2013_v16  ;;  %vm2530_vm10 = vcmp.gt.f32.partialorder %v2013_v16, 0.0  ;;  %v5486_v24 = vrot.slane %v4470_v34, %v447_v6 }
 0x18a   :  { %v2020_v3 = vpop.f32.mrf.mxu1  ;;  %vm2533_vm9 = vcmp.gt.f32.partialorder %v2015_v50, 0.0  ;;  %v2597_v7 = vmul.f32 0.2, %v2015_v50  ;;  %v1908_v31 = vadd.f32 %v1907_v56, %v5389_v42  ;;  %v2017_v35 = vadd.f32 %v2016_v12, %v1904_v28  ;;  %3183 = vmatprep.mubr.bf16.mxu0 %v2694_v38 }
 0x18b   :  { %v1909_v22 = vpop.f32.mrf.mxu0  ;;  %3184 = vmatmul.mubr.bf16.gmra.mxu0 %v2693_v9  ;;  %v2658_v58 = vsel %vm2530_vm10, %v2013_v16, %v2594_v17 }
 0x18c   :  { %v2022_v49 = vpop.f32.mrf.mxu1  ;;  %v2661_v37 = vsel %vm2533_vm9, %v2015_v50, %v2597_v7  ;;  %v2021_v18 = vadd.f32 %v2020_v3, %v1908_v31  ;;  %v1910_v29 = vadd.f32 %v1909_v22, %v5392_v51  ;;  %vm2534_vm11 = vcmp.gt.f32.partialorder %v2017_v35, 0.0 }
 0x18d   :  { %v2697_v42 = vpack.c.bf16 %v2661_v37, %v2657_v60  ;;  %v2598_v39 = vmul.f32 0.2, %v2017_v35  ;;  %v1911_v59 = vpop.f32.mrf.mxu0 }
 0x18e   :  { %v2024_v33 = vpop.f32.mrf.mxu1  ;;  %v1912_v54 = vadd.f32 %v1911_v59, %v5405_v44  ;;  %v2601_v23 = vmul.f32 0.2, %v2021_v18  ;;  %v2023_v51 = vadd.f32 %v2022_v49, %v1910_v29  ;;  %vm2537_vm12 = vcmp.gt.f32.partialorder %v2021_v18, 0.0 }
 0x18f   :  { %v1913_v0 = vpop.f32.mrf.mxu0  ;;  %v2662_v41 = vsel %vm2534_vm11, %v2017_v35, %v2598_v39  ;;  %v5490_v44 = vrot.slane %v4470_v34, %v451_v15 }
 0x190   :  { %v2026_v14 = vpop.f32.mrf.mxu1  ;;  %v2025_v27 = vadd.f32 %v2024_v33, %v1912_v54  ;;  %v1914_v4 = vadd.f32 %v1913_v0, %v1801_v11  ;;  %v2698_v30 = vpack.c.bf16 %v2662_v41, %v2658_v58  ;;  %v2665_v32 = vsel %vm2537_vm12, %v2021_v18, %v2601_v23 }
 0x191   :  { %v2063_v21 = vpop.f32.mrf.mxu0  ;;  %v2602_v57 = vmul.f32 0.2, %v2023_v51  ;;  %vm2538_vm14 = vcmp.gt.f32.partialorder %v2023_v51, 0.0 }
 0x192   :  { %v2176_v13 = vpop.f32.mrf.mxu1  ;;  %vm2541_vm13 = vcmp.gt.f32.partialorder %v2025_v27, 0.0  ;;  %v2605_v63 = vmul.f32 0.2, %v2025_v27  ;;  %v2064_v55 = vadd.f32 %v2063_v21, %v5486_v24  ;;  %v2027_v19 = vadd.f32 %v2026_v14, %v1914_v4  ;;  %3193 = vmatprep.mubr.bf16.mxu0 %v2698_v30 }
 0x193   :  { %v2065_v62 = vpop.f32.mrf.mxu0  ;;  %3194 = vmatmul.mubr.bf16.gmra.mxu0 %v2697_v42  ;;  %v2666_v2 = vsel %vm2538_vm14, %v2023_v51, %v2602_v57 }
 0x194   :  { %v2178_v10 = vpop.f32.mrf.mxu1  ;;  %v2669_v36 = vsel %vm2541_vm13, %v2025_v27, %v2605_v63  ;;  %v5493_v25 = vadd.f32 %v2176_v13, %v2064_v55  ;;  %v2066_v52 = vadd.f32 %v2065_v62, %v5490_v44  ;;  %vm2542_vm15 = vcmp.gt.f32.partialorder %v2027_v19, 0.0 }
 0x195   :  { %v2701_v5 = vpack.c.bf16 %v2669_v36, %v2665_v32  ;;  %v2606_v9 = vmul.f32 0.2, %v2027_v19  ;;  %v2067_v8 = vpop.f32.mrf.mxu0 }
 0x196   :  { %v2180_v1 = vpop.f32.mrf.mxu1  ;;  %v5496_v61 = vadd.f32 %v2178_v10, %v2066_v52  ;;  %v2068_v20 = vadd.f32 %v2067_v8, %v5486_v24 }
 0x197   :  { %v5499_v43 = vpop.f32.mrf.mxu0  ;;  %v2670_v12 = vsel %vm2542_vm15, %v2027_v19, %v2606_v9 }
 0x198   :  { %v5501_v48 = vpop.f32.mrf.mxu1  ;;  %v5503_v40 = vadd.f32 %v2180_v1, %v2068_v20  ;;  %v2702_v16 = vpack.c.bf16 %v2670_v12, %v2666_v2 }
 0x199   :  { %v2073_v50 = vpop.f32.mrf.mxu0 }
 0x19a   :  { %v2186_v46 = vpop.f32.mrf.mxu1  ;;  %v2074_v28 = vadd.f32 %v2073_v50, %v5486_v24  ;;  %3203 = vmatprep.mubr.bf16.mxu0 %v2702_v16 }
 0x19b   :  { %v2075_v56 = vpop.f32.mrf.mxu0  ;;  %3204 = vmatmul.mubr.bf16.gmra.mxu0 %v2701_v5 }
 0x19c   :  { %v2188_v3 = vpop.f32.mrf.mxu1  ;;  %v5506_v38 = vadd.f32 %v2186_v46, %v2074_v28  ;;  %v2076_v7 = vadd.f32 %v2075_v56, %v5490_v44 }
 0x19d   :  { %v2077_v31 = vpop.f32.mrf.mxu0 }
 0x19e   :  { %v2190_v45 = vpop.f32.mrf.mxu1  ;;  %v5509_v60 = vadd.f32 %v2188_v3, %v2076_v7  ;;  %v2078_v35 = vadd.f32 %v2077_v31, %v5486_v24 }
 0x19f   :  { %v5512_v22 = vpop.f32.mrf.mxu0 }
 0x1a0   :  { %v5514_v49 = vpop.f32.mrf.mxu1  ;;  %v5516_v15 = vadd.f32 %v2190_v45, %v2078_v35 }
 0x1a1   :  { %v2083_v17 = vpop.f32.mrf.mxu0 }
 0x1a2   :  { %v2196_v37 = vpop.f32.mrf.mxu1  ;;  %v2084_v18 = vadd.f32 %v2083_v17, %v5486_v24 }
 0x1a3   :  { %v2085_v29 = vpop.f32.mrf.mxu0 }
 0x1a4   :  { %v2198_v42 = vpop.f32.mrf.mxu1  ;;  %v5519_v39 = vadd.f32 %v2196_v37, %v2084_v18  ;;  %v2086_v59 = vadd.f32 %v2085_v29, %v5490_v44 }
 0x1a5   :  { %v2087_v33 = vpop.f32.mrf.mxu0 }
 0x1a6   :  { %v2200_v54 = vpop.f32.mrf.mxu1  ;;  %v5522_v34 = vadd.f32 %v2198_v42, %v2086_v59  ;;  %v2088_v11 = vadd.f32 %v2087_v33, %v5486_v24 }
 0x1a7   :  { %v5525_v23 = vpop.f32.mrf.mxu0 }
 0x1a8   :  { %v5527_v51 = vpop.f32.mrf.mxu1  ;;  %v5529_v0 = vadd.f32 %v2200_v54, %v2088_v11 }
 0x1a9   :  { %v2093_v14 = vpop.f32.mrf.mxu0 }
 0x1aa   :  { %v2206_v41 = vpop.f32.mrf.mxu1  ;;  %v2094_v27 = vadd.f32 %v2093_v14, %v5486_v24 }
 0x1ab   :  { %v2095_v58 = vpop.f32.mrf.mxu0 }
 0x1ac   :  { %v2208_v4 = vpop.f32.mrf.mxu1  ;;  %v5532_v21 = vadd.f32 %v2206_v41, %v2094_v27  ;;  %v2096_v13 = vadd.f32 %v2095_v58, %v5490_v44 }
 0x1ad   :  { %v2097_v30 = vpop.f32.mrf.mxu0 }
 0x1ae   :  { %v2210_v63 = vpop.f32.mrf.mxu1  ;;  %v5535_v55 = vadd.f32 %v2208_v4, %v2096_v13  ;;  %v2098_v32 = vadd.f32 %v2097_v30, %v5486_v24 }
 0x1af   :  { %v5538_v57 = vpop.f32.mrf.mxu0 }
 0x1b0   :  { %v5540_v19 = vpop.f32.mrf.mxu1  ;;  %v5542_v62 = vadd.f32 %v2210_v63, %v2098_v32 }
 0x1b1   :  { %v2103_v10 = vpop.f32.mrf.mxu0 }
 0x1b2   :  { %v2216_v36 = vpop.f32.mrf.mxu1  ;;  %v2104_v52 = vadd.f32 %v2103_v10, %v5486_v24 }
 0x1b3   :  { %v2105_v5 = vpop.f32.mrf.mxu0 }
 0x1b4   :  { %v2218_v9 = vpop.f32.mrf.mxu1  ;;  %v5545_v8 = vadd.f32 %v2216_v36, %v2104_v52  ;;  %v2106_v1 = vadd.f32 %v2105_v5, %v5490_v44 }
 0x1b5   :  { %v2107_v20 = vpop.f32.mrf.mxu0 }
 0x1b6   :  { %v2220_v2 = vpop.f32.mrf.mxu1  ;;  %v5548_v12 = vadd.f32 %v2218_v9, %v2106_v1  ;;  %v2108_v16 = vadd.f32 %v2107_v20, %v5486_v24 }
 0x1b7   :  { %v5551_v50 = vpop.f32.mrf.mxu0 }
 0x1b8   :  { %v5553_v46 = vpop.f32.mrf.mxu1  ;;  %v5555_v28 = vadd.f32 %v2220_v2, %v2108_v16 }
 0x1b9   :  { %v2113_v56 = vpop.f32.mrf.mxu0 }
 0x1ba   :  { %v2226_v3 = vpop.f32.mrf.mxu1  ;;  %v2114_v7 = vadd.f32 %v2113_v56, %v5486_v24 }
 0x1bb   :  { %v2115_v31 = vpop.f32.mrf.mxu0 }
 0x1bc   :  { %v2228_v45 = vpop.f32.mrf.mxu1  ;;  %v5558_v35 = vadd.f32 %v2226_v3, %v2114_v7  ;;  %v2116_v17 = vadd.f32 %v2115_v31, %v5490_v44 }
 0x1bd   :  { %v2117_v37 = vpop.f32.mrf.mxu0 }
 0x1be   :  { %v2230_v18 = vpop.f32.mrf.mxu1  ;;  %v5561_v29 = vadd.f32 %v2228_v45, %v2116_v17  ;;  %v2118_v42 = vadd.f32 %v2117_v37, %v5486_v24 }
 0x1bf   :  { %v5564_v59 = vpop.f32.mrf.mxu0 }
 0x1c0   :  { %v5566_v33 = vpop.f32.mrf.mxu1  ;;  %v5568_v54 = vadd.f32 %v2230_v18, %v2118_v42 }
 0x1c1   :  { %v2123_v11 = vpop.f32.mrf.mxu0 }
 0x1c2   :  { %v2236_v14 = vpop.f32.mrf.mxu1  ;;  %v2124_v41 = vadd.f32 %v2123_v11, %v5486_v24 }
 0x1c3   :  { %v2125_v27 = vpop.f32.mrf.mxu0 }
 0x1c4   :  { %v2238_v58 = vpop.f32.mrf.mxu1  ;;  %v5571_v4 = vadd.f32 %v2236_v14, %v2124_v41  ;;  %v2126_v13 = vadd.f32 %v2125_v27, %v5490_v44  ;;  %v2070_v27 = vadd.f32 %v5499_v43, %v5490_v44 }
 0x1c5   :  { %v2127_v30 = vpop.f32.mrf.mxu0 }
 0x1c6   :  { %v2240_v63 = vpop.f32.mrf.mxu1  ;;  %v5574_v32 = vadd.f32 %v2238_v58, %v2126_v13  ;;  %v2128_v10 = vadd.f32 %v2127_v30, %v5486_v24 }
 0x1c7   :  { %v5577_v36 = vpop.f32.mrf.mxu0 }
 0x1c8   :  { %v5579_v52 = vpop.f32.mrf.mxu1  ;;  %v5581_v5 = vadd.f32 %v2240_v63, %v2128_v10 }
 0x1c9   :  { %v2133_v9 = vpop.f32.mrf.mxu0 }
 0x1ca   :  { %v2246_v1 = vpop.f32.mrf.mxu1  ;;  %v2134_v20 = vadd.f32 %v2133_v9, %v5486_v24 }
 0x1cb   :  { %v2135_v2 = vpop.f32.mrf.mxu0 }
 0x1cc   :  { %v2248_v16 = vpop.f32.mrf.mxu1  ;;  %v5584_v56 = vadd.f32 %v2246_v1, %v2134_v20  ;;  %v2136_v3 = vadd.f32 %v2135_v2, %v5490_v44  ;;  %v2183_v1 = vadd.f32 %v5501_v48, %v2070_v27 }
 0x1cd   :  { %v2137_v7 = vpop.f32.mrf.mxu0 }
 0x1ce   :  { %v2250_v31 = vpop.f32.mrf.mxu1  ;;  %v5587_v45 = vadd.f32 %v2248_v16, %v2136_v3  ;;  %v2138_v17 = vadd.f32 %v2137_v7, %v5486_v24 }
 0x1cf   :  { %v5590_v37 = vpop.f32.mrf.mxu0 }
 0x1d0   :  { %v5592_v18 = vpop.f32.mrf.mxu1  ;;  %v5594_v42 = vadd.f32 %v2250_v31, %v2138_v17 }
 0x1d1   :  { %v2289_v11 = vpop.f32.mrf.mxu0 }
 0x1d2   :  { %v2402_v14 = vpop.f32.mrf.mxu1  ;;  %v2290_v41 = vadd.f32 %v2289_v11, %v5493_v25 }
 0x1d3   :  { %v2291_v58 = vpop.f32.mrf.mxu0 }
 0x1d4   :  { %v2404_v13 = vpop.f32.mrf.mxu1  ;;  %v2403_v30 = vadd.f32 %v2402_v14, %v2290_v41  ;;  %v2292_v63 = vadd.f32 %v2291_v58, %v5496_v61  ;;  %v2080_v61 = vadd.f32 %v5512_v22, %v5490_v44 }
 0x1d5   :  { %v2293_v10 = vpop.f32.mrf.mxu0 }
 0x1d6   :  { %v2406_v24 = vpop.f32.mrf.mxu1  ;;  %v2294_v9 = vadd.f32 %v2293_v10, %v5503_v40  ;;  %v2547_v20 = vmul.f32 0.2, %v2403_v30  ;;  %vm2483_vm0 = vcmp.gt.f32.partialorder %v2403_v30, 0.0  ;;  %v2405_v3 = vadd.f32 %v2404_v13, %v2292_v63 }
 0x1d7   :  { %v2295_v2 = vpop.f32.mrf.mxu0 }
 0x1d8   :  { %v2408_v16 = vpop.f32.mrf.mxu1  ;;  %v2407_v25 = vadd.f32 %v2406_v24, %v2294_v9  ;;  %v2296_v7 = vadd.f32 %v2295_v2, %v2183_v1  ;;  %v2611_v14 = vsel %vm2483_vm0, %v2403_v30, %v2547_v20  ;;  %v2548_v27 = vmul.f32 0.2, %v2405_v3 }
 0x1d9   :  { %v2299_v31 = vpop.f32.mrf.mxu0  ;;  %vm2484_vm2 = vcmp.gt.f32.partialorder %v2405_v3, 0.0  ;;  %v2193_v2 = vadd.f32 %v5514_v49, %v2080_v61 }
 0x1da   :  { %v2412_v43 = vpop.f32.mrf.mxu1  ;;  %vm2487_vm1 = vcmp.gt.f32.partialorder %v2407_v25, 0.0  ;;  %v2551_v17 = vmul.f32 0.2, %v2407_v25  ;;  %v2300_v11 = vadd.f32 %v2299_v31, %v5506_v38  ;;  %v2409_v40 = vadd.f32 %v2408_v16, %v2296_v7 }
 0x1db   :  { %v2301_v41 = vpop.f32.mrf.mxu0  ;;  %v2612_v31 = vsel %vm2484_vm2, %v2405_v3, %v2548_v27 }
 0x1dc   :  { %v2414_v48 = vpop.f32.mrf.mxu1  ;;  %v2615_v58 = vsel %vm2487_vm1, %v2407_v25, %v2551_v17  ;;  %v2413_v10 = vadd.f32 %v2412_v43, %v2300_v11  ;;  %v2302_v13 = vadd.f32 %v2301_v41, %v5509_v60  ;;  %vm2488_vm3 = vcmp.gt.f32.partialorder %v2409_v40, 0.0 }
 0x1dd   :  { %v2675_v63 = vpack.c.bf16 %v2615_v58, %v2611_v14  ;;  %v2552_v24 = vmul.f32 0.2, %v2409_v40  ;;  %v2303_v9 = vpop.f32.mrf.mxu0 }
 0x1de   :  { %v2416_v1 = vpop.f32.mrf.mxu1  ;;  %v2304_v38 = vadd.f32 %v2303_v9, %v5516_v15  ;;  %v2555_v22 = vmul.f32 0.2, %v2413_v10  ;;  %vm2491_vm4 = vcmp.gt.f32.partialorder %v2413_v10, 0.0  ;;  %v2415_v7 = vadd.f32 %v2414_v48, %v2302_v13 }
 0x1df   :  { %v2305_v30 = vpop.f32.mrf.mxu0  ;;  %v2616_v16 = vsel %vm2488_vm3, %v2409_v40, %v2552_v24  ;;  %v2090_v15 = vadd.f32 %v5525_v23, %v5490_v44 }
 0x1e0   :  { %v2418_v20 = vpop.f32.mrf.mxu1  ;;  %v2417_v25 = vadd.f32 %v2416_v1, %v2304_v38  ;;  %v2306_v43 = vadd.f32 %v2305_v30, %v2193_v2  ;;  %v2676_v11 = vpack.c.bf16 %v2616_v16, %v2612_v31  ;;  %v2619_v49 = vsel %vm2491_vm4, %v2413_v10, %v2555_v22 }
 0x1e1   :  { %v2309_v60 = vpop.f32.mrf.mxu0  ;;  %v2556_v24 = vmul.f32 0.2, %v2415_v7  ;;  %vm2492_vm6 = vcmp.gt.f32.partialorder %v2415_v7, 0.0  ;;  %v2203_v23 = vadd.f32 %v5527_v51, %v2090_v15 }
 0x1e2   :  { %v2422_v17 = vpop.f32.mrf.mxu1  ;;  %vm2495_vm5 = vcmp.gt.f32.partialorder %v2417_v25, 0.0  ;;  %v2559_v14 = vmul.f32 0.2, %v2417_v25  ;;  %v2310_v41 = vadd.f32 %v2309_v60, %v5519_v39  ;;  %v2419_v61 = vadd.f32 %v2418_v20, %v2306_v43  ;;  %3246 = vmatprep.mubr.bf16.mxu1 %v2676_v11 }
 0x1e3   :  { %v2311_v58 = vpop.f32.mrf.mxu0  ;;  %3247 = vmatmul.mubr.bf16.vlgmr.msra.gmra.mxu1 %v2675_v63  ;;  %v2620_v63 = vsel %vm2492_vm6, %v2415_v7, %v2556_v24 }
 0x1e4   :  { %v2424_v40 = vpop.f32.mrf.mxu1  ;;  %v2623_v48 = vsel %vm2495_vm5, %v2417_v25, %v2559_v14  ;;  %v2423_v13 = vadd.f32 %v2422_v17, %v2310_v41  ;;  %v2312_v3 = vadd.f32 %v2311_v58, %v5522_v34  ;;  %vm2496_vm7 = vcmp.gt.f32.partialorder %v2419_v61, 0.0 }
 0x1e5   :  { %v2679_v27 = vpack.c.bf16 %v2623_v48, %v2619_v49  ;;  %v2560_v9 = vmul.f32 0.2, %v2419_v61  ;;  %v2313_v1 = vpop.f32.mrf.mxu0 }
 0x1e6   :  { %v2426_v39 = vpop.f32.mrf.mxu1  ;;  %v2314_v38 = vadd.f32 %v2313_v1, %v5529_v0  ;;  %v2563_v10 = vmul.f32 0.2, %v2423_v13  ;;  %vm2499_vm8 = vcmp.gt.f32.partialorder %v2423_v13, 0.0  ;;  %v2425_v20 = vadd.f32 %v2424_v40, %v2312_v3 }
 0x1e7   :  { %v2315_v2 = vpop.f32.mrf.mxu0  ;;  %v2624_v30 = vsel %vm2496_vm7, %v2419_v61, %v2560_v9  ;;  %v2100_v0 = vadd.f32 %v5538_v57, %v5490_v44 }
 0x1e8   :  { %v2428_v22 = vpop.f32.mrf.mxu1  ;;  %v2427_v16 = vadd.f32 %v2426_v39, %v2314_v38  ;;  %v2316_v25 = vadd.f32 %v2315_v2, %v2203_v23  ;;  %v2680_v43 = vpack.c.bf16 %v2624_v30, %v2620_v63  ;;  %v2627_v51 = vsel %vm2499_vm8, %v2423_v13, %v2563_v10 }
 0x1e9   :  { %v2319_v34 = vpop.f32.mrf.mxu0  ;;  %v2564_v15 = vmul.f32 0.2, %v2425_v20  ;;  %vm2500_vm10 = vcmp.gt.f32.partialorder %v2425_v20, 0.0  ;;  %v2213_v57 = vadd.f32 %v5540_v19, %v2100_v0 }
 0x1ea   :  { %v2432_v31 = vpop.f32.mrf.mxu1  ;;  %vm2503_vm9 = vcmp.gt.f32.partialorder %v2427_v16, 0.0  ;;  %v2567_v60 = vmul.f32 0.2, %v2427_v16  ;;  %v2320_v17 = vadd.f32 %v2319_v34, %v5532_v21  ;;  %v2429_v11 = vadd.f32 %v2428_v22, %v2316_v25  ;;  %3256 = vmatprep.mubr.bf16.mxu1 %v2680_v43 }
 0x1eb   :  { %v2321_v14 = vpop.f32.mrf.mxu0  ;;  %3257 = vmatmul.mubr.bf16.gmra.mxu1 %v2679_v27  ;;  %v2628_v27 = vsel %vm2500_vm10, %v2425_v20, %v2564_v15 }
 0x1ec   :  { %v2434_v41 = vpop.f32.mrf.mxu1  ;;  %v2631_v49 = vsel %vm2503_vm9, %v2427_v16, %v2567_v60  ;;  %v2433_v61 = vadd.f32 %v2432_v31, %v2320_v17  ;;  %v2322_v7 = vadd.f32 %v2321_v14, %v5535_v55  ;;  %vm2504_vm11 = vcmp.gt.f32.partialorder %v2429_v11, 0.0 }
 0x1ed   :  { %v2683_v58 = vpack.c.bf16 %v2631_v49, %v2627_v51  ;;  %v2568_v40 = vmul.f32 0.2, %v2429_v11  ;;  %v2323_v24 = vpop.f32.mrf.mxu0 }
 0x1ee   :  { %v2436_v21 = vpop.f32.mrf.mxu1  ;;  %v2324_v48 = vadd.f32 %v2323_v24, %v5542_v62  ;;  %v2571_v13 = vmul.f32 0.2, %v2433_v61  ;;  %vm2507_vm12 = vcmp.gt.f32.partialorder %v2433_v61, 0.0  ;;  %v2435_v39 = vadd.f32 %v2434_v41, %v2322_v7 }
 0x1ef   :  { %v2325_v3 = vpop.f32.mrf.mxu0  ;;  %v2632_v1 = vsel %vm2504_vm11, %v2429_v11, %v2568_v40  ;;  %v2110_v62 = vadd.f32 %v5551_v50, %v5490_v44 }
 0x1f0   :  { %v2438_v9 = vpop.f32.mrf.mxu1  ;;  %v2437_v38 = vadd.f32 %v2436_v21, %v2324_v48  ;;  %v2326_v23 = vadd.f32 %v2325_v3, %v2213_v57  ;;  %v2684_v2 = vpack.c.bf16 %v2632_v1, %v2628_v27  ;;  %v2635_v19 = vsel %vm2507_vm12, %v2433_v61, %v2571_v13 }
 0x1f1   :  { %v2329_v55 = vpop.f32.mrf.mxu0  ;;  %v2572_v34 = vmul.f32 0.2, %v2435_v39  ;;  %vm2508_vm14 = vcmp.gt.f32.partialorder %v2435_v39, 0.0  ;;  %v2223_v50 = vadd.f32 %v5553_v46, %v2110_v62 }
 0x1f2   :  { %v2442_v10 = vpop.f32.mrf.mxu1  ;;  %vm2511_vm13 = vcmp.gt.f32.partialorder %v2437_v38, 0.0  ;;  %v2575_v22 = vmul.f32 0.2, %v2437_v38  ;;  %v2330_v30 = vadd.f32 %v2329_v55, %v5545_v8  ;;  %v2439_v16 = vadd.f32 %v2438_v9, %v2326_v23  ;;  %3266 = vmatprep.mubr.bf16.mxu1 %v2684_v2 }
 0x1f3   :  { %v2331_v63 = vpop.f32.mrf.mxu0  ;;  %3267 = vmatmul.mubr.bf16.gmra.mxu1 %v2683_v58  ;;  %v2636_v7 = vsel %vm2508_vm14, %v2435_v39, %v2572_v34 }
 0x1f4   :  { %v2444_v25 = vpop.f32.mrf.mxu1  ;;  %v2639_v31 = vsel %vm2511_vm13, %v2437_v38, %v2575_v22  ;;  %v2443_v43 = vadd.f32 %v2442_v10, %v2330_v30  ;;  %v2332_v20 = vadd.f32 %v2331_v63, %v5548_v12  ;;  %vm2512_vm15 = vcmp.gt.f32.partialorder %v2439_v16, 0.0 }
 0x1f5   :  { %v2687_v60 = vpack.c.bf16 %v2639_v31, %v2635_v19  ;;  %v2576_v17 = vmul.f32 0.2, %v2439_v16  ;;  %v2333_v0 = vpop.f32.mrf.mxu0 }
 0x1f6   :  { %v2446_v8 = vpop.f32.mrf.mxu1  ;;  %v2334_v51 = vadd.f32 %v2333_v0, %v5555_v28  ;;  %v2579_v11 = vmul.f32 0.2, %v2443_v43  ;;  %vm2515_vm0 = vcmp.gt.f32.partialorder %v2443_v43, 0.0  ;;  %v2445_v49 = vadd.f32 %v2444_v25, %v2332_v20 }
 0x1f7   :  { %v2335_v14 = vpop.f32.mrf.mxu0  ;;  %v2640_v15 = vsel %vm2512_vm15, %v2439_v16, %v2576_v17  ;;  %v2120_v28 = vadd.f32 %v5564_v59, %v5490_v44 }
 0x1f8   :  { %v2448_v41 = vpop.f32.mrf.mxu1  ;;  %v2447_v61 = vadd.f32 %v2446_v8, %v2334_v51  ;;  %v2336_v58 = vadd.f32 %v2335_v14, %v2223_v50  ;;  %v2688_v24 = vpack.c.bf16 %v2640_v15, %v2636_v7  ;;  %v2643_v46 = vsel %vm2515_vm0, %v2443_v43, %v2579_v11 }
 0x1f9   :  { %v2339_v12 = vpop.f32.mrf.mxu0  ;;  %v2580_v9 = vmul.f32 0.2, %v2445_v49  ;;  %vm2516_vm2 = vcmp.gt.f32.partialorder %v2445_v49, 0.0  ;;  %v2233_v59 = vadd.f32 %v5566_v33, %v2120_v28 }
 0x1fa   :  { %v2452_v40 = vpop.f32.mrf.mxu1  ;;  %vm2519_vm1 = vcmp.gt.f32.partialorder %v2447_v61, 0.0  ;;  %v2583_v21 = vmul.f32 0.2, %v2447_v61  ;;  %v2340_v48 = vadd.f32 %v2339_v12, %v5558_v35  ;;  %v2449_v57 = vadd.f32 %v2448_v41, %v2336_v58  ;;  %3276 = vmatprep.mubr.bf16.mxu1 %v2688_v24 }
 0x1fb   :  { %v2341_v13 = vpop.f32.mrf.mxu0  ;;  %3277 = vmatmul.mubr.bf16.gmra.mxu1 %v2687_v60  ;;  %v2644_v63 = vsel %vm2516_vm2, %v2445_v49, %v2580_v9 }
 0x1fc   :  { %v2454_v3 = vpop.f32.mrf.mxu1  ;;  %v2647_v1 = vsel %vm2519_vm1, %v2447_v61, %v2583_v21  ;;  %v2453_v38 = vadd.f32 %v2452_v40, %v2340_v48  ;;  %v2342_v39 = vadd.f32 %v2341_v13, %v5561_v29  ;;  %vm2520_vm3 = vcmp.gt.f32.partialorder %v2449_v57, 0.0 }
 0x1fd   :  { %v2691_v27 = vpack.c.bf16 %v2647_v1, %v2643_v46  ;;  %v2584_v23 = vmul.f32 0.2, %v2449_v57  ;;  %v2343_v55 = vpop.f32.mrf.mxu0 }
 0x1fe   :  { %v2456_v35 = vpop.f32.mrf.mxu1  ;;  %v2344_v10 = vadd.f32 %v2343_v55, %v5568_v54  ;;  %v2587_v2 = vmul.f32 0.2, %v2453_v38  ;;  %vm2523_vm4 = vcmp.gt.f32.partialorder %v2453_v38, 0.0  ;;  %v2455_v19 = vadd.f32 %v2454_v3, %v2342_v39 }
 0x1ff   :  { %v2345_v22 = vpop.f32.mrf.mxu0  ;;  %v2648_v62 = vsel %vm2520_vm3, %v2449_v57, %v2584_v23  ;;  %v2130_v54 = vadd.f32 %v5577_v36, %v5490_v44 }
 0x200   :  { %v2458_v30 = vpop.f32.mrf.mxu1  ;;  %v2457_v16 = vadd.f32 %v2456_v35, %v2344_v10  ;;  %v2346_v25 = vadd.f32 %v2345_v22, %v2233_v59  ;;  %v2692_v31 = vpack.c.bf16 %v2648_v62, %v2644_v63  ;;  %v2651_v33 = vsel %vm2523_vm4, %v2453_v38, %v2587_v2 }
 0x201   :  { %v2349_v29 = vpop.f32.mrf.mxu0  ;;  %v2588_v8 = vmul.f32 0.2, %v2455_v19  ;;  %vm2524_vm6 = vcmp.gt.f32.partialorder %v2455_v19, 0.0  ;;  %v2243_v36 = vadd.f32 %v5579_v52, %v2130_v54 }
 0x202   :  { %v2462_v34 = vpop.f32.mrf.mxu1  ;;  %vm2527_vm5 = vcmp.gt.f32.partialorder %v2457_v16, 0.0  ;;  %v2591_v43 = vmul.f32 0.2, %v2457_v16  ;;  %v2350_v20 = vadd.f32 %v2349_v29, %v5571_v4  ;;  %v2459_v60 = vadd.f32 %v2458_v30, %v2346_v25  ;;  %3286 = vmatprep.mubr.bf16.mxu1 %v2692_v31 }
 0x203   :  { %v2351_v17 = vpop.f32.mrf.mxu0  ;;  %3287 = vmatmul.mubr.bf16.gmra.mxu1 %v2691_v27  ;;  %v2652_v21 = vsel %vm2524_vm6, %v2455_v19, %v2588_v8 }
 0x204   :  { %v2464_v0 = vpop.f32.mrf.mxu1  ;;  %v2655_v51 = vsel %vm2527_vm5, %v2457_v16, %v2591_v43  ;;  %v2463_v50 = vadd.f32 %v2462_v34, %v2350_v20  ;;  %v2352_v11 = vadd.f32 %v2351_v17, %v5574_v32  ;;  %vm2528_vm7 = vcmp.gt.f32.partialorder %v2459_v60, 0.0 }
 0x205   :  { %v2695_v14 = vpack.c.bf16 %v2655_v51, %v2651_v33  ;;  %v2592_v41 = vmul.f32 0.2, %v2459_v60  ;;  %v2353_v15 = vpop.f32.mrf.mxu0 }
 0x206   :  { %v2466_v4 = vpop.f32.mrf.mxu1  ;;  %v2354_v49 = vadd.f32 %v2353_v15, %v5581_v5  ;;  %v2595_v61 = vmul.f32 0.2, %v2463_v50  ;;  %vm2531_vm8 = vcmp.gt.f32.partialorder %v2463_v50, 0.0  ;;  %v2465_v40 = vadd.f32 %v2464_v0, %v2352_v11 }
 0x207   :  { %v2355_v7 = vpop.f32.mrf.mxu0  ;;  %v2656_v12 = vsel %vm2528_vm7, %v2459_v60, %v2592_v41  ;;  %v2140_v5 = vadd.f32 %v5590_v37, %v5490_v44 }
 0x208   :  { %v2468_v58 = vpop.f32.mrf.mxu1  ;;  %v2467_v24 = vadd.f32 %v2466_v4, %v2354_v49  ;;  %v2356_v48 = vadd.f32 %v2355_v7, %v2243_v36  ;;  %v2696_v46 = vpack.c.bf16 %v2656_v12, %v2652_v21  ;;  %v2659_v52 = vsel %vm2531_vm8, %v2463_v50, %v2595_v61 }
 0x209   :  { %v2359_v32 = vpop.f32.mrf.mxu0  ;;  %v2596_v38 = vmul.f32 0.2, %v2465_v40  ;;  %vm2532_vm10 = vcmp.gt.f32.partialorder %v2465_v40, 0.0  ;;  %v2253_v44 = vadd.f32 %v5592_v18, %v2140_v5 }
 0x20a   :  { %v2472_v28 = vpop.f32.mrf.mxu1  ;;  %vm2535_vm9 = vcmp.gt.f32.partialorder %v2467_v24, 0.0  ;;  %v2599_v57 = vmul.f32 0.2, %v2467_v24  ;;  %v2360_v13 = vadd.f32 %v2359_v32, %v5584_v56  ;;  %v2469_v3 = vadd.f32 %v2468_v58, %v2356_v48  ;;  %3296 = vmatprep.mubr.bf16.mxu1 %v2696_v46  ;;  %v2769_v58 = vld [vmem:[%s5870_s4] sm:$0x3] }
 0x20b   :  { %v2361_v9 = vpop.f32.mrf.mxu0  ;;  %3297 = vmatmul.mubr.bf16.gmra.mxu1 %v2695_v14  ;;  %v2660_v19 = vsel %vm2532_vm10, %v2465_v40, %v2596_v38  ;;  %v3423_v40 = vld [vmem:[%s5871_s5] sm:$0x3]  ;;  %v5671_v48 = vrot.slane %v2769_v58, %v443_v47 }
 0x20c   :  { %v2474_v1 = vpop.f32.mrf.mxu1  ;;  %v2663_v39 = vsel %vm2535_vm9, %v2467_v24, %v2599_v57  ;;  %v2473_v27 = vadd.f32 %v2472_v28, %v2360_v13  ;;  %v2362_v23 = vadd.f32 %v2361_v9, %v5587_v45  ;;  %vm2536_vm11 = vcmp.gt.f32.partialorder %v2469_v3, 0.0 }
 0x20d   :  { %v2699_v55 = vpack.c.bf16 %v2663_v39, %v2659_v52  ;;  %v2600_v35 = vmul.f32 0.2, %v2469_v3  ;;  %v2363_v10 = vpop.f32.mrf.mxu0  ;;  %v5667_v24 = vrot.slane %v2769_v58, %v5091_v26  ;;  %v3424_v21 = vunpack.c.l.bf16 %v3423_v40 }
 0x20e   :  { %v2364_v56 = vadd.f32 %v2363_v10, %v5594_v42  ;;  %v2476_v59 = vpop.f32.mrf.mxu1  ;;  %v2475_v37 = vadd.f32 %v2474_v1, %v2362_v23  ;;  %v2603_v30 = vmul.f32 0.2, %v2473_v27  ;;  %vm2539_vm12 = vcmp.gt.f32.partialorder %v2473_v27, 0.0 }
 0x20f   :  { %v2365_v2 = vpop.f32.mrf.mxu0  ;;  %v2664_v22 = vsel %vm2536_vm11, %v2469_v3, %v2600_v35  ;;  %v3429_v57 = vrot.slane %v3424_v21, %v5091_v26  ;;  %v3433_v13 = vrot.slane %v3424_v21, %v447_v6 }
 0x210   :  { %v2477_v62 = vadd.f32 %v2476_v59, %v2364_v56  ;;  %v2366_v16 = vadd.f32 %v2365_v2, %v2253_v44  ;;  %v2700_v63 = vpack.c.bf16 %v2664_v22, %v2660_v19  ;;  %v2478_v25 = vpop.f32.mrf.mxu1  ;;  %v2604_v29 = vmul.f32 0.2, %v2475_v37 }
 0x211   :  { %v2667_v31 = vsel %vm2539_vm12, %v2473_v27, %v2603_v30  ;;  %vm2540_vm14 = vcmp.gt.f32.partialorder %v2475_v37, 0.0  ;;  %v5685_v23 = vrot.slane %v3429_v57, %v5091_v26  ;;  %v5688_v53 = vrot.slane %v3433_v13, %v5091_v26 }
 0x212   :  { %vm2543_vm13 = vcmp.gt.f32.partialorder %v2477_v62, 0.0  ;;  %v2607_v45 = vmul.f32 0.2, %v2477_v62  ;;  %v2479_v34 = vadd.f32 %v2478_v25, %v2366_v16  ;;  %3306 = vmatprep.mubr.bf16.mxu1 %v2700_v63  ;;  %v2668_v20 = vsel %vm2540_vm14, %v2475_v37, %v2604_v29 }
 0x213   :  { %3307 = vmatmul.mubr.bf16.gmra.mxu1 %v2699_v55 }
 0x214   :  { %v2671_v42 = vsel %vm2543_vm13, %v2477_v62, %v2607_v45  ;;  %vm2544_vm15 = vcmp.gt.f32.partialorder %v2479_v34, 0.0  ;;  %v2608_v43 = vmul.f32 0.2, %v2479_v34 }
 0x215   :  { %v2703_v18 = vpack.c.bf16 %v2671_v42, %v2667_v31 }
 0x216   :  { %v2672_v54 = vsel %vm2544_vm15, %v2479_v34, %v2608_v43 }
 0x217   :  { %v2704_v33 = vpack.c.bf16 %v2672_v54, %v2668_v20 }
 0x219   :  { %3316 = vmatprep.mubr.bf16.mxu1 %v2704_v33 }
 0x21b   :  { %3317 = vmatmul.mubr.bf16.gmra.mxu1 %v2703_v18 }
 0x223   :  { %v3135_v60 = vpop.f32.mrf.mxu0 }
 0x224   :  { %v3136_v28 = vadd.f32 %v3135_v60, %v5667_v24 }
 0x225   :  { %v3137_v17 = vpop.f32.mrf.mxu0 }
 0x226   :  { %v3138_v5 = vadd.f32 %v3137_v17, %v5671_v48 }
 0x227   :  { %v3139_v0 = vpop.f32.mrf.mxu0 }
 0x228   :  { %v3140_v1 = vadd.f32 %v3139_v0, %v5667_v24 }
 0x229   :  { %v3141_v8 = vpop.f32.mrf.mxu0 }
 0x22a   :  { %v3142_v39 = vadd.f32 %v3141_v8, %v5671_v48 }
 0x22b   :  { %v3145_v51 = vpop.f32.mrf.mxu0 }
 0x22c   :  { %v3146_v56 = vadd.f32 %v3145_v51, %v5667_v24 }
 0x22d   :  { %v3147_v50 = vpop.f32.mrf.mxu0 }
 0x22e   :  { %v3148_v22 = vadd.f32 %v3147_v50, %v5671_v48 }
 0x22f   :  { %v3149_v11 = vpop.f32.mrf.mxu0 }
 0x230   :  { %v3150_v25 = vadd.f32 %v3149_v11, %v5667_v24 }
 0x231   :  { %v3151_v14 = vpop.f32.mrf.mxu0 }
 0x232   :  { %v3152_v43 = vadd.f32 %v3151_v14, %v5671_v48 }
 0x233   :  { %v5644_v41 = vpop.f32.mrf.mxu0 }
 0x234   :  { %v3156_v51 = vadd.f32 %v5644_v41, %v5667_v24 }
 0x235   :  { %v5646_v15 = vpop.f32.mrf.mxu0 }
 0x236   :  { %v3158_v21 = vadd.f32 %v5646_v15, %v5671_v48 }
 0x237   :  { %v5648_v4 = vpop.f32.mrf.mxu0 }
 0x239   :  { %v5650_v49 = vpop.f32.mrf.mxu0 }
 0x23b   :  { %v5652_v36 = vpop.f32.mrf.mxu0 }
 0x23d   :  { %v5654_v61 = vpop.f32.mrf.mxu0 }
 0x23f   :  { %v5656_v7 = vpop.f32.mrf.mxu0 }
 0x241   :  { %v5661_v12 = vpop.f32.mrf.mxu0 }
 0x243   :  { %v5673_v32 = vpop.f32.mrf.mxu0 }
 0x245   :  { %v5680_v52 = vpop.f32.mrf.mxu0 }
 0x247   :  { %v5690_v6 = vpop.f32.mrf.mxu0 }
 0x249   :  { %v5696_v19 = vpop.f32.mrf.mxu0 }
 0x24b   :  { %v5702_v60 = vpop.f32.mrf.mxu0 }
 0x24d   :  { %v5710_v13 = vpop.f32.mrf.mxu0 }
 0x2a3   :  { %v3248_v46 = vpop.f32.mrf.mxu1 }
 0x2a4   :  { %v3249_v3 = vadd.f32 %v3248_v46, %v3136_v28 }
 0x2a5   :  { %v3250_v9 = vpop.f32.mrf.mxu1 }
 0x2a6   :  { %vm3327_vm0 = vcmp.gt.f32.partialorder %v3249_v3, 0.0  ;;  %v3359_v47 = vmul.f32 0.2, %v3249_v3  ;;  %v3251_v38 = vadd.f32 %v3250_v9, %v3138_v5  ;;  %v3160_v9 = vadd.f32 %v5648_v4, %v5667_v24 }
 0x2a7   :  { %v3252_v27 = vpop.f32.mrf.mxu1 }
 0x2a8   :  { %vm3328_vm1 = vcmp.gt.f32.partialorder %v3251_v38, 0.0  ;;  %v3360_v55 = vmul.f32 0.2, %v3251_v38  ;;  %v3253_v35 = vadd.f32 %v3252_v27, %v3140_v1  ;;  %v3391_v10 = vsel %vm3327_vm0, %v3249_v3, %v3359_v47 }
 0x2a9   :  { %v3254_v59 = vpop.f32.mrf.mxu1  ;;  %v3444_v62 = vmul.f32 %v5685_v23, %v3391_v10  ;;  %v3162_v27 = vadd.f32 %v5650_v49, %v5671_v48 }
 0x2aa   :  { %vm3329_vm2 = vcmp.gt.f32.partialorder %v3253_v35, 0.0  ;;  %v3361_v44 = vmul.f32 0.2, %v3253_v35  ;;  %v3255_v37 = vadd.f32 %v3254_v59, %v3142_v39  ;;  %v3392_v2 = vsel %vm3328_vm1, %v3251_v38, %v3360_v55 }
 0x2ab   :  { %v3258_v30 = vpop.f32.mrf.mxu1  ;;  %v3445_v26 = vmul.f32 %v5688_v53, %v3392_v2 }
 0x2ac   :  { %vm3330_vm3 = vcmp.gt.f32.partialorder %v3255_v37, 0.0  ;;  %v3362_v16 = vmul.f32 0.2, %v3255_v37  ;;  %v3259_v63 = vadd.f32 %v3258_v30, %v3146_v56  ;;  %v3393_v45 = vsel %vm3329_vm2, %v3253_v35, %v3361_v44  ;;  %v5718_v56 = vpop.f32.mrf.mxu0 }
 0x2ad   :  { %v3260_v29 = vpop.f32.mrf.mxu1  ;;  %v3476_v34 = vadd.f32 %v3445_v26, %v3444_v62  ;;  %v3446_v54 = vmul.f32 %v5685_v23, %v3393_v45  ;;  %v3168_v26 = vadd.f32 %v5654_v61, %v5671_v48 }
 0x2ae   :  { %vm3331_vm4 = vcmp.gt.f32.partialorder %v3259_v63, 0.0  ;;  %v3363_v31 = vmul.f32 0.2, %v3259_v63  ;;  %v3261_v42 = vadd.f32 %v3260_v29, %v3148_v22  ;;  %v3394_v18 = vsel %vm3330_vm3, %v3255_v37, %v3362_v16 }
 0x2af   :  { %v3262_v20 = vpop.f32.mrf.mxu1  ;;  %3477 = vadd.xlane.f32.xlu0 %v3476_v34  ;;  %v3447_v33 = vmul.f32 %v5688_v53, %v3394_v18  ;;  %v3166_v37 = vadd.f32 %v5652_v36, %v5667_v24 }
 0x2b0   :  { %vm3332_vm5 = vcmp.gt.f32.partialorder %v3261_v42, 0.0  ;;  %v3364_v17 = vmul.f32 0.2, %v3261_v42  ;;  %v3263_v0 = vadd.f32 %v3262_v20, %v3150_v25  ;;  %v3395_v8 = vsel %vm3331_vm4, %v3259_v63, %v3363_v31  ;;  %v5726_v25 = vpop.f32.mrf.mxu0 }
 0x2b1   :  { %v3264_v50 = vpop.f32.mrf.mxu1  ;;  %v3479_v11 = vadd.f32 %v3447_v33, %v3446_v54  ;;  %v3448_v46 = vmul.f32 %v5685_v23, %v3395_v8  ;;  %v3170_v31 = vadd.f32 %v5656_v7, %v5667_v24  ;;  %v3172_v54 = vadd.f32 %v5661_v12, %v5671_v48 }
 0x2b2   :  { %vm3333_vm6 = vcmp.gt.f32.partialorder %v3263_v0, 0.0  ;;  %v3365_v58 = vmul.f32 0.2, %v3263_v0  ;;  %v3265_v14 = vadd.f32 %v3264_v50, %v3152_v43  ;;  %v3396_v40 = vsel %vm3332_vm5, %v3261_v42, %v3364_v17  ;;  %v5734_v8 = vpop.f32.mrf.mxu0 }
 0x2b3   :  { %v3268_v28 = vpop.f32.mrf.mxu1  ;;  %3480 = vadd.xlane.f32.xlu0 %v3479_v11  ;;  %v3449_v57 = vmul.f32 %v5688_v53, %v3396_v40  ;;  %v3176_v11 = vadd.f32 %v5673_v32, %v5667_v24 }
 0x2b4   :  { %vm3334_vm7 = vcmp.gt.f32.partialorder %v3265_v14, 0.0  ;;  %v3366_v5 = vmul.f32 0.2, %v3265_v14  ;;  %v3269_v41 = vadd.f32 %v3268_v28, %v3156_v51  ;;  %v3397_v3 = vsel %vm3333_vm6, %v3263_v0, %v3365_v58 }
 0x2b5   :  { %v3270_v1 = vpop.f32.mrf.mxu1  ;;  %v3482_v47 = vadd.f32 %v3449_v57, %v3448_v46  ;;  %v3450_v35 = vmul.f32 %v5685_v23, %v3397_v3  ;;  %v3178_v28 = vadd.f32 %v5680_v52, %v5671_v48 }
 0x2b6   :  { %vm3335_vm8 = vcmp.gt.f32.partialorder %v3269_v41, 0.0  ;;  %v3367_v38 = vmul.f32 0.2, %v3269_v41  ;;  %v3271_v15 = vadd.f32 %v3270_v1, %v3158_v21  ;;  %v3398_v39 = vsel %vm3334_vm7, %v3265_v14, %v3366_v5 }
 0x2b7   :  { %v3272_v55 = vpop.f32.mrf.mxu1  ;;  %3483 = vadd.xlane.f32.xlu1 %v3482_v47  ;;  %v3451_v10 = vmul.f32 %v5688_v53, %v3398_v39  ;;  %v3180_v1 = vadd.f32 %v5690_v6, %v5667_v24 }
 0x2b8   :  { %vm3336_vm9 = vcmp.gt.f32.partialorder %v3271_v15, 0.0  ;;  %v3368_v59 = vmul.f32 0.2, %v3271_v15  ;;  %v3273_v4 = vadd.f32 %v3272_v55, %v3160_v9  ;;  %v3399_v44 = vsel %vm3335_vm8, %v3269_v41, %v3367_v38  ;;  %v5742_v41 = vpop.f32.mrf.mxu0 }
 0x2b9   :  { %v3274_v2 = vpop.f32.mrf.mxu1  ;;  %v3485_v22 = vadd.f32 %v3451_v10, %v3450_v35  ;;  %v3452_v63 = vmul.f32 %v5685_v23, %v3399_v44 }
 0x2ba   :  { %vm3337_vm10 = vcmp.gt.f32.partialorder %v3273_v4, 0.0  ;;  %v3369_v30 = vmul.f32 0.2, %v3273_v4  ;;  %v3275_v49 = vadd.f32 %v3274_v2, %v3162_v27  ;;  %v3400_v62 = vsel %vm3336_vm9, %v3271_v15, %v3368_v59  ;;  %v3199_v59 = vpop.f32.mrf.mxu0 }
 0x2bb   :  { %v3278_v16 = vpop.f32.mrf.mxu1  ;;  %3486 = vadd.xlane.f32.xlu1 %v3485_v22  ;;  %v3453_v45 = vmul.f32 %v5688_v53, %v3400_v62  ;;  %v3182_v27 = vadd.f32 %v5696_v19, %v5671_v48  ;;  %v3188_v62 = vadd.f32 %v5710_v13, %v5671_v48 }
 0x2bc   :  { %vm3338_vm11 = vcmp.gt.f32.partialorder %v3275_v49, 0.0  ;;  %v3370_v29 = vmul.f32 0.2, %v3275_v49  ;;  %v3279_v36 = vadd.f32 %v3278_v16, %v3166_v37  ;;  %v3401_v34 = vsel %vm3337_vm10, %v3273_v4, %v3369_v30 }
 0x2bd   :  { %v3280_v42 = vpop.f32.mrf.mxu1  ;;  %v3488_v18 = vadd.f32 %v3453_v45, %v3452_v63  ;;  %v3454_v17 = vmul.f32 %v5685_v23, %v3401_v34  ;;  %v3186_v37 = vadd.f32 %v5702_v60, %v5667_v24  ;;  %v3201_v45 = vpop.f32.mrf.mxu0  ;;  %v3190_v34 = vadd.f32 %v5718_v56, %v5667_v24 }
 0x2be   :  { %vm3339_vm12 = vcmp.gt.f32.partialorder %v3279_v36, 0.0  ;;  %v3371_v43 = vmul.f32 0.2, %v3279_v36  ;;  %v3281_v61 = vadd.f32 %v3280_v42, %v3168_v26  ;;  %v3402_v20 = vsel %vm3338_vm11, %v3275_v49, %v3370_v29 }
 0x2bf   :  { %v3282_v33 = vpop.f32.mrf.mxu1  ;;  %3489 = vadd.xlane.f32.xlu0 %v3488_v18  ;;  %v3455_v0 = vmul.f32 %v5688_v53, %v3402_v20 }
 0x2c0   :  { %vm3340_vm13 = vcmp.gt.f32.partialorder %v3281_v61, 0.0  ;;  %v3372_v51 = vmul.f32 0.2, %v3281_v61  ;;  %v3283_v7 = vadd.f32 %v3282_v33, %v3170_v31  ;;  %v3403_v50 = vsel %vm3339_vm12, %v3279_v36, %v3371_v43 }
 0x2c1   :  { %v3284_v58 = vpop.f32.mrf.mxu1  ;;  %v3491_v14 = vadd.f32 %v3455_v0, %v3454_v17  ;;  %v3456_v57 = vmul.f32 %v5685_v23, %v3403_v50  ;;  %v3205_v17 = vpop.f32.mrf.mxu0 }
 0x2c2   :  { %vm3341_vm14 = vcmp.gt.f32.partialorder %v3283_v7, 0.0  ;;  %v3373_v40 = vmul.f32 0.2, %v3283_v7  ;;  %v3285_v12 = vadd.f32 %v3284_v58, %v3172_v54  ;;  %v3404_v21 = vsel %vm3340_vm13, %v3281_v61, %v3372_v51 }
 0x2c3   :  { %v3288_v46 = vpop.f32.mrf.mxu1  ;;  %3492 = vadd.xlane.f32.xlu1 %v3491_v14  ;;  %v3457_v5 = vmul.f32 %v5688_v53, %v3404_v21  ;;  %v3192_v61 = vadd.f32 %v5726_v25, %v5671_v48 }
 0x2c4   :  { %vm3342_vm15 = vcmp.gt.f32.partialorder %v3285_v12, 0.0  ;;  %v3374_v3 = vmul.f32 0.2, %v3285_v12  ;;  %v3289_v32 = vadd.f32 %v3288_v46, %v3176_v11  ;;  %v3405_v9 = vsel %vm3341_vm14, %v3283_v7, %v3373_v40  ;;  %v3207_v46 = vpop.f32.mrf.mxu0 }
 0x2c5   :  { %v3290_v47 = vpop.f32.mrf.mxu1  ;;  %v3494_v38 = vadd.f32 %v3457_v5, %v3456_v57  ;;  %v3458_v35 = vmul.f32 %v5685_v23, %v3405_v9  ;;  %v3196_v7 = vadd.f32 %v5734_v8, %v5667_v24  ;;  %v3198_v40 = vadd.f32 %v5742_v41, %v5671_v48 }
 0x2c6   :  { %vm3343_vm0 = vcmp.gt.f32.partialorder %v3289_v32, 0.0  ;;  %v3375_v15 = vmul.f32 0.2, %v3289_v32  ;;  %v3291_v52 = vadd.f32 %v3290_v47, %v3178_v28  ;;  %v3406_v39 = vsel %vm3342_vm15, %v3285_v12, %v3374_v3 }
 0x2c7   :  { %v3292_v55 = vpop.f32.mrf.mxu1  ;;  %3495 = vadd.xlane.f32.xlu0 %v3494_v38  ;;  %v3459_v10 = vmul.f32 %v5688_v53, %v3406_v39  ;;  %v3200_v3 = vadd.f32 %v3199_v59, %v5667_v24  ;;  %v3202_v41 = vadd.f32 %v3201_v45, %v5671_v48  ;;  %v3206_v59 = vadd.f32 %v3205_v17, %v5667_v24 }
 0x2c8   :  { %vm3344_vm1 = vcmp.gt.f32.partialorder %v3291_v52, 0.0  ;;  %v3376_v4 = vmul.f32 0.2, %v3291_v52  ;;  %v3293_v44 = vadd.f32 %v3292_v55, %v3180_v1  ;;  %v3407_v6 = vsel %vm3343_vm0, %v3289_v32, %v3375_v15 }
 0x2c9   :  { %v3294_v2 = vpop.f32.mrf.mxu1  ;;  %v3497_v22 = vadd.f32 %v3459_v10, %v3458_v35  ;;  %v3460_v16 = vmul.f32 %v5685_v23, %v3407_v6  ;;  %vm3643_vm0 = vcmask 7168  }
 0x2ca   :  { %vm3345_vm2 = vcmp.gt.f32.partialorder %v3293_v44, 0.0  ;;  %v3377_v30 = vmul.f32 0.2, %v3293_v44  ;;  %v3295_v49 = vadd.f32 %v3294_v2, %v3182_v27  ;;  %v3408_v19 = vsel %vm3344_vm1, %v3291_v52, %v3376_v4  ;;  %v3209_v27 = vpop.f32.mrf.mxu0 }
 0x2cb   :  { %v3298_v26 = vpop.f32.mrf.mxu1  ;;  %3498 = vadd.xlane.f32.xlu1 %v3497_v22  ;;  %v3461_v63 = vmul.f32 %v5688_v53, %v3408_v19  ;;  %v3208_v22 = vadd.f32 %v3207_v46, %v5671_v48  ;;  %v3210_v45 = vadd.f32 %v3209_v27, %v5667_v24 }
 0x2cc   :  { %vm3346_vm3 = vcmp.gt.f32.partialorder %v3295_v49, 0.0  ;;  %v3378_v29 = vmul.f32 0.2, %v3295_v49  ;;  %v3299_v36 = vadd.f32 %v3298_v26, %v3186_v37  ;;  %v3409_v60 = vsel %vm3345_vm2, %v3293_v44, %v3377_v30 }
 0x2cd   :  { %v3300_v31 = vpop.f32.mrf.mxu1  ;;  %v3500_v42 = vadd.f32 %v3461_v63, %v3460_v16  ;;  %v3462_v54 = vmul.f32 %v5685_v23, %v3409_v60 }
 0x2ce   :  { %vm3347_vm4 = vcmp.gt.f32.partialorder %v3299_v36, 0.0  ;;  %v3379_v18 = vmul.f32 0.2, %v3299_v36  ;;  %v3301_v43 = vadd.f32 %v3300_v31, %v3188_v62  ;;  %v3410_v13 = vsel %vm3346_vm3, %v3295_v49, %v3378_v29  ;;  %v3211_v62 = vpop.f32.mrf.mxu0 }
 0x2cf   :  { %v3302_v20 = vpop.f32.mrf.mxu1  ;;  %3501 = vadd.xlane.f32.xlu0 %v3500_v42  ;;  %v3463_v33 = vmul.f32 %v5688_v53, %v3410_v13  ;;  %v3212_v42 = vadd.f32 %v3211_v62, %v5671_v48 }
 0x2d0   :  { %vm3348_vm5 = vcmp.gt.f32.partialorder %v3301_v43, 0.0  ;;  %v3380_v0 = vmul.f32 0.2, %v3301_v43  ;;  %v3303_v51 = vadd.f32 %v3302_v20, %v3190_v34  ;;  %v3411_v56 = vsel %vm3347_vm4, %v3299_v36, %v3379_v18 }
 0x2d1   :  { %v3304_v50 = vpop.f32.mrf.mxu1  ;;  %v3503_v11 = vadd.f32 %v3463_v33, %v3462_v54  ;;  %v3464_v21 = vmul.f32 %v5685_v23, %v3411_v56 }
 0x2d2   :  { %vm3349_vm6 = vcmp.gt.f32.partialorder %v3303_v51, 0.0  ;;  %v3381_v58 = vmul.f32 0.2, %v3303_v51  ;;  %v3305_v14 = vadd.f32 %v3304_v50, %v3192_v61  ;;  %v3412_v25 = vsel %vm3348_vm5, %v3301_v43, %v3380_v0 }
 0x2d3   :  { %v3308_v12 = vpop.f32.mrf.mxu1  ;;  %3504 = vadd.xlane.f32.xlu1 %v3503_v11  ;;  %v3465_v28 = vmul.f32 %v5688_v53, %v3412_v25 }
 0x2d4   :  { %vm3350_vm7 = vcmp.gt.f32.partialorder %v3305_v14, 0.0  ;;  %v3382_v57 = vmul.f32 0.2, %v3305_v14  ;;  %v3309_v5 = vadd.f32 %v3308_v12, %v3196_v7  ;;  %v3413_v8 = vsel %vm3349_vm6, %v3303_v51, %v3381_v58  ;;  %v5784_v12 = vld [vmem:[#allocation2] ss:$0 sm:$0xff] }
 0x2d5   :  { %v3310_v32 = vpop.f32.mrf.mxu1  ;;  %v3506_v9 = vadd.f32 %v3465_v28, %v3464_v21  ;;  %v3466_v52 = vmul.f32 %v5685_v23, %v3413_v8 }
 0x2d6   :  { %vm3351_vm8 = vcmp.gt.f32.partialorder %v3309_v5, 0.0  ;;  %v3383_v1 = vmul.f32 0.2, %v3309_v5  ;;  %v3311_v47 = vadd.f32 %v3310_v32, %v3198_v40  ;;  %v3414_v38 = vsel %vm3350_vm7, %v3305_v14, %v3382_v57 }
 0x2d7   :  { %v3312_v15 = vpop.f32.mrf.mxu1  ;;  %3507 = vadd.xlane.f32.xlu0 %v3506_v9  ;;  %v3467_v39 = vmul.f32 %v5688_v53, %v3414_v38 }
 0x2d8   :  { %vm3352_vm9 = vcmp.gt.f32.partialorder %v3311_v47, 0.0  ;;  %v3384_v55 = vmul.f32 0.2, %v3311_v47  ;;  %v3313_v35 = vadd.f32 %v3312_v15, %v3200_v3  ;;  %v3415_v10 = vsel %vm3351_vm8, %v3309_v5, %v3383_v1 }
 0x2d9   :  { %v3314_v4 = vpop.f32.mrf.mxu1  ;;  %v3509_v44 = vadd.f32 %v3467_v39, %v3466_v52  ;;  %v3468_v49 = vmul.f32 %v5685_v23, %v3415_v10 }
 0x2da   :  { %vm3353_vm10 = vcmp.gt.f32.partialorder %v3313_v35, 0.0  ;;  %v3385_v6 = vmul.f32 0.2, %v3313_v35  ;;  %v3315_v37 = vadd.f32 %v3314_v4, %v3202_v41  ;;  %v3416_v2 = vsel %vm3352_vm9, %v3311_v47, %v3384_v55 }
 0x2db   :  { %v3318_v30 = vpop.f32.mrf.mxu1  ;;  %3510 = vadd.xlane.f32.xlu1 %v3509_v44  ;;  %v3469_v19 = vmul.f32 %v5688_v53, %v3416_v2 }
 0x2dc   :  { %vm3354_vm11 = vcmp.gt.f32.partialorder %v3315_v37, 0.0  ;;  %v3386_v26 = vmul.f32 0.2, %v3315_v37  ;;  %v3319_v16 = vadd.f32 %v3318_v30, %v3206_v59  ;;  %v3417_v63 = vsel %vm3353_vm10, %v3313_v35, %v3385_v6 }
 0x2dd   :  { %v3320_v29 = vpop.f32.mrf.mxu1  ;;  %v3512_v36 = vadd.f32 %v3469_v19, %v3468_v49  ;;  %v3470_v43 = vmul.f32 %v5685_v23, %v3417_v63 }
 0x2de   :  { %vm3355_vm12 = vcmp.gt.f32.partialorder %v3319_v16, 0.0  ;;  %v3387_v60 = vmul.f32 0.2, %v3319_v16  ;;  %v3321_v34 = vadd.f32 %v3320_v29, %v3208_v22  ;;  %v3418_v31 = vsel %vm3354_vm11, %v3315_v37, %v3386_v26 }
 0x2df   :  { %v3322_v18 = vpop.f32.mrf.mxu1  ;;  %3513 = vadd.xlane.f32.xlu0 %v3512_v36  ;;  %v3471_v13 = vmul.f32 %v5688_v53, %v3418_v31 }
 0x2e0   :  { %vm3356_vm13 = vcmp.gt.f32.partialorder %v3321_v34, 0.0  ;;  %v3388_v61 = vmul.f32 0.2, %v3321_v34  ;;  %v3323_v20 = vadd.f32 %v3322_v18, %v3210_v45  ;;  %v3419_v54 = vsel %vm3355_vm12, %v3319_v16, %v3387_v60 }
 0x2e1   :  { %v3324_v33 = vpop.f32.mrf.mxu1  ;;  %v3515_v24 = vadd.f32 %v3471_v13, %v3470_v43  ;;  %v3472_v56 = vmul.f32 %v5685_v23, %v3419_v54 }
 0x2e2   :  { %vm3357_vm14 = vcmp.gt.f32.partialorder %v3323_v20, 0.0  ;;  %v3389_v17 = vmul.f32 0.2, %v3323_v20  ;;  %v3325_v0 = vadd.f32 %v3324_v33, %v3212_v42  ;;  %v3420_v51 = vsel %vm3356_vm13, %v3321_v34, %v3388_v61 }
 0x2e3   :  { %3516 = vadd.xlane.f32.xlu1 %v3515_v24  ;;  %v3473_v48 = vmul.f32 %v5688_v53, %v3420_v51 }
 0x2e4   :  { %vm3358_vm15 = vcmp.gt.f32.partialorder %v3325_v0, 0.0  ;;  %v3390_v7 = vmul.f32 0.2, %v3325_v0  ;;  %v3421_v50 = vsel %vm3357_vm14, %v3323_v20, %v3389_v17 }
 0x2e5   :  { %v3518_v11 = vadd.f32 %v3473_v48, %v3472_v56  ;;  %v3474_v14 = vmul.f32 %v5685_v23, %v3421_v50 }
 0x2e6   :  { %v3422_v58 = vsel %vm3358_vm15, %v3325_v0, %v3390_v7 }
 0x2e7   :  { %3519 = vadd.xlane.f32.xlu0 %v3518_v11  ;;  %v3475_v25 = vmul.f32 %v5688_v53, %v3422_v58 }
 0x2e9   :  { %v3521_v40 = vadd.f32 %v3475_v25, %v3474_v14 }
 0x2eb   :  { %3522 = vadd.xlane.f32.xlu1 %v3521_v40 }
 0x338   :  { %v3478_v21 = vpop.xlane.xlu0 %3477 }
 0x339   :  { %v3531_v28 = vadd.f32 %v5784_v12, %v3478_v21 }
 0x33b   :  { %v3954_v46 = vmul.f32 -1.442695, %v3531_v28 }
 0x33c   :  { %v3481_v57 = vpop.xlane.xlu0 %3480 }
 0x33d   :  { %4406 = vpow2.f32 %v3954_v46  ;;  %v3532_v5 = vadd.f32 %v5784_v12, %v3481_v57 }
 0x33f   :  { %v3955_v8 = vmul.f32 -1.442695, %v3532_v5 }
 0x340   :  { %v3484_v3 = vpop.xlane.xlu1 %3483 }
 0x341   :  { %4408 = vpow2.f32 %v3955_v8  ;;  %v3533_v32 = vadd.f32 %v5784_v12, %v3484_v3 }
 0x343   :  { %v3956_v23 = vmul.f32 -1.442695, %v3533_v32 }
 0x344   :  { %v3487_v9 = vpop.xlane.xlu1 %3486 }
 0x345   :  { %4410 = vpow2.f32 %v3956_v23  ;;  %v3534_v53 = vadd.f32 %v5784_v12, %v3487_v9 }
 0x347   :  { %v3957_v1 = vmul.f32 -1.442695, %v3534_v53 }
 0x348   :  { %v3490_v47 = vpop.xlane.xlu0 %3489 }
 0x349   :  { %4412 = vpow2.f32 %v3957_v1  ;;  %v3535_v38 = vadd.f32 %v5784_v12, %v3490_v47 }
 0x34a   :  { %v4407_v41 = vpop.eup %4406 }
 0x34b   :  { %v3595_v15 = vadd.f32 1.0, %v4407_v41  ;;  %v3958_v52 = vmul.f32 -1.442695, %v3535_v38 }
 0x34c   :  { %v3493_v39 = vpop.xlane.xlu1 %3492 }
 0x34d   :  { %4414 = vrcp.f32 %v3595_v15  ;;  %v3536_v27 = vadd.f32 %v5784_v12, %v3493_v39 }
 0x34e   :  { %v4409_v55 = vpop.eup %4408  ;;  %4416 = vpow2.f32 %v3958_v52 }
 0x34f   :  { %v3596_v35 = vadd.f32 1.0, %v4409_v55  ;;  %v3959_v10 = vmul.f32 -1.442695, %v3536_v27 }
 0x350   :  { %v3496_v59 = vpop.xlane.xlu0 %3495 }
 0x351   :  { %4418 = vrcp.f32 %v3596_v35  ;;  %v3537_v4 = vadd.f32 %v5784_v12, %v3496_v59 }
 0x352   :  { %v4411_v44 = vpop.eup %4410  ;;  %4420 = vpow2.f32 %v3959_v10 }
 0x353   :  { %v3597_v6 = vadd.f32 1.0, %v4411_v44  ;;  %v3960_v37 = vmul.f32 -1.442695, %v3537_v4 }
 0x354   :  { %v3499_v2 = vpop.xlane.xlu1 %3498 }
 0x355   :  { %4422 = vrcp.f32 %v3597_v6  ;;  %v3538_v22 = vadd.f32 %v5784_v12, %v3499_v2 }
 0x356   :  { %v4413_v30 = vpop.eup %4412  ;;  %4424 = vpow2.f32 %v3960_v37 }
 0x357   :  { %v3598_v49 = vadd.f32 1.0, %v4413_v30  ;;  %v3961_v19 = vmul.f32 -1.442695, %v3538_v22 }
 0x358   :  { %v3502_v62 = vpop.xlane.xlu0 %3501 }
 0x359   :  { %4426 = vrcp.f32 %v3598_v49  ;;  %v3539_v26 = vadd.f32 %v5784_v12, %v3502_v62 }
 0x35a   :  { %v4415_v16 = vpop.eup %4414  ;;  %4428 = vpow2.f32 %v3961_v19 }
 0x35b   :  { %v4417_v63 = vpop.eup %4416  ;;  %3644 = vst.msk [vmem:[%s5873_s7] sm:$0xff] %vm3643_vm0, %v4415_v16  ;;  %v3962_v45 = vmul.f32 -1.442695, %v3539_v26 }
 0x35c   :  { %v3599_v29 = vadd.f32 1.0, %v4417_v63  ;;  %v3505_v36 = vpop.xlane.xlu1 %3504 }
 0x35d   :  { %4430 = vpow2.f32 %v3962_v45  ;;  %v3540_v60 = vadd.f32 %v5784_v12, %v3505_v36 }
 0x35e   :  { %v4419_v34 = vpop.eup %4418  ;;  %4432 = vrcp.f32 %v3599_v29 }
 0x35f   :  { %v4421_v31 = vpop.eup %4420  ;;  %3645 = vst.msk [vmem:[%s5873_s7 + $0x8] sm:$0xff] %vm3643_vm0, %v4419_v34  ;;  %v3963_v42 = vmul.f32 -1.442695, %v3540_v60 }
 0x360   :  { %v3600_v18 = vadd.f32 1.0, %v4421_v31  ;;  %v3508_v43 = vpop.xlane.xlu0 %3507 }
 0x361   :  { %4434 = vpow2.f32 %v3963_v42  ;;  %v3541_v13 = vadd.f32 %v5784_v12, %v3508_v43 }
 0x362   :  { %v4423_v61 = vpop.eup %4422  ;;  %4436 = vrcp.f32 %v3600_v18 }
 0x363   :  { %v4425_v20 = vpop.eup %4424  ;;  %3646 = vst.msk [vmem:[%s5873_s7 + $0x10] sm:$0xff] %vm3643_vm0, %v4423_v61  ;;  %v3964_v54 = vmul.f32 -1.442695, %v3541_v13 }
 0x364   :  { %v3601_v33 = vadd.f32 1.0, %v4425_v20  ;;  %v3511_v24 = vpop.xlane.xlu1 %3510 }
 0x365   :  { %4438 = vpow2.f32 %v3964_v54  ;;  %v3542_v17 = vadd.f32 %v5784_v12, %v3511_v24 }
 0x366   :  { %v4427_v0 = vpop.eup %4426  ;;  %4440 = vrcp.f32 %v3601_v33 }
 0x367   :  { %v4429_v51 = vpop.eup %4428  ;;  %3647 = vst.msk [vmem:[%s5873_s7 + $0x18] sm:$0xff] %vm3643_vm0, %v4427_v0  ;;  %v3965_v56 = vmul.f32 -1.442695, %v3542_v17 }
 0x368   :  { %v3602_v48 = vadd.f32 1.0, %v4429_v51  ;;  %v3514_v7 = vpop.xlane.xlu0 %3513 }
 0x369   :  { %4442 = vpow2.f32 %v3965_v56  ;;  %v3543_v50 = vadd.f32 %v5784_v12, %v3514_v7 }
 0x36a   :  { %v4431_v11 = vpop.eup %4430  ;;  %4444 = vrcp.f32 %v3602_v48 }
 0x36b   :  { %v4433_v58 = vpop.eup %4432  ;;  %v3603_v14 = vadd.f32 1.0, %v4431_v11  ;;  %v3966_v25 = vmul.f32 -1.442695, %v3543_v50 }
 0x36c   :  { %3648 = vst.msk [vmem:[%s5873_s7 + $0x20] sm:$0xff] %vm3643_vm0, %v4433_v58  ;;  %v3517_v40 = vpop.xlane.xlu1 %3516 }
 0x36d   :  { %4446 = vrcp.f32 %v3603_v14  ;;  %v3544_v21 = vadd.f32 %v5784_v12, %v3517_v40 }
 0x36e   :  { %v4435_v28 = vpop.eup %4434  ;;  %4448 = vpow2.f32 %v3966_v25 }
 0x36f   :  { %v4437_v46 = vpop.eup %4436  ;;  %v3604_v57 = vadd.f32 1.0, %v4435_v28  ;;  %v3967_v5 = vmul.f32 -1.442695, %v3544_v21 }
 0x370   :  { %3649 = vst.msk [vmem:[%s5873_s7 + $0x28] sm:$0xff] %vm3643_vm0, %v4437_v46  ;;  %v3520_v8 = vpop.xlane.xlu0 %3519 }
 0x371   :  { %4450 = vrcp.f32 %v3604_v57  ;;  %v3545_v3 = vadd.f32 %v5784_v12, %v3520_v8 }
 0x372   :  { %v4439_v32 = vpop.eup %4438  ;;  %4452 = vpow2.f32 %v3967_v5 }
 0x373   :  { %v4441_v23 = vpop.eup %4440  ;;  %v3605_v9 = vadd.f32 1.0, %v4439_v32  ;;  %v3968_v53 = vmul.f32 -1.442695, %v3545_v3 }
 0x374   :  { %3650 = vst.msk [vmem:[%s5873_s7 + $0x30] sm:$0xff] %vm3643_vm0, %v4441_v23  ;;  %v3523_v1 = vpop.xlane.xlu1 %3522 }
 0x375   :  { %4454 = vrcp.f32 %v3605_v9  ;;  %v3546_v47 = vadd.f32 %v5784_v12, %v3523_v1 }
 0x376   :  { %v4443_v38 = vpop.eup %4442  ;;  %4456 = vpow2.f32 %v3968_v53 }
 0x377   :  { %v4445_v41 = vpop.eup %4444  ;;  %v3606_v15 = vadd.f32 1.0, %v4443_v38  ;;  %v3969_v52 = vmul.f32 -1.442695, %v3546_v47 }
 0x378   :  { %3651 = vst.msk [vmem:[%s5873_s7 + $0x38] sm:$0xff] %vm3643_vm0, %v4445_v41 }
 0x379   :  { %4458 = vrcp.f32 %v3606_v15 }
 0x37a   :  { %v4447_v39 = vpop.eup %4446  ;;  %4460 = vpow2.f32 %v3969_v52 }
 0x37b   :  { %v4449_v27 = vpop.eup %4448  ;;  %3652 = vst.msk [vmem:[%s5873_s7 + $0x40] sm:$0xff] %vm3643_vm0, %v4447_v39 }
 0x37c   :  { %v3607_v12 = vadd.f32 1.0, %v4449_v27 }
 0x37e   :  { %v4451_v55 = vpop.eup %4450  ;;  %4462 = vrcp.f32 %v3607_v12 }
 0x37f   :  { %v4453_v35 = vpop.eup %4452  ;;  %3653 = vst.msk [vmem:[%s5873_s7 + $0x48] sm:$0xff] %vm3643_vm0, %v4451_v55 }
 0x380   :  { %v3608_v10 = vadd.f32 1.0, %v4453_v35 }
 0x382   :  { %v4455_v59 = vpop.eup %4454  ;;  %4464 = vrcp.f32 %v3608_v10 }
 0x383   :  { %v4457_v4 = vpop.eup %4456  ;;  %3654 = vst.msk [vmem:[%s5873_s7 + $0x50] sm:$0xff] %vm3643_vm0, %v4455_v59 }
 0x384   :  { %v3609_v44 = vadd.f32 1.0, %v4457_v4 }
 0x386   :  { %v4459_v6 = vpop.eup %4458  ;;  %4466 = vrcp.f32 %v3609_v44 }
 0x387   :  { %v4461_v37 = vpop.eup %4460  ;;  %3655 = vst.msk [vmem:[%s5873_s7 + $0x58] sm:$0xff] %vm3643_vm0, %v4459_v6 }
 0x388   :  { %v3610_v2 = vadd.f32 1.0, %v4461_v37 }
 0x38a   :  { %4468 = vrcp.f32 %v3610_v2 }
 0x38b   :  { %v4463_v22 = vpop.eup %4462 }
 0x38c   :  { %3656 = vst.msk [vmem:[%s5873_s7 + $0x60] sm:$0xff] %vm3643_vm0, %v4463_v22 }
 0x38f   :  { %v4465_v30 = vpop.eup %4464 }
 0x390   :  { %3657 = vst.msk [vmem:[%s5873_s7 + $0x68] sm:$0xff] %vm3643_vm0, %v4465_v30 }
 0x393   :  { %v4467_v49 = vpop.eup %4466 }
 0x394   :  { %3658 = vst.msk [vmem:[%s5873_s7 + $0x70] sm:$0xff] %vm3643_vm0, %v4467_v49 }
 0x397   :  { %v4469_v19 = vpop.eup %4468 }
 0x398   :  { %3659 = vst.msk [vmem:[%s5873_s7 + $0x78] sm:$0xff] %vm3643_vm0, %v4469_v19 }
 0x399   :  { %3664 = vsyncpa [#allocation4], 1 }

</bundles_post_ra>
